<compile_context>
chip_gen: v5e
topology: v5e:2x2
jax: 0.10.0
libtpu: 0.0.40
codegen_flags: <defaults>
</compile_context>

<pallas_src>
import math
from functools import partial

import jax
import jax.numpy as jnp
from jax.experimental import pallas as pl
from jax.experimental.pallas import tpu as pltpu


def _round_up(x, m):
    return (x + m - 1) // m * m


# ----------------------------------------------------------------------------
# Fused Conv3d(1->1, k3, s1, p1) + BN(eval) + LeakyReLU + MaxPool3d(2,2)
# ----------------------------------------------------------------------------
def _conv_block_kernel(p_ref, csel_ref, rsel_ref, xa_ref, xb_ref, o_ref,
                       *, hb, W):
    """One grid step computes a (hb//2, W//2) tile of one pooled-T plane.

    p_ref   : SMEM (29,) = [27 BN-scaled conv taps, shift, leaky_slope]
    csel_ref: VMEM (2, W, W//2)    column-pool 0/1 selectors (resident)
    rsel_ref: VMEM (2, hb//2, hb)  row-pool 0/1 selectors (resident)
    xa_ref  : VMEM (1, 2, Hpad, Wp) padded input planes 2t, 2t+1
    xb_ref  : VMEM (1, 2, Hpad, Wp) padded input planes 2t+2, 2t+3
    o_ref   : VMEM (1, 1, hb//2, W//2)
    """
    j = pl.program_id(2)
    row0 = j * hb
    if hb % 8 == 0:
        row0 = pl.multiple_of(row0, 8)
    R = hb + 8                       # rows loaded; only the first hb+2 matter

    planes = [
        xa_ref[0, 0, pl.ds(row0, R), :],
        xa_ref[0, 1, pl.ds(row0, R), :],
        xb_ref[0, 0, pl.ds(row0, R), :],
        xb_ref[0, 1, pl.ds(row0, R), :],
    ]
    # Lane (W-axis) shifts computed once per input plane; shared by both
    # temporal output planes.
    shifted = [[p[:, dw:dw + W] for dw in range(3)] for p in planes]

    wgt = [p_ref[i] for i in range(27)]
    shift = p_ref[27]
    slope = p_ref[28]

    def conv_plane(c):
        # Row partials: rows[dh] = sum_{dt,dw} w[dt,dh,dw] * shifted[c+dt][dw]
        rows = []
        for dh in range(3):
            acc = None
            for dt in range(3):
                for dw in range(3):
                    term = wgt[9 * dt + 3 * dh + dw] * shifted[c + dt][dw]
                    acc = term if acc is None else acc + term
            rows.append(acc)
        # Apply the dh offsets once, on the partial sums (3 sublane shifts).
        y = (rows[0][0:hb, :] + rows[1][1:hb + 1, :] + rows[2][2:hb + 2, :]
             + shift)
        return jnp.where(y >= 0.0, y, slope * y)     # LeakyReLU(0.01)

    tmax = jnp.maximum(conv_plane(0), conv_plane(1))  # temporal 2-max

    # 2x2 spatial max-pool via exact 0/1 selection matmuls (MXU).
    colmax = jnp.maximum(
        jnp.dot(tmax, csel_ref[0], preferred_element_type=jnp.float32),
        jnp.dot(tmax, csel_ref[1], preferred_element_type=jnp.float32))
    pooled = jnp.maximum(
        jnp.dot(rsel_ref[0], colmax, preferred_element_type=jnp.float32),
        jnp.dot(rsel_ref[1], colmax, preferred_element_type=jnp.float32))
    o_ref[0, 0] = pooled


def _pick_hb(H, W):
    """H tile: full H if the plane is small, else the largest multiple of 16
    dividing H whose (hb, W) f32 working set stays within ~40 vregs."""
    if H * W <= 128 * 320:
        return H
    cap = max(16, (128 * 320 // W) // 16 * 16)
    hb = min(cap, H) // 16 * 16
    while hb >= 16:
        if H % hb == 0:
            return hb
        hb -= 16
    return H                          # full-dim block is always legal


def _pool_rows(n):
    """(2, n//2, n): [0][i,j] = (j == 2i), [1][i,j] = (j == 2i+1)."""
    i = jnp.arange(n // 2)[:, None]
    j = jnp.arange(n)[None, :]
    return jnp.stack([(j == 2 * i), (j == 2 * i + 1)]).astype(jnp.float32)


def conv_block(x, pvec):
    """x: (B, T, H, W) f32 -> (B, T//2, H//2, W//2) f32."""
    B, T, H, W = x.shape
    assert T % 2 == 0 and H % 2 == 0 and W % 2 == 0
    hb = _pick_hb(H, W)
    nH = H // hb
    To, Ho, Wo = T // 2, H // 2, W // 2
    Hpad, Wp = H + 8, W + 2
    # +1 halo for padding=1; extra zero rows at the bottom of H keep the
    # 8-aligned in-kernel window loads in bounds (never used by the math).
    xpad = jnp.pad(x, ((0, 0), (1, 1), (1, 7), (1, 1)))
    csel = jnp.swapaxes(_pool_rows(W), 1, 2)        # (2, W, Wo)
    rsel = _pool_rows(hb)                           # (2, hb//2, hb)

    return pl.pallas_call(
        partial(_conv_block_kernel, hb=hb, W=W),
        out_shape=jax.ShapeDtypeStruct((B, To, Ho, Wo), jnp.float32),
        grid_spec=pltpu.PrefetchScalarGridSpec(
            num_scalar_prefetch=0,
            grid=(B, To, nH),
            in_specs=[
                pl.BlockSpec(memory_space=pltpu.MemorySpace.SMEM),
                pl.BlockSpec((2, W, Wo), lambda b, t, j: (0, 0, 0)),
                pl.BlockSpec((2, hb // 2, hb), lambda b, t, j: (0, 0, 0)),
                pl.BlockSpec((1, 2, Hpad, Wp), lambda b, t, j: (b, t, 0, 0)),
                pl.BlockSpec((1, 2, Hpad, Wp), lambda b, t, j: (b, t + 1, 0, 0)),
            ],
            out_specs=pl.BlockSpec((1, 1, hb // 2, Wo),
                                   lambda b, t, j: (b, t, j, 0)),
        ),
        compiler_params=pltpu.CompilerParams(
            dimension_semantics=("parallel", "parallel", "parallel")),
    )(pvec, csel, rsel, xpad, xpad)


# ----------------------------------------------------------------------------
# Fused FC head: relu(x @ W1 + b1) @ W2 + b2 in one kernel
# ----------------------------------------------------------------------------
def _mlp_head_kernel(x_ref, w1_ref, b1_ref, w2_ref, b2_ref, o_ref, acc_ref):
    k = pl.program_id(0)

    @pl.when(k == 0)
    def _():
        acc_ref[...] = jnp.zeros_like(acc_ref)

    acc_ref[...] += jnp.dot(x_ref[...], w1_ref[...],
                            preferred_element_type=jnp.float32)

    @pl.when(k == pl.num_programs(0) - 1)
    def _():
        h = jnp.maximum(acc_ref[...] + b1_ref[...], 0.0)         # bias + ReLU
        o_ref[...] = (jnp.dot(h, w2_ref[...],
                              preferred_element_type=jnp.float32)
                      + b2_ref[...])                              # fused FC2


def _pick_tk(Kp, Mp, Np, budget=6 * 1024 * 1024):
    """Largest 128-multiple dividing Kp whose double-buffered bf16 x/w1 tiles
    stay within `budget` (v5e 16 MiB scoped-VMEM safe)."""
    best = 128
    for t in range(128, Kp + 1, 128):
        if Kp % t == 0 and 4 * t * (Mp + Np) <= budget:
            best = t
    return best


def mlp_head(x, w1, b1, w2, b2):
    """relu(x @ w1 + b1) @ w2 + b2.  bf16 FC1 operands, f32 accumulation."""
    M, K = x.shape
    K1, N1 = w1.shape
    N2, C = w2.shape
    assert K == K1 and N1 == N2
    Mp = _round_up(max(M, 8), 8)
    Kp = _round_up(K, 128)
    Np = _round_up(N1, 128)
    xb = jnp.pad(x.astype(jnp.bfloat16), ((0, Mp - M), (0, Kp - K)))
    w1b = jnp.pad(w1.astype(jnp.bfloat16), ((0, Kp - K), (0, Np - N1)))
    b1p = jnp.pad(b1.astype(jnp.float32), (0, Np - N1)).reshape(1, Np)
    w2p = jnp.pad(w2.astype(jnp.float32), ((0, Np - N1), (0, 0)))
    b2p = b2.astype(jnp.float32).reshape(1, C)
    tk = _pick_tk(Kp, Mp, Np)

    out = pl.pallas_call(
        _mlp_head_kernel,
        out_shape=jax.ShapeDtypeStruct((Mp, C), jnp.float32),
        grid_spec=pltpu.PrefetchScalarGridSpec(
            num_scalar_prefetch=0,
            grid=(Kp // tk,),
            in_specs=[
                pl.BlockSpec((Mp, tk), lambda k: (0, k)),
                pl.BlockSpec((tk, Np), lambda k: (k, 0)),
                pl.BlockSpec((1, Np), lambda k: (0, 0)),
                pl.BlockSpec((Np, C), lambda k: (0, 0)),
                pl.BlockSpec((1, C), lambda k: (0, 0)),
            ],
            out_specs=pl.BlockSpec((Mp, C), lambda k: (0, 0)),
            scratch_shapes=[pltpu.VMEM((Mp, Np), jnp.float32)],
        ),
        compiler_params=pltpu.CompilerParams(
            dimension_semantics=("arbitrary",)),
    )(xb, w1b, b1p, w2p, b2p)
    return out[:M]


# ----------------------------------------------------------------------------
# Parameter init (PyTorch defaults; BN folded in inference mode)
# ----------------------------------------------------------------------------
def init_params(num_classes, fc1_in, key):
    ks = jax.random.split(key, 8)
    eps = 1e-5
    bn_scale = 1.0 / math.sqrt(1.0 + eps)       # gamma=1, running_var=1
    wb = 1.0 / math.sqrt(27.0)                  # Conv3d kaiming_uniform(a=sqrt(5))
    convs = []
    for i in range(3):
        w = jax.random.uniform(ks[2 * i], (3, 3, 3), jnp.float32, -wb, wb)
        cb = jax.random.uniform(ks[2 * i + 1], (), jnp.float32, -wb, wb)
        pvec = jnp.concatenate([
            (w * bn_scale).reshape(-1),          # BN scale folded into taps
            jnp.reshape(cb * bn_scale, (1,)),    # folded conv-bias shift
            jnp.array([0.01], jnp.float32),      # LeakyReLU default slope
        ])
        convs.append(pvec)
    b1 = 1.0 / math.sqrt(fc1_in)
    fc1_w = jax.random.uniform(ks[6], (fc1_in, 1000), jnp.float32, -b1, b1)
    fc1_b = jax.random.uniform(jax.random.fold_in(ks[6], 1), (1000,),
                               jnp.float32, -b1, b1)
    b2 = 1.0 / math.sqrt(1000.0)
    fc2_w = jax.random.uniform(ks[7], (1000, num_classes), jnp.float32, -b2, b2)
    fc2_b = jax.random.uniform(jax.random.fold_in(ks[7], 1), (num_classes,),
                               jnp.float32, -b2, b2)
    return {"convs": convs, "fc1_w": fc1_w, "fc1_b": fc1_b,
            "fc2_w": fc2_w, "fc2_b": fc2_b}


# ----------------------------------------------------------------------------
# Forward pass
# ----------------------------------------------------------------------------
def cv3fc2_3d_forward(params, x_ncdhw):
    assert x_ncdhw.shape[1] == 1
    h = x_ncdhw[:, 0].astype(jnp.float32)        # (B, D, H, W), channel squeezed
    for pvec in params["convs"]:
        h = conv_block(h, pvec)
    B = h.shape[0]
    feat = h.reshape(B, -1)                      # matches torch Flatten order
    assert feat.shape[1] == params["fc1_w"].shape[0]
    return mlp_head(feat, params["fc1_w"], params["fc1_b"],
                    params["fc2_w"], params["fc2_b"])


# ----------------------------------------------------------------------------
if __name__ == "__main__":
    num_classes = 4
    root = jax.random.PRNGKey(0)
    pkey, xkey = jax.random.split(root)

    # Small demo shapes (three 2x2x2 pools require D,H,W divisible by 8).
    B, D, H, W = 2, 16, 32, 32
    fc1_in = (D // 8) * (H // 8) * (W // 8)      # conv-output features per sample
    params = init_params(num_classes, fc1_in, pkey)
    x = jax.random.normal(xkey, (B, 1, D, H, W), jnp.float32)

    fwd = jax.jit(lambda inp: cv3fc2_3d_forward(params, inp))
    out = jax.block_until_ready(fwd(x))
    assert out.shape == (B, num_classes), out.shape
    assert bool(jnp.all(jnp.isfinite(out)))
    print("KERNEL_OK")
</pallas_src>

<mosaic_0001>
module attributes {stable_mosaic.version = 11 : i64} {
  func.func @_conv_block_kernel(%arg0: i32, %arg1: i32, %arg2: i32, %arg3: memref<29xf32, #tpu.memory_space<smem>>, %arg4: memref<2x32x16xf32, #tpu.memory_space<vmem>>, %arg5: memref<2x16x32xf32, #tpu.memory_space<vmem>>, %arg6: memref<1x2x40x34xf32, #tpu.memory_space<vmem>>, %arg7: memref<1x2x40x34xf32, #tpu.memory_space<vmem>>, %arg8: memref<1x1x16x16xf32, #tpu.memory_space<vmem>>) attributes {dimension_semantics = [#tpu.dimension_semantics<parallel>, #tpu.dimension_semantics<parallel>, #tpu.dimension_semantics<parallel>], iteration_bounds = array<i64: 2, 8, 1>, scalar_prefetch = 0 : i64, scratch_operands = 0 : i64, tpu.core_type = #tpu.core_type<tc>, window_params = [{transform_indices = @transform_0, window_bounds = array<i64: 29>}, {pipeline_mode = #tpu.pipeline_mode<synchronous>, transform_indices = @transform_1, window_bounds = array<i64: 2, 32, 16>}, {pipeline_mode = #tpu.pipeline_mode<synchronous>, transform_indices = @transform_2, window_bounds = array<i64: 2, 16, 32>}, {transform_indices = @transform_3, window_bounds = array<i64: 1, 2, 40, 34>}, {transform_indices = @transform_4, window_bounds = array<i64: 1, 2, 40, 34>}, {transform_indices = @transform_5, window_bounds = array<i64: 1, 1, 16, 16>}]} {
    %c32_i32 = arith.constant 32 : i32
    %0 = arith.muli %arg2, %c32_i32 : i32
    %1 = tpu.assume_multiple %0, 8 : i32
    %c0 = arith.constant 0 : index
    %c0_0 = arith.constant 0 : index
    %2 = arith.index_cast %1 : i32 to index
    %c0_1 = arith.constant 0 : index
    %3 = vector.load %arg6[%c0, %c0_0, %2, %c0_1] : memref<1x2x40x34xf32, #tpu.memory_space<vmem>>, vector<1x1x40x34xf32>
    %4 = vector.shape_cast %3 : vector<1x1x40x34xf32> to vector<40x34xf32>
    %c0_2 = arith.constant 0 : index
    %c1 = arith.constant 1 : index
    %5 = arith.index_cast %1 : i32 to index
    %c0_3 = arith.constant 0 : index
    %6 = vector.load %arg6[%c0_2, %c1, %5, %c0_3] : memref<1x2x40x34xf32, #tpu.memory_space<vmem>>, vector<1x1x40x34xf32>
    %7 = vector.shape_cast %6 : vector<1x1x40x34xf32> to vector<40x34xf32>
    %c0_4 = arith.constant 0 : index
    %c0_5 = arith.constant 0 : index
    %8 = arith.index_cast %1 : i32 to index
    %c0_6 = arith.constant 0 : index
    %9 = vector.load %arg7[%c0_4, %c0_5, %8, %c0_6] : memref<1x2x40x34xf32, #tpu.memory_space<vmem>>, vector<1x1x40x34xf32>
    %10 = vector.shape_cast %9 : vector<1x1x40x34xf32> to vector<40x34xf32>
    %c0_7 = arith.constant 0 : index
    %c1_8 = arith.constant 1 : index
    %11 = arith.index_cast %1 : i32 to index
    %c0_9 = arith.constant 0 : index
    %12 = vector.load %arg7[%c0_7, %c1_8, %11, %c0_9] : memref<1x2x40x34xf32, #tpu.memory_space<vmem>>, vector<1x1x40x34xf32>
    %13 = vector.shape_cast %12 : vector<1x1x40x34xf32> to vector<40x34xf32>
    %14 = vector.extract_strided_slice %4 {offsets = [0, 0], sizes = [40, 32], strides = [1, 1]} : vector<40x34xf32> to vector<40x32xf32>
    %15 = vector.extract_strided_slice %4 {offsets = [0, 1], sizes = [40, 32], strides = [1, 1]} : vector<40x34xf32> to vector<40x32xf32>
    %16 = vector.extract_strided_slice %4 {offsets = [0, 2], sizes = [40, 32], strides = [1, 1]} : vector<40x34xf32> to vector<40x32xf32>
    %17 = vector.extract_strided_slice %7 {offsets = [0, 0], sizes = [40, 32], strides = [1, 1]} : vector<40x34xf32> to vector<40x32xf32>
    %18 = vector.extract_strided_slice %7 {offsets = [0, 1], sizes = [40, 32], strides = [1, 1]} : vector<40x34xf32> to vector<40x32xf32>
    %19 = vector.extract_strided_slice %7 {offsets = [0, 2], sizes = [40, 32], strides = [1, 1]} : vector<40x34xf32> to vector<40x32xf32>
    %20 = vector.extract_strided_slice %10 {offsets = [0, 0], sizes = [40, 32], strides = [1, 1]} : vector<40x34xf32> to vector<40x32xf32>
    %21 = vector.extract_strided_slice %10 {offsets = [0, 1], sizes = [40, 32], strides = [1, 1]} : vector<40x34xf32> to vector<40x32xf32>
    %22 = vector.extract_strided_slice %10 {offsets = [0, 2], sizes = [40, 32], strides = [1, 1]} : vector<40x34xf32> to vector<40x32xf32>
    %23 = vector.extract_strided_slice %13 {offsets = [0, 0], sizes = [40, 32], strides = [1, 1]} : vector<40x34xf32> to vector<40x32xf32>
    %24 = vector.extract_strided_slice %13 {offsets = [0, 1], sizes = [40, 32], strides = [1, 1]} : vector<40x34xf32> to vector<40x32xf32>
    %25 = vector.extract_strided_slice %13 {offsets = [0, 2], sizes = [40, 32], strides = [1, 1]} : vector<40x34xf32> to vector<40x32xf32>
    %c0_10 = arith.constant 0 : index
    %26 = memref.load %arg3[%c0_10] : memref<29xf32, #tpu.memory_space<smem>>
    %c1_11 = arith.constant 1 : index
    %27 = memref.load %arg3[%c1_11] : memref<29xf32, #tpu.memory_space<smem>>
    %c2 = arith.constant 2 : index
    %28 = memref.load %arg3[%c2] : memref<29xf32, #tpu.memory_space<smem>>
    %c3 = arith.constant 3 : index
    %29 = memref.load %arg3[%c3] : memref<29xf32, #tpu.memory_space<smem>>
    %c4 = arith.constant 4 : index
    %30 = memref.load %arg3[%c4] : memref<29xf32, #tpu.memory_space<smem>>
    %c5 = arith.constant 5 : index
    %31 = memref.load %arg3[%c5] : memref<29xf32, #tpu.memory_space<smem>>
    %c6 = arith.constant 6 : index
    %32 = memref.load %arg3[%c6] : memref<29xf32, #tpu.memory_space<smem>>
    %c7 = arith.constant 7 : index
    %33 = memref.load %arg3[%c7] : memref<29xf32, #tpu.memory_space<smem>>
    %c8 = arith.constant 8 : index
    %34 = memref.load %arg3[%c8] : memref<29xf32, #tpu.memory_space<smem>>
    %c9 = arith.constant 9 : index
    %35 = memref.load %arg3[%c9] : memref<29xf32, #tpu.memory_space<smem>>
    %c10 = arith.constant 10 : index
    %36 = memref.load %arg3[%c10] : memref<29xf32, #tpu.memory_space<smem>>
    %c11 = arith.constant 11 : index
    %37 = memref.load %arg3[%c11] : memref<29xf32, #tpu.memory_space<smem>>
    %c12 = arith.constant 12 : index
    %38 = memref.load %arg3[%c12] : memref<29xf32, #tpu.memory_space<smem>>
    %c13 = arith.constant 13 : index
    %39 = memref.load %arg3[%c13] : memref<29xf32, #tpu.memory_space<smem>>
    %c14 = arith.constant 14 : index
    %40 = memref.load %arg3[%c14] : memref<29xf32, #tpu.memory_space<smem>>
    %c15 = arith.constant 15 : index
    %41 = memref.load %arg3[%c15] : memref<29xf32, #tpu.memory_space<smem>>
    %c16 = arith.constant 16 : index
    %42 = memref.load %arg3[%c16] : memref<29xf32, #tpu.memory_space<smem>>
    %c17 = arith.constant 17 : index
    %43 = memref.load %arg3[%c17] : memref<29xf32, #tpu.memory_space<smem>>
    %c18 = arith.constant 18 : index
    %44 = memref.load %arg3[%c18] : memref<29xf32, #tpu.memory_space<smem>>
    %c19 = arith.constant 19 : index
    %45 = memref.load %arg3[%c19] : memref<29xf32, #tpu.memory_space<smem>>
    %c20 = arith.constant 20 : index
    %46 = memref.load %arg3[%c20] : memref<29xf32, #tpu.memory_space<smem>>
    %c21 = arith.constant 21 : index
    %47 = memref.load %arg3[%c21] : memref<29xf32, #tpu.memory_space<smem>>
    %c22 = arith.constant 22 : index
    %48 = memref.load %arg3[%c22] : memref<29xf32, #tpu.memory_space<smem>>
    %c23 = arith.constant 23 : index
    %49 = memref.load %arg3[%c23] : memref<29xf32, #tpu.memory_space<smem>>
    %c24 = arith.constant 24 : index
    %50 = memref.load %arg3[%c24] : memref<29xf32, #tpu.memory_space<smem>>
    %c25 = arith.constant 25 : index
    %51 = memref.load %arg3[%c25] : memref<29xf32, #tpu.memory_space<smem>>
    %c26 = arith.constant 26 : index
    %52 = memref.load %arg3[%c26] : memref<29xf32, #tpu.memory_space<smem>>
    %c27 = arith.constant 27 : index
    %53 = memref.load %arg3[%c27] : memref<29xf32, #tpu.memory_space<smem>>
    %c28 = arith.constant 28 : index
    %54 = memref.load %arg3[%c28] : memref<29xf32, #tpu.memory_space<smem>>
    %55 = vector.broadcast %26 : f32 to vector<40x32xf32>
    %56 = arith.mulf %55, %14 : vector<40x32xf32>
    %57 = vector.broadcast %27 : f32 to vector<40x32xf32>
    %58 = arith.mulf %57, %15 : vector<40x32xf32>
    %59 = arith.addf %56, %58 : vector<40x32xf32>
    %60 = vector.broadcast %28 : f32 to vector<40x32xf32>
    %61 = arith.mulf %60, %16 : vector<40x32xf32>
    %62 = arith.addf %59, %61 : vector<40x32xf32>
    %63 = vector.broadcast %35 : f32 to vector<40x32xf32>
    %64 = arith.mulf %63, %17 : vector<40x32xf32>
    %65 = arith.addf %62, %64 : vector<40x32xf32>
    %66 = vector.broadcast %36 : f32 to vector<40x32xf32>
    %67 = arith.mulf %66, %18 : vector<40x32xf32>
    %68 = arith.addf %65, %67 : vector<40x32xf32>
    %69 = vector.broadcast %37 : f32 to vector<40x32xf32>
    %70 = arith.mulf %69, %19 : vector<40x32xf32>
    %71 = arith.addf %68, %70 : vector<40x32xf32>
    %72 = vector.broadcast %44 : f32 to vector<40x32xf32>
    %73 = arith.mulf %72, %20 : vector<40x32xf32>
    %74 = arith.addf %71, %73 : vector<40x32xf32>
    %75 = vector.broadcast %45 : f32 to vector<40x32xf32>
    %76 = arith.mulf %75, %21 : vector<40x32xf32>
    %77 = arith.addf %74, %76 : vector<40x32xf32>
    %78 = vector.broadcast %46 : f32 to vector<40x32xf32>
    %79 = arith.mulf %78, %22 : vector<40x32xf32>
    %80 = arith.addf %77, %79 : vector<40x32xf32>
    %81 = vector.broadcast %29 : f32 to vector<40x32xf32>
    %82 = arith.mulf %81, %14 : vector<40x32xf32>
    %83 = vector.broadcast %30 : f32 to vector<40x32xf32>
    %84 = arith.mulf %83, %15 : vector<40x32xf32>
    %85 = arith.addf %82, %84 : vector<40x32xf32>
    %86 = vector.broadcast %31 : f32 to vector<40x32xf32>
    %87 = arith.mulf %86, %16 : vector<40x32xf32>
    %88 = arith.addf %85, %87 : vector<40x32xf32>
    %89 = vector.broadcast %38 : f32 to vector<40x32xf32>
    %90 = arith.mulf %89, %17 : vector<40x32xf32>
    %91 = arith.addf %88, %90 : vector<40x32xf32>
    %92 = vector.broadcast %39 : f32 to vector<40x32xf32>
    %93 = arith.mulf %92, %18 : vector<40x32xf32>
    %94 = arith.addf %91, %93 : vector<40x32xf32>
    %95 = vector.broadcast %40 : f32 to vector<40x32xf32>
    %96 = arith.mulf %95, %19 : vector<40x32xf32>
    %97 = arith.addf %94, %96 : vector<40x32xf32>
    %98 = vector.broadcast %47 : f32 to vector<40x32xf32>
    %99 = arith.mulf %98, %20 : vector<40x32xf32>
    %100 = arith.addf %97, %99 : vector<40x32xf32>
    %101 = vector.broadcast %48 : f32 to vector<40x32xf32>
    %102 = arith.mulf %101, %21 : vector<40x32xf32>
    %103 = arith.addf %100, %102 : vector<40x32xf32>
    %104 = vector.broadcast %49 : f32 to vector<40x32xf32>
    %105 = arith.mulf %104, %22 : vector<40x32xf32>
    %106 = arith.addf %103, %105 : vector<40x32xf32>
    %107 = vector.broadcast %32 : f32 to vector<40x32xf32>
    %108 = arith.mulf %107, %14 : vector<40x32xf32>
    %109 = vector.broadcast %33 : f32 to vector<40x32xf32>
    %110 = arith.mulf %109, %15 : vector<40x32xf32>
    %111 = arith.addf %108, %110 : vector<40x32xf32>
    %112 = vector.broadcast %34 : f32 to vector<40x32xf32>
    %113 = arith.mulf %112, %16 : vector<40x32xf32>
    %114 = arith.addf %111, %113 : vector<40x32xf32>
    %115 = vector.broadcast %41 : f32 to vector<40x32xf32>
    %116 = arith.mulf %115, %17 : vector<40x32xf32>
    %117 = arith.addf %114, %116 : vector<40x32xf32>
    %118 = vector.broadcast %42 : f32 to vector<40x32xf32>
    %119 = arith.mulf %118, %18 : vector<40x32xf32>
    %120 = arith.addf %117, %119 : vector<40x32xf32>
    %121 = vector.broadcast %43 : f32 to vector<40x32xf32>
    %122 = arith.mulf %121, %19 : vector<40x32xf32>
    %123 = arith.addf %120, %122 : vector<40x32xf32>
    %124 = vector.broadcast %50 : f32 to vector<40x32xf32>
    %125 = arith.mulf %124, %20 : vector<40x32xf32>
    %126 = arith.addf %123, %125 : vector<40x32xf32>
    %127 = vector.broadcast %51 : f32 to vector<40x32xf32>
    %128 = arith.mulf %127, %21 : vector<40x32xf32>
    %129 = arith.addf %126, %128 : vector<40x32xf32>
    %130 = vector.broadcast %52 : f32 to vector<40x32xf32>
    %131 = arith.mulf %130, %22 : vector<40x32xf32>
    %132 = arith.addf %129, %131 : vector<40x32xf32>
    %133 = vector.extract_strided_slice %80 {offsets = [0, 0], sizes = [32, 32], strides = [1, 1]} : vector<40x32xf32> to vector<32x32xf32>
    %134 = vector.extract_strided_slice %106 {offsets = [1, 0], sizes = [32, 32], strides = [1, 1]} : vector<40x32xf32> to vector<32x32xf32>
    %135 = arith.addf %133, %134 : vector<32x32xf32>
    %136 = vector.extract_strided_slice %132 {offsets = [2, 0], sizes = [32, 32], strides = [1, 1]} : vector<40x32xf32> to vector<32x32xf32>
    %137 = arith.addf %135, %136 : vector<32x32xf32>
    %138 = vector.broadcast %53 : f32 to vector<32x32xf32>
    %139 = arith.addf %137, %138 : vector<32x32xf32>
    %cst = arith.constant 0.000000e+00 : f32
    %140 = vector.broadcast %cst : f32 to vector<32x32xf32>
    %141 = arith.cmpf oge, %139, %140 : vector<32x32xf32>
    %142 = vector.broadcast %54 : f32 to vector<32x32xf32>
    %143 = arith.mulf %142, %139 : vector<32x32xf32>
    %144 = arith.select %141, %139, %143 : vector<32x32xi1>, vector<32x32xf32>
    %145 = vector.broadcast %26 : f32 to vector<40x32xf32>
    %146 = arith.mulf %145, %17 : vector<40x32xf32>
    %147 = vector.broadcast %27 : f32 to vector<40x32xf32>
    %148 = arith.mulf %147, %18 : vector<40x32xf32>
    %149 = arith.addf %146, %148 : vector<40x32xf32>
    %150 = vector.broadcast %28 : f32 to vector<40x32xf32>
    %151 = arith.mulf %150, %19 : vector<40x32xf32>
    %152 = arith.addf %149, %151 : vector<40x32xf32>
    %153 = vector.broadcast %35 : f32 to vector<40x32xf32>
    %154 = arith.mulf %153, %20 : vector<40x32xf32>
    %155 = arith.addf %152, %154 : vector<40x32xf32>
    %156 = vector.broadcast %36 : f32 to vector<40x32xf32>
    %157 = arith.mulf %156, %21 : vector<40x32xf32>
    %158 = arith.addf %155, %157 : vector<40x32xf32>
    %159 = vector.broadcast %37 : f32 to vector<40x32xf32>
    %160 = arith.mulf %159, %22 : vector<40x32xf32>
    %161 = arith.addf %158, %160 : vector<40x32xf32>
    %162 = vector.broadcast %44 : f32 to vector<40x32xf32>
    %163 = arith.mulf %162, %23 : vector<40x32xf32>
    %164 = arith.addf %161, %163 : vector<40x32xf32>
    %165 = vector.broadcast %45 : f32 to vector<40x32xf32>
    %166 = arith.mulf %165, %24 : vector<40x32xf32>
    %167 = arith.addf %164, %166 : vector<40x32xf32>
    %168 = vector.broadcast %46 : f32 to vector<40x32xf32>
    %169 = arith.mulf %168, %25 : vector<40x32xf32>
    %170 = arith.addf %167, %169 : vector<40x32xf32>
    %171 = vector.broadcast %29 : f32 to vector<40x32xf32>
    %172 = arith.mulf %171, %17 : vector<40x32xf32>
    %173 = vector.broadcast %30 : f32 to vector<40x32xf32>
    %174 = arith.mulf %173, %18 : vector<40x32xf32>
    %175 = arith.addf %172, %174 : vector<40x32xf32>
    %176 = vector.broadcast %31 : f32 to vector<40x32xf32>
    %177 = arith.mulf %176, %19 : vector<40x32xf32>
    %178 = arith.addf %175, %177 : vector<40x32xf32>
    %179 = vector.broadcast %38 : f32 to vector<40x32xf32>
    %180 = arith.mulf %179, %20 : vector<40x32xf32>
    %181 = arith.addf %178, %180 : vector<40x32xf32>
    %182 = vector.broadcast %39 : f32 to vector<40x32xf32>
    %183 = arith.mulf %182, %21 : vector<40x32xf32>
    %184 = arith.addf %181, %183 : vector<40x32xf32>
    %185 = vector.broadcast %40 : f32 to vector<40x32xf32>
    %186 = arith.mulf %185, %22 : vector<40x32xf32>
    %187 = arith.addf %184, %186 : vector<40x32xf32>
    %188 = vector.broadcast %47 : f32 to vector<40x32xf32>
    %189 = arith.mulf %188, %23 : vector<40x32xf32>
    %190 = arith.addf %187, %189 : vector<40x32xf32>
    %191 = vector.broadcast %48 : f32 to vector<40x32xf32>
    %192 = arith.mulf %191, %24 : vector<40x32xf32>
    %193 = arith.addf %190, %192 : vector<40x32xf32>
    %194 = vector.broadcast %49 : f32 to vector<40x32xf32>
    %195 = arith.mulf %194, %25 : vector<40x32xf32>
    %196 = arith.addf %193, %195 : vector<40x32xf32>
    %197 = vector.broadcast %32 : f32 to vector<40x32xf32>
    %198 = arith.mulf %197, %17 : vector<40x32xf32>
    %199 = vector.broadcast %33 : f32 to vector<40x32xf32>
    %200 = arith.mulf %199, %18 : vector<40x32xf32>
    %201 = arith.addf %198, %200 : vector<40x32xf32>
    %202 = vector.broadcast %34 : f32 to vector<40x32xf32>
    %203 = arith.mulf %202, %19 : vector<40x32xf32>
    %204 = arith.addf %201, %203 : vector<40x32xf32>
    %205 = vector.broadcast %41 : f32 to vector<40x32xf32>
    %206 = arith.mulf %205, %20 : vector<40x32xf32>
    %207 = arith.addf %204, %206 : vector<40x32xf32>
    %208 = vector.broadcast %42 : f32 to vector<40x32xf32>
    %209 = arith.mulf %208, %21 : vector<40x32xf32>
    %210 = arith.addf %207, %209 : vector<40x32xf32>
    %211 = vector.broadcast %43 : f32 to vector<40x32xf32>
    %212 = arith.mulf %211, %22 : vector<40x32xf32>
    %213 = arith.addf %210, %212 : vector<40x32xf32>
    %214 = vector.broadcast %50 : f32 to vector<40x32xf32>
    %215 = arith.mulf %214, %23 : vector<40x32xf32>
    %216 = arith.addf %213, %215 : vector<40x32xf32>
    %217 = vector.broadcast %51 : f32 to vector<40x32xf32>
    %218 = arith.mulf %217, %24 : vector<40x32xf32>
    %219 = arith.addf %216, %218 : vector<40x32xf32>
    %220 = vector.broadcast %52 : f32 to vector<40x32xf32>
    %221 = arith.mulf %220, %25 : vector<40x32xf32>
    %222 = arith.addf %219, %221 : vector<40x32xf32>
    %223 = vector.extract_strided_slice %170 {offsets = [0, 0], sizes = [32, 32], strides = [1, 1]} : vector<40x32xf32> to vector<32x32xf32>
    %224 = vector.extract_strided_slice %196 {offsets = [1, 0], sizes = [32, 32], strides = [1, 1]} : vector<40x32xf32> to vector<32x32xf32>
    %225 = arith.addf %223, %224 : vector<32x32xf32>
    %226 = vector.extract_strided_slice %222 {offsets = [2, 0], sizes = [32, 32], strides = [1, 1]} : vector<40x32xf32> to vector<32x32xf32>
    %227 = arith.addf %225, %226 : vector<32x32xf32>
    %228 = vector.broadcast %53 : f32 to vector<32x32xf32>
    %229 = arith.addf %227, %228 : vector<32x32xf32>
    %cst_12 = arith.constant 0.000000e+00 : f32
    %230 = vector.broadcast %cst_12 : f32 to vector<32x32xf32>
    %231 = arith.cmpf oge, %229, %230 : vector<32x32xf32>
    %232 = vector.broadcast %54 : f32 to vector<32x32xf32>
    %233 = arith.mulf %232, %229 : vector<32x32xf32>
    %234 = arith.select %231, %229, %233 : vector<32x32xi1>, vector<32x32xf32>
    %235 = arith.maximumf %144, %234 : vector<32x32xf32>
    %c0_13 = arith.constant 0 : index
    %c0_14 = arith.constant 0 : index
    %c0_15 = arith.constant 0 : index
    %236 = vector.load %arg4[%c0_13, %c0_14, %c0_15] : memref<2x32x16xf32, #tpu.memory_space<vmem>>, vector<1x32x16xf32>
    %237 = vector.shape_cast %236 : vector<1x32x16xf32> to vector<32x16xf32>
    %cst_16 = arith.constant dense<0.000000e+00> : vector<32x16xf32>
    %238 = tpu.matmul %235, %237, %cst_16 {dimension_numbers = #tpu.dot_dimension_numbers<[1], [0], [0], [1], [0, 0, 1, 1], [], []>} : vector<32x32xf32>, vector<32x16xf32>, vector<32x16xf32> -> vector<32x16xf32>
    %c1_17 = arith.constant 1 : index
    %c0_18 = arith.constant 0 : index
    %c0_19 = arith.constant 0 : index
    %239 = vector.load %arg4[%c1_17, %c0_18, %c0_19] : memref<2x32x16xf32, #tpu.memory_space<vmem>>, vector<1x32x16xf32>
    %240 = vector.shape_cast %239 : vector<1x32x16xf32> to vector<32x16xf32>
    %cst_20 = arith.constant dense<0.000000e+00> : vector<32x16xf32>
    %241 = tpu.matmul %235, %240, %cst_20 {dimension_numbers = #tpu.dot_dimension_numbers<[1], [0], [0], [1], [0, 0, 1, 1], [], []>} : vector<32x32xf32>, vector<32x16xf32>, vector<32x16xf32> -> vector<32x16xf32>
    %242 = arith.maximumf %238, %241 : vector<32x16xf32>
    %c0_21 = arith.constant 0 : index
    %c0_22 = arith.constant 0 : index
    %c0_23 = arith.constant 0 : index
    %243 = vector.load %arg5[%c0_21, %c0_22, %c0_23] : memref<2x16x32xf32, #tpu.memory_space<vmem>>, vector<1x16x32xf32>
    %244 = vector.shape_cast %243 : vector<1x16x32xf32> to vector<16x32xf32>
    %cst_24 = arith.constant dense<0.000000e+00> : vector<16x16xf32>
    %245 = tpu.matmul %244, %242, %cst_24 {dimension_numbers = #tpu.dot_dimension_numbers<[1], [0], [0], [1], [0, 0, 1, 1], [], []>} : vector<16x32xf32>, vector<32x16xf32>, vector<16x16xf32> -> vector<16x16xf32>
    %c1_25 = arith.constant 1 : index
    %c0_26 = arith.constant 0 : index
    %c0_27 = arith.constant 0 : index
    %246 = vector.load %arg5[%c1_25, %c0_26, %c0_27] : memref<2x16x32xf32, #tpu.memory_space<vmem>>, vector<1x16x32xf32>
    %247 = vector.shape_cast %246 : vector<1x16x32xf32> to vector<16x32xf32>
    %cst_28 = arith.constant dense<0.000000e+00> : vector<16x16xf32>
    %248 = tpu.matmul %247, %242, %cst_28 {dimension_numbers = #tpu.dot_dimension_numbers<[1], [0], [0], [1], [0, 0, 1, 1], [], []>} : vector<16x32xf32>, vector<32x16xf32>, vector<16x16xf32> -> vector<16x16xf32>
    %249 = arith.maximumf %245, %248 : vector<16x16xf32>
    %c0_29 = arith.constant 0 : index
    %c0_30 = arith.constant 0 : index
    %c0_31 = arith.constant 0 : index
    %c0_32 = arith.constant 0 : index
    %250 = vector.load %arg8[%c0_29, %c0_30, %c0_31, %c0_32] : memref<1x1x16x16xf32, #tpu.memory_space<vmem>>, vector<1x1x16x16xf32>
    %251 = vector.shape_cast %250 : vector<1x1x16x16xf32> to vector<16x16xf32>
    %252 = vector.shape_cast %249 : vector<16x16xf32> to vector<1x1x16x16xf32>
    tpu.vector_store %arg8[%c0_29, %c0_30, %c0_31, %c0_32], %252 {strides = array<i32>} : memref<1x1x16x16xf32, #tpu.memory_space<vmem>>, vector<1x1x16x16xf32>,
    return
  }
  func.func @transform_0(%arg0: i32, %arg1: i32, %arg2: i32) -> i32 {
    %c0_i32 = arith.constant 0 : i32
    %c0_i32_0 = arith.constant 0 : i32
    return %c0_i32 : i32
  }
  func.func @transform_1(%arg0: i32, %arg1: i32, %arg2: i32) -> (i32, i32, i32) {
    %c0_i32 = arith.constant 0 : i32
    %c0_i32_0 = arith.constant 0 : i32
    %c0_i32_1 = arith.constant 0 : i32
    %c0_i32_2 = arith.constant 0 : i32
    return %c0_i32, %c0_i32_0, %c0_i32_1 : i32, i32, i32
  }
  func.func @transform_2(%arg0: i32, %arg1: i32, %arg2: i32) -> (i32, i32, i32) {
    %c0_i32 = arith.constant 0 : i32
    %c0_i32_0 = arith.constant 0 : i32
    %c0_i32_1 = arith.constant 0 : i32
    %c0_i32_2 = arith.constant 0 : i32
    return %c0_i32, %c0_i32_0, %c0_i32_1 : i32, i32, i32
  }
  func.func @transform_3(%arg0: i32, %arg1: i32, %arg2: i32) -> (i32, i32, i32, i32) {
    %c0_i32 = arith.constant 0 : i32
    %c0_i32_0 = arith.constant 0 : i32
    %c0_i32_1 = arith.constant 0 : i32
    return %arg0, %arg1, %c0_i32, %c0_i32_0 : i32, i32, i32, i32
  }
  func.func @transform_4(%arg0: i32, %arg1: i32, %arg2: i32) -> (i32, i32, i32, i32) {
    %c1_i32 = arith.constant 1 : i32
    %0 = arith.addi %arg1, %c1_i32 : i32
    %c0_i32 = arith.constant 0 : i32
    %c0_i32_0 = arith.constant 0 : i32
    %c0_i32_1 = arith.constant 0 : i32
    return %arg0, %0, %c0_i32, %c0_i32_0 : i32, i32, i32, i32
  }
  func.func @transform_5(%arg0: i32, %arg1: i32, %arg2: i32) -> (i32, i32, i32, i32) {
    %c0_i32 = arith.constant 0 : i32
    %c0_i32_0 = arith.constant 0 : i32
    return %arg0, %arg1, %arg2, %c0_i32 : i32, i32, i32, i32
  }
}

module attributes {stable_mosaic.version = 11 : i64} {
  func.func @_conv_block_kernel(%arg0: i32, %arg1: i32, %arg2: i32, %arg3: memref<29xf32, #tpu.memory_space<smem>>, %arg4: memref<2x16x8xf32, #tpu.memory_space<vmem>>, %arg5: memref<2x8x16xf32, #tpu.memory_space<vmem>>, %arg6: memref<1x2x24x18xf32, #tpu.memory_space<vmem>>, %arg7: memref<1x2x24x18xf32, #tpu.memory_space<vmem>>, %arg8: memref<1x1x8x8xf32, #tpu.memory_space<vmem>>) attributes {dimension_semantics = [#tpu.dimension_semantics<parallel>, #tpu.dimension_semantics<parallel>, #tpu.dimension_semantics<parallel>], iteration_bounds = array<i64: 2, 4, 1>, scalar_prefetch = 0 : i64, scratch_operands = 0 : i64, tpu.core_type = #tpu.core_type<tc>, window_params = [{transform_indices = @transform_0, window_bounds = array<i64: 29>}, {pipeline_mode = #tpu.pipeline_mode<synchronous>, transform_indices = @transform_1, window_bounds = array<i64: 2, 16, 8>}, {pipeline_mode = #tpu.pipeline_mode<synchronous>, transform_indices = @transform_2, window_bounds = array<i64: 2, 8, 16>}, {transform_indices = @transform_3, window_bounds = array<i64: 1, 2, 24, 18>}, {transform_indices = @transform_4, window_bounds = array<i64: 1, 2, 24, 18>}, {transform_indices = @transform_5, window_bounds = array<i64: 1, 1, 8, 8>}]} {
    %c16_i32 = arith.constant 16 : i32
    %0 = arith.muli %arg2, %c16_i32 : i32
    %1 = tpu.assume_multiple %0, 8 : i32
    %c0 = arith.constant 0 : index
    %c0_0 = arith.constant 0 : index
    %2 = arith.index_cast %1 : i32 to index
    %c0_1 = arith.constant 0 : index
    %3 = vector.load %arg6[%c0, %c0_0, %2, %c0_1] : memref<1x2x24x18xf32, #tpu.memory_space<vmem>>, vector<1x1x24x18xf32>
    %4 = vector.shape_cast %3 : vector<1x1x24x18xf32> to vector<24x18xf32>
    %c0_2 = arith.constant 0 : index
    %c1 = arith.constant 1 : index
    %5 = arith.index_cast %1 : i32 to index
    %c0_3 = arith.constant 0 : index
    %6 = vector.load %arg6[%c0_2, %c1, %5, %c0_3] : memref<1x2x24x18xf32, #tpu.memory_space<vmem>>, vector<1x1x24x18xf32>
    %7 = vector.shape_cast %6 : vector<1x1x24x18xf32> to vector<24x18xf32>
    %c0_4 = arith.constant 0 : index
    %c0_5 = arith.constant 0 : index
    %8 = arith.index_cast %1 : i32 to index
    %c0_6 = arith.constant 0 : index
    %9 = vector.load %arg7[%c0_4, %c0_5, %8, %c0_6] : memref<1x2x24x18xf32, #tpu.memory_space<vmem>>, vector<1x1x24x18xf32>
    %10 = vector.shape_cast %9 : vector<1x1x24x18xf32> to vector<24x18xf32>
    %c0_7 = arith.constant 0 : index
    %c1_8 = arith.constant 1 : index
    %11 = arith.index_cast %1 : i32 to index
    %c0_9 = arith.constant 0 : index
    %12 = vector.load %arg7[%c0_7, %c1_8, %11, %c0_9] : memref<1x2x24x18xf32, #tpu.memory_space<vmem>>, vector<1x1x24x18xf32>
    %13 = vector.shape_cast %12 : vector<1x1x24x18xf32> to vector<24x18xf32>
    %14 = vector.extract_strided_slice %4 {offsets = [0, 0], sizes = [24, 16], strides = [1, 1]} : vector<24x18xf32> to vector<24x16xf32>
    %15 = vector.extract_strided_slice %4 {offsets = [0, 1], sizes = [24, 16], strides = [1, 1]} : vector<24x18xf32> to vector<24x16xf32>
    %16 = vector.extract_strided_slice %4 {offsets = [0, 2], sizes = [24, 16], strides = [1, 1]} : vector<24x18xf32> to vector<24x16xf32>
    %17 = vector.extract_strided_slice %7 {offsets = [0, 0], sizes = [24, 16], strides = [1, 1]} : vector<24x18xf32> to vector<24x16xf32>
    %18 = vector.extract_strided_slice %7 {offsets = [0, 1], sizes = [24, 16], strides = [1, 1]} : vector<24x18xf32> to vector<24x16xf32>
    %19 = vector.extract_strided_slice %7 {offsets = [0, 2], sizes = [24, 16], strides = [1, 1]} : vector<24x18xf32> to vector<24x16xf32>
    %20 = vector.extract_strided_slice %10 {offsets = [0, 0], sizes = [24, 16], strides = [1, 1]} : vector<24x18xf32> to vector<24x16xf32>
    %21 = vector.extract_strided_slice %10 {offsets = [0, 1], sizes = [24, 16], strides = [1, 1]} : vector<24x18xf32> to vector<24x16xf32>
    %22 = vector.extract_strided_slice %10 {offsets = [0, 2], sizes = [24, 16], strides = [1, 1]} : vector<24x18xf32> to vector<24x16xf32>
    %23 = vector.extract_strided_slice %13 {offsets = [0, 0], sizes = [24, 16], strides = [1, 1]} : vector<24x18xf32> to vector<24x16xf32>
    %24 = vector.extract_strided_slice %13 {offsets = [0, 1], sizes = [24, 16], strides = [1, 1]} : vector<24x18xf32> to vector<24x16xf32>
    %25 = vector.extract_strided_slice %13 {offsets = [0, 2], sizes = [24, 16], strides = [1, 1]} : vector<24x18xf32> to vector<24x16xf32>
    %c0_10 = arith.constant 0 : index
    %26 = memref.load %arg3[%c0_10] : memref<29xf32, #tpu.memory_space<smem>>
    %c1_11 = arith.constant 1 : index
    %27 = memref.load %arg3[%c1_11] : memref<29xf32, #tpu.memory_space<smem>>
    %c2 = arith.constant 2 : index
    %28 = memref.load %arg3[%c2] : memref<29xf32, #tpu.memory_space<smem>>
    %c3 = arith.constant 3 : index
    %29 = memref.load %arg3[%c3] : memref<29xf32, #tpu.memory_space<smem>>
    %c4 = arith.constant 4 : index
    %30 = memref.load %arg3[%c4] : memref<29xf32, #tpu.memory_space<smem>>
    %c5 = arith.constant 5 : index
    %31 = memref.load %arg3[%c5] : memref<29xf32, #tpu.memory_space<smem>>
    %c6 = arith.constant 6 : index
    %32 = memref.load %arg3[%c6] : memref<29xf32, #tpu.memory_space<smem>>
    %c7 = arith.constant 7 : index
    %33 = memref.load %arg3[%c7] : memref<29xf32, #tpu.memory_space<smem>>
    %c8 = arith.constant 8 : index
    %34 = memref.load %arg3[%c8] : memref<29xf32, #tpu.memory_space<smem>>
    %c9 = arith.constant 9 : index
    %35 = memref.load %arg3[%c9] : memref<29xf32, #tpu.memory_space<smem>>
    %c10 = arith.constant 10 : index
    %36 = memref.load %arg3[%c10] : memref<29xf32, #tpu.memory_space<smem>>
    %c11 = arith.constant 11 : index
    %37 = memref.load %arg3[%c11] : memref<29xf32, #tpu.memory_space<smem>>
    %c12 = arith.constant 12 : index
    %38 = memref.load %arg3[%c12] : memref<29xf32, #tpu.memory_space<smem>>
    %c13 = arith.constant 13 : index
    %39 = memref.load %arg3[%c13] : memref<29xf32, #tpu.memory_space<smem>>
    %c14 = arith.constant 14 : index
    %40 = memref.load %arg3[%c14] : memref<29xf32, #tpu.memory_space<smem>>
    %c15 = arith.constant 15 : index
    %41 = memref.load %arg3[%c15] : memref<29xf32, #tpu.memory_space<smem>>
    %c16 = arith.constant 16 : index
    %42 = memref.load %arg3[%c16] : memref<29xf32, #tpu.memory_space<smem>>
    %c17 = arith.constant 17 : index
    %43 = memref.load %arg3[%c17] : memref<29xf32, #tpu.memory_space<smem>>
    %c18 = arith.constant 18 : index
    %44 = memref.load %arg3[%c18] : memref<29xf32, #tpu.memory_space<smem>>
    %c19 = arith.constant 19 : index
    %45 = memref.load %arg3[%c19] : memref<29xf32, #tpu.memory_space<smem>>
    %c20 = arith.constant 20 : index
    %46 = memref.load %arg3[%c20] : memref<29xf32, #tpu.memory_space<smem>>
    %c21 = arith.constant 21 : index
    %47 = memref.load %arg3[%c21] : memref<29xf32, #tpu.memory_space<smem>>
    %c22 = arith.constant 22 : index
    %48 = memref.load %arg3[%c22] : memref<29xf32, #tpu.memory_space<smem>>
    %c23 = arith.constant 23 : index
    %49 = memref.load %arg3[%c23] : memref<29xf32, #tpu.memory_space<smem>>
    %c24 = arith.constant 24 : index
    %50 = memref.load %arg3[%c24] : memref<29xf32, #tpu.memory_space<smem>>
    %c25 = arith.constant 25 : index
    %51 = memref.load %arg3[%c25] : memref<29xf32, #tpu.memory_space<smem>>
    %c26 = arith.constant 26 : index
    %52 = memref.load %arg3[%c26] : memref<29xf32, #tpu.memory_space<smem>>
    %c27 = arith.constant 27 : index
    %53 = memref.load %arg3[%c27] : memref<29xf32, #tpu.memory_space<smem>>
    %c28 = arith.constant 28 : index
    %54 = memref.load %arg3[%c28] : memref<29xf32, #tpu.memory_space<smem>>
    %55 = vector.broadcast %26 : f32 to vector<24x16xf32>
    %56 = arith.mulf %55, %14 : vector<24x16xf32>
    %57 = vector.broadcast %27 : f32 to vector<24x16xf32>
    %58 = arith.mulf %57, %15 : vector<24x16xf32>
    %59 = arith.addf %56, %58 : vector<24x16xf32>
    %60 = vector.broadcast %28 : f32 to vector<24x16xf32>
    %61 = arith.mulf %60, %16 : vector<24x16xf32>
    %62 = arith.addf %59, %61 : vector<24x16xf32>
    %63 = vector.broadcast %35 : f32 to vector<24x16xf32>
    %64 = arith.mulf %63, %17 : vector<24x16xf32>
    %65 = arith.addf %62, %64 : vector<24x16xf32>
    %66 = vector.broadcast %36 : f32 to vector<24x16xf32>
    %67 = arith.mulf %66, %18 : vector<24x16xf32>
    %68 = arith.addf %65, %67 : vector<24x16xf32>
    %69 = vector.broadcast %37 : f32 to vector<24x16xf32>
    %70 = arith.mulf %69, %19 : vector<24x16xf32>
    %71 = arith.addf %68, %70 : vector<24x16xf32>
    %72 = vector.broadcast %44 : f32 to vector<24x16xf32>
    %73 = arith.mulf %72, %20 : vector<24x16xf32>
    %74 = arith.addf %71, %73 : vector<24x16xf32>
    %75 = vector.broadcast %45 : f32 to vector<24x16xf32>
    %76 = arith.mulf %75, %21 : vector<24x16xf32>
    %77 = arith.addf %74, %76 : vector<24x16xf32>
    %78 = vector.broadcast %46 : f32 to vector<24x16xf32>
    %79 = arith.mulf %78, %22 : vector<24x16xf32>
    %80 = arith.addf %77, %79 : vector<24x16xf32>
    %81 = vector.broadcast %29 : f32 to vector<24x16xf32>
    %82 = arith.mulf %81, %14 : vector<24x16xf32>
    %83 = vector.broadcast %30 : f32 to vector<24x16xf32>
    %84 = arith.mulf %83, %15 : vector<24x16xf32>
    %85 = arith.addf %82, %84 : vector<24x16xf32>
    %86 = vector.broadcast %31 : f32 to vector<24x16xf32>
    %87 = arith.mulf %86, %16 : vector<24x16xf32>
    %88 = arith.addf %85, %87 : vector<24x16xf32>
    %89 = vector.broadcast %38 : f32 to vector<24x16xf32>
    %90 = arith.mulf %89, %17 : vector<24x16xf32>
    %91 = arith.addf %88, %90 : vector<24x16xf32>
    %92 = vector.broadcast %39 : f32 to vector<24x16xf32>
    %93 = arith.mulf %92, %18 : vector<24x16xf32>
    %94 = arith.addf %91, %93 : vector<24x16xf32>
    %95 = vector.broadcast %40 : f32 to vector<24x16xf32>
    %96 = arith.mulf %95, %19 : vector<24x16xf32>
    %97 = arith.addf %94, %96 : vector<24x16xf32>
    %98 = vector.broadcast %47 : f32 to vector<24x16xf32>
    %99 = arith.mulf %98, %20 : vector<24x16xf32>
    %100 = arith.addf %97, %99 : vector<24x16xf32>
    %101 = vector.broadcast %48 : f32 to vector<24x16xf32>
    %102 = arith.mulf %101, %21 : vector<24x16xf32>
    %103 = arith.addf %100, %102 : vector<24x16xf32>
    %104 = vector.broadcast %49 : f32 to vector<24x16xf32>
    %105 = arith.mulf %104, %22 : vector<24x16xf32>
    %106 = arith.addf %103, %105 : vector<24x16xf32>
    %107 = vector.broadcast %32 : f32 to vector<24x16xf32>
    %108 = arith.mulf %107, %14 : vector<24x16xf32>
    %109 = vector.broadcast %33 : f32 to vector<24x16xf32>
    %110 = arith.mulf %109, %15 : vector<24x16xf32>
    %111 = arith.addf %108, %110 : vector<24x16xf32>
    %112 = vector.broadcast %34 : f32 to vector<24x16xf32>
    %113 = arith.mulf %112, %16 : vector<24x16xf32>
    %114 = arith.addf %111, %113 : vector<24x16xf32>
    %115 = vector.broadcast %41 : f32 to vector<24x16xf32>
    %116 = arith.mulf %115, %17 : vector<24x16xf32>
    %117 = arith.addf %114, %116 : vector<24x16xf32>
    %118 = vector.broadcast %42 : f32 to vector<24x16xf32>
    %119 = arith.mulf %118, %18 : vector<24x16xf32>
    %120 = arith.addf %117, %119 : vector<24x16xf32>
    %121 = vector.broadcast %43 : f32 to vector<24x16xf32>
    %122 = arith.mulf %121, %19 : vector<24x16xf32>
    %123 = arith.addf %120, %122 : vector<24x16xf32>
    %124 = vector.broadcast %50 : f32 to vector<24x16xf32>
    %125 = arith.mulf %124, %20 : vector<24x16xf32>
    %126 = arith.addf %123, %125 : vector<24x16xf32>
    %127 = vector.broadcast %51 : f32 to vector<24x16xf32>
    %128 = arith.mulf %127, %21 : vector<24x16xf32>
    %129 = arith.addf %126, %128 : vector<24x16xf32>
    %130 = vector.broadcast %52 : f32 to vector<24x16xf32>
    %131 = arith.mulf %130, %22 : vector<24x16xf32>
    %132 = arith.addf %129, %131 : vector<24x16xf32>
    %133 = vector.extract_strided_slice %80 {offsets = [0, 0], sizes = [16, 16], strides = [1, 1]} : vector<24x16xf32> to vector<16x16xf32>
    %134 = vector.extract_strided_slice %106 {offsets = [1, 0], sizes = [16, 16], strides = [1, 1]} : vector<24x16xf32> to vector<16x16xf32>
    %135 = arith.addf %133, %134 : vector<16x16xf32>
    %136 = vector.extract_strided_slice %132 {offsets = [2, 0], sizes = [16, 16], strides = [1, 1]} : vector<24x16xf32> to vector<16x16xf32>
    %137 = arith.addf %135, %136 : vector<16x16xf32>
    %138 = vector.broadcast %53 : f32 to vector<16x16xf32>
    %139 = arith.addf %137, %138 : vector<16x16xf32>
    %cst = arith.constant 0.000000e+00 : f32
    %140 = vector.broadcast %cst : f32 to vector<16x16xf32>
    %141 = arith.cmpf oge, %139, %140 : vector<16x16xf32>
    %142 = vector.broadcast %54 : f32 to vector<16x16xf32>
    %143 = arith.mulf %142, %139 : vector<16x16xf32>
    %144 = arith.select %141, %139, %143 : vector<16x16xi1>, vector<16x16xf32>
    %145 = vector.broadcast %26 : f32 to vector<24x16xf32>
    %146 = arith.mulf %145, %17 : vector<24x16xf32>
    %147 = vector.broadcast %27 : f32 to vector<24x16xf32>
    %148 = arith.mulf %147, %18 : vector<24x16xf32>
    %149 = arith.addf %146, %148 : vector<24x16xf32>
    %150 = vector.broadcast %28 : f32 to vector<24x16xf32>
    %151 = arith.mulf %150, %19 : vector<24x16xf32>
    %152 = arith.addf %149, %151 : vector<24x16xf32>
    %153 = vector.broadcast %35 : f32 to vector<24x16xf32>
    %154 = arith.mulf %153, %20 : vector<24x16xf32>
    %155 = arith.addf %152, %154 : vector<24x16xf32>
    %156 = vector.broadcast %36 : f32 to vector<24x16xf32>
    %157 = arith.mulf %156, %21 : vector<24x16xf32>
    %158 = arith.addf %155, %157 : vector<24x16xf32>
    %159 = vector.broadcast %37 : f32 to vector<24x16xf32>
    %160 = arith.mulf %159, %22 : vector<24x16xf32>
    %161 = arith.addf %158, %160 : vector<24x16xf32>
    %162 = vector.broadcast %44 : f32 to vector<24x16xf32>
    %163 = arith.mulf %162, %23 : vector<24x16xf32>
    %164 = arith.addf %161, %163 : vector<24x16xf32>
    %165 = vector.broadcast %45 : f32 to vector<24x16xf32>
    %166 = arith.mulf %165, %24 : vector<24x16xf32>
    %167 = arith.addf %164, %166 : vector<24x16xf32>
    %168 = vector.broadcast %46 : f32 to vector<24x16xf32>
    %169 = arith.mulf %168, %25 : vector<24x16xf32>
    %170 = arith.addf %167, %169 : vector<24x16xf32>
    %171 = vector.broadcast %29 : f32 to vector<24x16xf32>
    %172 = arith.mulf %171, %17 : vector<24x16xf32>
    %173 = vector.broadcast %30 : f32 to vector<24x16xf32>
    %174 = arith.mulf %173, %18 : vector<24x16xf32>
    %175 = arith.addf %172, %174 : vector<24x16xf32>
    %176 = vector.broadcast %31 : f32 to vector<24x16xf32>
    %177 = arith.mulf %176, %19 : vector<24x16xf32>
    %178 = arith.addf %175, %177 : vector<24x16xf32>
    %179 = vector.broadcast %38 : f32 to vector<24x16xf32>
    %180 = arith.mulf %179, %20 : vector<24x16xf32>
    %181 = arith.addf %178, %180 : vector<24x16xf32>
    %182 = vector.broadcast %39 : f32 to vector<24x16xf32>
    %183 = arith.mulf %182, %21 : vector<24x16xf32>
    %184 = arith.addf %181, %183 : vector<24x16xf32>
    %185 = vector.broadcast %40 : f32 to vector<24x16xf32>
    %186 = arith.mulf %185, %22 : vector<24x16xf32>
    %187 = arith.addf %184, %186 : vector<24x16xf32>
    %188 = vector.broadcast %47 : f32 to vector<24x16xf32>
    %189 = arith.mulf %188, %23 : vector<24x16xf32>
    %190 = arith.addf %187, %189 : vector<24x16xf32>
    %191 = vector.broadcast %48 : f32 to vector<24x16xf32>
    %192 = arith.mulf %191, %24 : vector<24x16xf32>
    %193 = arith.addf %190, %192 : vector<24x16xf32>
    %194 = vector.broadcast %49 : f32 to vector<24x16xf32>
    %195 = arith.mulf %194, %25 : vector<24x16xf32>
    %196 = arith.addf %193, %195 : vector<24x16xf32>
    %197 = vector.broadcast %32 : f32 to vector<24x16xf32>
    %198 = arith.mulf %197, %17 : vector<24x16xf32>
    %199 = vector.broadcast %33 : f32 to vector<24x16xf32>
    %200 = arith.mulf %199, %18 : vector<24x16xf32>
    %201 = arith.addf %198, %200 : vector<24x16xf32>
    %202 = vector.broadcast %34 : f32 to vector<24x16xf32>
    %203 = arith.mulf %202, %19 : vector<24x16xf32>
    %204 = arith.addf %201, %203 : vector<24x16xf32>
    %205 = vector.broadcast %41 : f32 to vector<24x16xf32>
    %206 = arith.mulf %205, %20 : vector<24x16xf32>
    %207 = arith.addf %204, %206 : vector<24x16xf32>
    %208 = vector.broadcast %42 : f32 to vector<24x16xf32>
    %209 = arith.mulf %208, %21 : vector<24x16xf32>
    %210 = arith.addf %207, %209 : vector<24x16xf32>
    %211 = vector.broadcast %43 : f32 to vector<24x16xf32>
    %212 = arith.mulf %211, %22 : vector<24x16xf32>
    %213 = arith.addf %210, %212 : vector<24x16xf32>
    %214 = vector.broadcast %50 : f32 to vector<24x16xf32>
    %215 = arith.mulf %214, %23 : vector<24x16xf32>
    %216 = arith.addf %213, %215 : vector<24x16xf32>
    %217 = vector.broadcast %51 : f32 to vector<24x16xf32>
    %218 = arith.mulf %217, %24 : vector<24x16xf32>
    %219 = arith.addf %216, %218 : vector<24x16xf32>
    %220 = vector.broadcast %52 : f32 to vector<24x16xf32>
    %221 = arith.mulf %220, %25 : vector<24x16xf32>
    %222 = arith.addf %219, %221 : vector<24x16xf32>
    %223 = vector.extract_strided_slice %170 {offsets = [0, 0], sizes = [16, 16], strides = [1, 1]} : vector<24x16xf32> to vector<16x16xf32>
    %224 = vector.extract_strided_slice %196 {offsets = [1, 0], sizes = [16, 16], strides = [1, 1]} : vector<24x16xf32> to vector<16x16xf32>
    %225 = arith.addf %223, %224 : vector<16x16xf32>
    %226 = vector.extract_strided_slice %222 {offsets = [2, 0], sizes = [16, 16], strides = [1, 1]} : vector<24x16xf32> to vector<16x16xf32>
    %227 = arith.addf %225, %226 : vector<16x16xf32>
    %228 = vector.broadcast %53 : f32 to vector<16x16xf32>
    %229 = arith.addf %227, %228 : vector<16x16xf32>
    %cst_12 = arith.constant 0.000000e+00 : f32
    %230 = vector.broadcast %cst_12 : f32 to vector<16x16xf32>
    %231 = arith.cmpf oge, %229, %230 : vector<16x16xf32>
    %232 = vector.broadcast %54 : f32 to vector<16x16xf32>
    %233 = arith.mulf %232, %229 : vector<16x16xf32>
    %234 = arith.select %231, %229, %233 : vector<16x16xi1>, vector<16x16xf32>
    %235 = arith.maximumf %144, %234 : vector<16x16xf32>
    %c0_13 = arith.constant 0 : index
    %c0_14 = arith.constant 0 : index
    %c0_15 = arith.constant 0 : index
    %236 = vector.load %arg4[%c0_13, %c0_14, %c0_15] : memref<2x16x8xf32, #tpu.memory_space<vmem>>, vector<1x16x8xf32>
    %237 = vector.shape_cast %236 : vector<1x16x8xf32> to vector<16x8xf32>
    %cst_16 = arith.constant dense<0.000000e+00> : vector<16x8xf32>
    %238 = tpu.matmul %235, %237, %cst_16 {dimension_numbers = #tpu.dot_dimension_numbers<[1], [0], [0], [1], [0, 0, 1, 1], [], []>} : vector<16x16xf32>, vector<16x8xf32>, vector<16x8xf32> -> vector<16x8xf32>
    %c1_17 = arith.constant 1 : index
    %c0_18 = arith.constant 0 : index
    %c0_19 = arith.constant 0 : index
    %239 = vector.load %arg4[%c1_17, %c0_18, %c0_19] : memref<2x16x8xf32, #tpu.memory_space<vmem>>, vector<1x16x8xf32>
    %240 = vector.shape_cast %239 : vector<1x16x8xf32> to vector<16x8xf32>
    %cst_20 = arith.constant dense<0.000000e+00> : vector<16x8xf32>
    %241 = tpu.matmul %235, %240, %cst_20 {dimension_numbers = #tpu.dot_dimension_numbers<[1], [0], [0], [1], [0, 0, 1, 1], [], []>} : vector<16x16xf32>, vector<16x8xf32>, vector<16x8xf32> -> vector<16x8xf32>
    %242 = arith.maximumf %238, %241 : vector<16x8xf32>
    %c0_21 = arith.constant 0 : index
    %c0_22 = arith.constant 0 : index
    %c0_23 = arith.constant 0 : index
    %243 = vector.load %arg5[%c0_21, %c0_22, %c0_23] : memref<2x8x16xf32, #tpu.memory_space<vmem>>, vector<1x8x16xf32>
    %244 = vector.shape_cast %243 : vector<1x8x16xf32> to vector<8x16xf32>
    %cst_24 = arith.constant dense<0.000000e+00> : vector<8x8xf32>
    %245 = tpu.matmul %244, %242, %cst_24 {dimension_numbers = #tpu.dot_dimension_numbers<[1], [0], [0], [1], [0, 0, 1, 1], [], []>} : vector<8x16xf32>, vector<16x8xf32>, vector<8x8xf32> -> vector<8x8xf32>
    %c1_25 = arith.constant 1 : index
    %c0_26 = arith.constant 0 : index
    %c0_27 = arith.constant 0 : index
    %246 = vector.load %arg5[%c1_25, %c0_26, %c0_27] : memref<2x8x16xf32, #tpu.memory_space<vmem>>, vector<1x8x16xf32>
    %247 = vector.shape_cast %246 : vector<1x8x16xf32> to vector<8x16xf32>
    %cst_28 = arith.constant dense<0.000000e+00> : vector<8x8xf32>
    %248 = tpu.matmul %247, %242, %cst_28 {dimension_numbers = #tpu.dot_dimension_numbers<[1], [0], [0], [1], [0, 0, 1, 1], [], []>} : vector<8x16xf32>, vector<16x8xf32>, vector<8x8xf32> -> vector<8x8xf32>
    %249 = arith.maximumf %245, %248 : vector<8x8xf32>
    %c0_29 = arith.constant 0 : index
    %c0_30 = arith.constant 0 : index
    %c0_31 = arith.constant 0 : index
    %c0_32 = arith.constant 0 : index
    %250 = vector.load %arg8[%c0_29, %c0_30, %c0_31, %c0_32] : memref<1x1x8x8xf32, #tpu.memory_space<vmem>>, vector<1x1x8x8xf32>
    %251 = vector.shape_cast %250 : vector<1x1x8x8xf32> to vector<8x8xf32>
    %252 = vector.shape_cast %249 : vector<8x8xf32> to vector<1x1x8x8xf32>
    tpu.vector_store %arg8[%c0_29, %c0_30, %c0_31, %c0_32], %252 {strides = array<i32>} : memref<1x1x8x8xf32, #tpu.memory_space<vmem>>, vector<1x1x8x8xf32>,
    return
  }
  func.func @transform_0(%arg0: i32, %arg1: i32, %arg2: i32) -> i32 {
    %c0_i32 = arith.constant 0 : i32
    %c0_i32_0 = arith.constant 0 : i32
    return %c0_i32 : i32
  }
  func.func @transform_1(%arg0: i32, %arg1: i32, %arg2: i32) -> (i32, i32, i32) {
    %c0_i32 = arith.constant 0 : i32
    %c0_i32_0 = arith.constant 0 : i32
    %c0_i32_1 = arith.constant 0 : i32
    %c0_i32_2 = arith.constant 0 : i32
    return %c0_i32, %c0_i32_0, %c0_i32_1 : i32, i32, i32
  }
  func.func @transform_2(%arg0: i32, %arg1: i32, %arg2: i32) -> (i32, i32, i32) {
    %c0_i32 = arith.constant 0 : i32
    %c0_i32_0 = arith.constant 0 : i32
    %c0_i32_1 = arith.constant 0 : i32
    %c0_i32_2 = arith.constant 0 : i32
    return %c0_i32, %c0_i32_0, %c0_i32_1 : i32, i32, i32
  }
  func.func @transform_3(%arg0: i32, %arg1: i32, %arg2: i32) -> (i32, i32, i32, i32) {
    %c0_i32 = arith.constant 0 : i32
    %c0_i32_0 = arith.constant 0 : i32
    %c0_i32_1 = arith.constant 0 : i32
    return %arg0, %arg1, %c0_i32, %c0_i32_0 : i32, i32, i32, i32
  }
  func.func @transform_4(%arg0: i32, %arg1: i32, %arg2: i32) -> (i32, i32, i32, i32) {
    %c1_i32 = arith.constant 1 : i32
    %0 = arith.addi %arg1, %c1_i32 : i32
    %c0_i32 = arith.constant 0 : i32
    %c0_i32_0 = arith.constant 0 : i32
    %c0_i32_1 = arith.constant 0 : i32
    return %arg0, %0, %c0_i32, %c0_i32_0 : i32, i32, i32, i32
  }
  func.func @transform_5(%arg0: i32, %arg1: i32, %arg2: i32) -> (i32, i32, i32, i32) {
    %c0_i32 = arith.constant 0 : i32
    %c0_i32_0 = arith.constant 0 : i32
    return %arg0, %arg1, %arg2, %c0_i32 : i32, i32, i32, i32
  }
}

module attributes {stable_mosaic.version = 11 : i64} {
  func.func @_conv_block_kernel(%arg0: i32, %arg1: i32, %arg2: i32, %arg3: memref<29xf32, #tpu.memory_space<smem>>, %arg4: memref<2x8x4xf32, #tpu.memory_space<vmem>>, %arg5: memref<2x4x8xf32, #tpu.memory_space<vmem>>, %arg6: memref<1x2x16x10xf32, #tpu.memory_space<vmem>>, %arg7: memref<1x2x16x10xf32, #tpu.memory_space<vmem>>, %arg8: memref<1x1x4x4xf32, #tpu.memory_space<vmem>>) attributes {dimension_semantics = [#tpu.dimension_semantics<parallel>, #tpu.dimension_semantics<parallel>, #tpu.dimension_semantics<parallel>], iteration_bounds = array<i64: 2, 2, 1>, scalar_prefetch = 0 : i64, scratch_operands = 0 : i64, tpu.core_type = #tpu.core_type<tc>, window_params = [{transform_indices = @transform_0, window_bounds = array<i64: 29>}, {pipeline_mode = #tpu.pipeline_mode<synchronous>, transform_indices = @transform_1, window_bounds = array<i64: 2, 8, 4>}, {pipeline_mode = #tpu.pipeline_mode<synchronous>, transform_indices = @transform_2, window_bounds = array<i64: 2, 4, 8>}, {transform_indices = @transform_3, window_bounds = array<i64: 1, 2, 16, 10>}, {transform_indices = @transform_4, window_bounds = array<i64: 1, 2, 16, 10>}, {transform_indices = @transform_5, window_bounds = array<i64: 1, 1, 4, 4>}]} {
    %c8_i32 = arith.constant 8 : i32
    %0 = arith.muli %arg2, %c8_i32 : i32
    %1 = tpu.assume_multiple %0, 8 : i32
    %c0 = arith.constant 0 : index
    %c0_0 = arith.constant 0 : index
    %2 = arith.index_cast %1 : i32 to index
    %c0_1 = arith.constant 0 : index
    %3 = vector.load %arg6[%c0, %c0_0, %2, %c0_1] : memref<1x2x16x10xf32, #tpu.memory_space<vmem>>, vector<1x1x16x10xf32>
    %4 = vector.shape_cast %3 : vector<1x1x16x10xf32> to vector<16x10xf32>
    %c0_2 = arith.constant 0 : index
    %c1 = arith.constant 1 : index
    %5 = arith.index_cast %1 : i32 to index
    %c0_3 = arith.constant 0 : index
    %6 = vector.load %arg6[%c0_2, %c1, %5, %c0_3] : memref<1x2x16x10xf32, #tpu.memory_space<vmem>>, vector<1x1x16x10xf32>
    %7 = vector.shape_cast %6 : vector<1x1x16x10xf32> to vector<16x10xf32>
    %c0_4 = arith.constant 0 : index
    %c0_5 = arith.constant 0 : index
    %8 = arith.index_cast %1 : i32 to index
    %c0_6 = arith.constant 0 : index
    %9 = vector.load %arg7[%c0_4, %c0_5, %8, %c0_6] : memref<1x2x16x10xf32, #tpu.memory_space<vmem>>, vector<1x1x16x10xf32>
    %10 = vector.shape_cast %9 : vector<1x1x16x10xf32> to vector<16x10xf32>
    %c0_7 = arith.constant 0 : index
    %c1_8 = arith.constant 1 : index
    %11 = arith.index_cast %1 : i32 to index
    %c0_9 = arith.constant 0 : index
    %12 = vector.load %arg7[%c0_7, %c1_8, %11, %c0_9] : memref<1x2x16x10xf32, #tpu.memory_space<vmem>>, vector<1x1x16x10xf32>
    %13 = vector.shape_cast %12 : vector<1x1x16x10xf32> to vector<16x10xf32>
    %14 = vector.extract_strided_slice %4 {offsets = [0, 0], sizes = [16, 8], strides = [1, 1]} : vector<16x10xf32> to vector<16x8xf32>
    %15 = vector.extract_strided_slice %4 {offsets = [0, 1], sizes = [16, 8], strides = [1, 1]} : vector<16x10xf32> to vector<16x8xf32>
    %16 = vector.extract_strided_slice %4 {offsets = [0, 2], sizes = [16, 8], strides = [1, 1]} : vector<16x10xf32> to vector<16x8xf32>
    %17 = vector.extract_strided_slice %7 {offsets = [0, 0], sizes = [16, 8], strides = [1, 1]} : vector<16x10xf32> to vector<16x8xf32>
    %18 = vector.extract_strided_slice %7 {offsets = [0, 1], sizes = [16, 8], strides = [1, 1]} : vector<16x10xf32> to vector<16x8xf32>
    %19 = vector.extract_strided_slice %7 {offsets = [0, 2], sizes = [16, 8], strides = [1, 1]} : vector<16x10xf32> to vector<16x8xf32>
    %20 = vector.extract_strided_slice %10 {offsets = [0, 0], sizes = [16, 8], strides = [1, 1]} : vector<16x10xf32> to vector<16x8xf32>
    %21 = vector.extract_strided_slice %10 {offsets = [0, 1], sizes = [16, 8], strides = [1, 1]} : vector<16x10xf32> to vector<16x8xf32>
    %22 = vector.extract_strided_slice %10 {offsets = [0, 2], sizes = [16, 8], strides = [1, 1]} : vector<16x10xf32> to vector<16x8xf32>
    %23 = vector.extract_strided_slice %13 {offsets = [0, 0], sizes = [16, 8], strides = [1, 1]} : vector<16x10xf32> to vector<16x8xf32>
    %24 = vector.extract_strided_slice %13 {offsets = [0, 1], sizes = [16, 8], strides = [1, 1]} : vector<16x10xf32> to vector<16x8xf32>
    %25 = vector.extract_strided_slice %13 {offsets = [0, 2], sizes = [16, 8], strides = [1, 1]} : vector<16x10xf32> to vector<16x8xf32>
    %c0_10 = arith.constant 0 : index
    %26 = memref.load %arg3[%c0_10] : memref<29xf32, #tpu.memory_space<smem>>
    %c1_11 = arith.constant 1 : index
    %27 = memref.load %arg3[%c1_11] : memref<29xf32, #tpu.memory_space<smem>>
    %c2 = arith.constant 2 : index
    %28 = memref.load %arg3[%c2] : memref<29xf32, #tpu.memory_space<smem>>
    %c3 = arith.constant 3 : index
    %29 = memref.load %arg3[%c3] : memref<29xf32, #tpu.memory_space<smem>>
    %c4 = arith.constant 4 : index
    %30 = memref.load %arg3[%c4] : memref<29xf32, #tpu.memory_space<smem>>
    %c5 = arith.constant 5 : index
    %31 = memref.load %arg3[%c5] : memref<29xf32, #tpu.memory_space<smem>>
    %c6 = arith.constant 6 : index
    %32 = memref.load %arg3[%c6] : memref<29xf32, #tpu.memory_space<smem>>
    %c7 = arith.constant 7 : index
    %33 = memref.load %arg3[%c7] : memref<29xf32, #tpu.memory_space<smem>>
    %c8 = arith.constant 8 : index
    %34 = memref.load %arg3[%c8] : memref<29xf32, #tpu.memory_space<smem>>
    %c9 = arith.constant 9 : index
    %35 = memref.load %arg3[%c9] : memref<29xf32, #tpu.memory_space<smem>>
    %c10 = arith.constant 10 : index
    %36 = memref.load %arg3[%c10] : memref<29xf32, #tpu.memory_space<smem>>
    %c11 = arith.constant 11 : index
    %37 = memref.load %arg3[%c11] : memref<29xf32, #tpu.memory_space<smem>>
    %c12 = arith.constant 12 : index
    %38 = memref.load %arg3[%c12] : memref<29xf32, #tpu.memory_space<smem>>
    %c13 = arith.constant 13 : index
    %39 = memref.load %arg3[%c13] : memref<29xf32, #tpu.memory_space<smem>>
    %c14 = arith.constant 14 : index
    %40 = memref.load %arg3[%c14] : memref<29xf32, #tpu.memory_space<smem>>
    %c15 = arith.constant 15 : index
    %41 = memref.load %arg3[%c15] : memref<29xf32, #tpu.memory_space<smem>>
    %c16 = arith.constant 16 : index
    %42 = memref.load %arg3[%c16] : memref<29xf32, #tpu.memory_space<smem>>
    %c17 = arith.constant 17 : index
    %43 = memref.load %arg3[%c17] : memref<29xf32, #tpu.memory_space<smem>>
    %c18 = arith.constant 18 : index
    %44 = memref.load %arg3[%c18] : memref<29xf32, #tpu.memory_space<smem>>
    %c19 = arith.constant 19 : index
    %45 = memref.load %arg3[%c19] : memref<29xf32, #tpu.memory_space<smem>>
    %c20 = arith.constant 20 : index
    %46 = memref.load %arg3[%c20] : memref<29xf32, #tpu.memory_space<smem>>
    %c21 = arith.constant 21 : index
    %47 = memref.load %arg3[%c21] : memref<29xf32, #tpu.memory_space<smem>>
    %c22 = arith.constant 22 : index
    %48 = memref.load %arg3[%c22] : memref<29xf32, #tpu.memory_space<smem>>
    %c23 = arith.constant 23 : index
    %49 = memref.load %arg3[%c23] : memref<29xf32, #tpu.memory_space<smem>>
    %c24 = arith.constant 24 : index
    %50 = memref.load %arg3[%c24] : memref<29xf32, #tpu.memory_space<smem>>
    %c25 = arith.constant 25 : index
    %51 = memref.load %arg3[%c25] : memref<29xf32, #tpu.memory_space<smem>>
    %c26 = arith.constant 26 : index
    %52 = memref.load %arg3[%c26] : memref<29xf32, #tpu.memory_space<smem>>
    %c27 = arith.constant 27 : index
    %53 = memref.load %arg3[%c27] : memref<29xf32, #tpu.memory_space<smem>>
    %c28 = arith.constant 28 : index
    %54 = memref.load %arg3[%c28] : memref<29xf32, #tpu.memory_space<smem>>
    %55 = vector.broadcast %26 : f32 to vector<16x8xf32>
    %56 = arith.mulf %55, %14 : vector<16x8xf32>
    %57 = vector.broadcast %27 : f32 to vector<16x8xf32>
    %58 = arith.mulf %57, %15 : vector<16x8xf32>
    %59 = arith.addf %56, %58 : vector<16x8xf32>
    %60 = vector.broadcast %28 : f32 to vector<16x8xf32>
    %61 = arith.mulf %60, %16 : vector<16x8xf32>
    %62 = arith.addf %59, %61 : vector<16x8xf32>
    %63 = vector.broadcast %35 : f32 to vector<16x8xf32>
    %64 = arith.mulf %63, %17 : vector<16x8xf32>
    %65 = arith.addf %62, %64 : vector<16x8xf32>
    %66 = vector.broadcast %36 : f32 to vector<16x8xf32>
    %67 = arith.mulf %66, %18 : vector<16x8xf32>
    %68 = arith.addf %65, %67 : vector<16x8xf32>
    %69 = vector.broadcast %37 : f32 to vector<16x8xf32>
    %70 = arith.mulf %69, %19 : vector<16x8xf32>
    %71 = arith.addf %68, %70 : vector<16x8xf32>
    %72 = vector.broadcast %44 : f32 to vector<16x8xf32>
    %73 = arith.mulf %72, %20 : vector<16x8xf32>
    %74 = arith.addf %71, %73 : vector<16x8xf32>
    %75 = vector.broadcast %45 : f32 to vector<16x8xf32>
    %76 = arith.mulf %75, %21 : vector<16x8xf32>
    %77 = arith.addf %74, %76 : vector<16x8xf32>
    %78 = vector.broadcast %46 : f32 to vector<16x8xf32>
    %79 = arith.mulf %78, %22 : vector<16x8xf32>
    %80 = arith.addf %77, %79 : vector<16x8xf32>
    %81 = vector.broadcast %29 : f32 to vector<16x8xf32>
    %82 = arith.mulf %81, %14 : vector<16x8xf32>
    %83 = vector.broadcast %30 : f32 to vector<16x8xf32>
    %84 = arith.mulf %83, %15 : vector<16x8xf32>
    %85 = arith.addf %82, %84 : vector<16x8xf32>
    %86 = vector.broadcast %31 : f32 to vector<16x8xf32>
    %87 = arith.mulf %86, %16 : vector<16x8xf32>
    %88 = arith.addf %85, %87 : vector<16x8xf32>
    %89 = vector.broadcast %38 : f32 to vector<16x8xf32>
    %90 = arith.mulf %89, %17 : vector<16x8xf32>
    %91 = arith.addf %88, %90 : vector<16x8xf32>
    %92 = vector.broadcast %39 : f32 to vector<16x8xf32>
    %93 = arith.mulf %92, %18 : vector<16x8xf32>
    %94 = arith.addf %91, %93 : vector<16x8xf32>
    %95 = vector.broadcast %40 : f32 to vector<16x8xf32>
    %96 = arith.mulf %95, %19 : vector<16x8xf32>
    %97 = arith.addf %94, %96 : vector<16x8xf32>
    %98 = vector.broadcast %47 : f32 to vector<16x8xf32>
    %99 = arith.mulf %98, %20 : vector<16x8xf32>
    %100 = arith.addf %97, %99 : vector<16x8xf32>
    %101 = vector.broadcast %48 : f32 to vector<16x8xf32>
    %102 = arith.mulf %101, %21 : vector<16x8xf32>
    %103 = arith.addf %100, %102 : vector<16x8xf32>
    %104 = vector.broadcast %49 : f32 to vector<16x8xf32>
    %105 = arith.mulf %104, %22 : vector<16x8xf32>
    %106 = arith.addf %103, %105 : vector<16x8xf32>
    %107 = vector.broadcast %32 : f32 to vector<16x8xf32>
    %108 = arith.mulf %107, %14 : vector<16x8xf32>
    %109 = vector.broadcast %33 : f32 to vector<16x8xf32>
    %110 = arith.mulf %109, %15 : vector<16x8xf32>
    %111 = arith.addf %108, %110 : vector<16x8xf32>
    %112 = vector.broadcast %34 : f32 to vector<16x8xf32>
    %113 = arith.mulf %112, %16 : vector<16x8xf32>
    %114 = arith.addf %111, %113 : vector<16x8xf32>
    %115 = vector.broadcast %41 : f32 to vector<16x8xf32>
    %116 = arith.mulf %115, %17 : vector<16x8xf32>
    %117 = arith.addf %114, %116 : vector<16x8xf32>
    %118 = vector.broadcast %42 : f32 to vector<16x8xf32>
    %119 = arith.mulf %118, %18 : vector<16x8xf32>
    %120 = arith.addf %117, %119 : vector<16x8xf32>
    %121 = vector.broadcast %43 : f32 to vector<16x8xf32>
    %122 = arith.mulf %121, %19 : vector<16x8xf32>
    %123 = arith.addf %120, %122 : vector<16x8xf32>
    %124 = vector.broadcast %50 : f32 to vector<16x8xf32>
    %125 = arith.mulf %124, %20 : vector<16x8xf32>
    %126 = arith.addf %123, %125 : vector<16x8xf32>
    %127 = vector.broadcast %51 : f32 to vector<16x8xf32>
    %128 = arith.mulf %127, %21 : vector<16x8xf32>
    %129 = arith.addf %126, %128 : vector<16x8xf32>
    %130 = vector.broadcast %52 : f32 to vector<16x8xf32>
    %131 = arith.mulf %130, %22 : vector<16x8xf32>
    %132 = arith.addf %129, %131 : vector<16x8xf32>
    %133 = vector.extract_strided_slice %80 {offsets = [0, 0], sizes = [8, 8], strides = [1, 1]} : vector<16x8xf32> to vector<8x8xf32>
    %134 = vector.extract_strided_slice %106 {offsets = [1, 0], sizes = [8, 8], strides = [1, 1]} : vector<16x8xf32> to vector<8x8xf32>
    %135 = arith.addf %133, %134 : vector<8x8xf32>
    %136 = vector.extract_strided_slice %132 {offsets = [2, 0], sizes = [8, 8], strides = [1, 1]} : vector<16x8xf32> to vector<8x8xf32>
    %137 = arith.addf %135, %136 : vector<8x8xf32>
    %138 = vector.broadcast %53 : f32 to vector<8x8xf32>
    %139 = arith.addf %137, %138 : vector<8x8xf32>
    %cst = arith.constant 0.000000e+00 : f32
    %140 = vector.broadcast %cst : f32 to vector<8x8xf32>
    %141 = arith.cmpf oge, %139, %140 : vector<8x8xf32>
    %142 = vector.broadcast %54 : f32 to vector<8x8xf32>
    %143 = arith.mulf %142, %139 : vector<8x8xf32>
    %144 = arith.select %141, %139, %143 : vector<8x8xi1>, vector<8x8xf32>
    %145 = vector.broadcast %26 : f32 to vector<16x8xf32>
    %146 = arith.mulf %145, %17 : vector<16x8xf32>
    %147 = vector.broadcast %27 : f32 to vector<16x8xf32>
    %148 = arith.mulf %147, %18 : vector<16x8xf32>
    %149 = arith.addf %146, %148 : vector<16x8xf32>
    %150 = vector.broadcast %28 : f32 to vector<16x8xf32>
    %151 = arith.mulf %150, %19 : vector<16x8xf32>
    %152 = arith.addf %149, %151 : vector<16x8xf32>
    %153 = vector.broadcast %35 : f32 to vector<16x8xf32>
    %154 = arith.mulf %153, %20 : vector<16x8xf32>
    %155 = arith.addf %152, %154 : vector<16x8xf32>
    %156 = vector.broadcast %36 : f32 to vector<16x8xf32>
    %157 = arith.mulf %156, %21 : vector<16x8xf32>
    %158 = arith.addf %155, %157 : vector<16x8xf32>
    %159 = vector.broadcast %37 : f32 to vector<16x8xf32>
    %160 = arith.mulf %159, %22 : vector<16x8xf32>
    %161 = arith.addf %158, %160 : vector<16x8xf32>
    %162 = vector.broadcast %44 : f32 to vector<16x8xf32>
    %163 = arith.mulf %162, %23 : vector<16x8xf32>
    %164 = arith.addf %161, %163 : vector<16x8xf32>
    %165 = vector.broadcast %45 : f32 to vector<16x8xf32>
    %166 = arith.mulf %165, %24 : vector<16x8xf32>
    %167 = arith.addf %164, %166 : vector<16x8xf32>
    %168 = vector.broadcast %46 : f32 to vector<16x8xf32>
    %169 = arith.mulf %168, %25 : vector<16x8xf32>
    %170 = arith.addf %167, %169 : vector<16x8xf32>
    %171 = vector.broadcast %29 : f32 to vector<16x8xf32>
    %172 = arith.mulf %171, %17 : vector<16x8xf32>
    %173 = vector.broadcast %30 : f32 to vector<16x8xf32>
    %174 = arith.mulf %173, %18 : vector<16x8xf32>
    %175 = arith.addf %172, %174 : vector<16x8xf32>
    %176 = vector.broadcast %31 : f32 to vector<16x8xf32>
    %177 = arith.mulf %176, %19 : vector<16x8xf32>
    %178 = arith.addf %175, %177 : vector<16x8xf32>
    %179 = vector.broadcast %38 : f32 to vector<16x8xf32>
    %180 = arith.mulf %179, %20 : vector<16x8xf32>
    %181 = arith.addf %178, %180 : vector<16x8xf32>
    %182 = vector.broadcast %39 : f32 to vector<16x8xf32>
    %183 = arith.mulf %182, %21 : vector<16x8xf32>
    %184 = arith.addf %181, %183 : vector<16x8xf32>
    %185 = vector.broadcast %40 : f32 to vector<16x8xf32>
    %186 = arith.mulf %185, %22 : vector<16x8xf32>
    %187 = arith.addf %184, %186 : vector<16x8xf32>
    %188 = vector.broadcast %47 : f32 to vector<16x8xf32>
    %189 = arith.mulf %188, %23 : vector<16x8xf32>
    %190 = arith.addf %187, %189 : vector<16x8xf32>
    %191 = vector.broadcast %48 : f32 to vector<16x8xf32>
    %192 = arith.mulf %191, %24 : vector<16x8xf32>
    %193 = arith.addf %190, %192 : vector<16x8xf32>
    %194 = vector.broadcast %49 : f32 to vector<16x8xf32>
    %195 = arith.mulf %194, %25 : vector<16x8xf32>
    %196 = arith.addf %193, %195 : vector<16x8xf32>
    %197 = vector.broadcast %32 : f32 to vector<16x8xf32>
    %198 = arith.mulf %197, %17 : vector<16x8xf32>
    %199 = vector.broadcast %33 : f32 to vector<16x8xf32>
    %200 = arith.mulf %199, %18 : vector<16x8xf32>
    %201 = arith.addf %198, %200 : vector<16x8xf32>
    %202 = vector.broadcast %34 : f32 to vector<16x8xf32>
    %203 = arith.mulf %202, %19 : vector<16x8xf32>
    %204 = arith.addf %201, %203 : vector<16x8xf32>
    %205 = vector.broadcast %41 : f32 to vector<16x8xf32>
    %206 = arith.mulf %205, %20 : vector<16x8xf32>
    %207 = arith.addf %204, %206 : vector<16x8xf32>
    %208 = vector.broadcast %42 : f32 to vector<16x8xf32>
    %209 = arith.mulf %208, %21 : vector<16x8xf32>
    %210 = arith.addf %207, %209 : vector<16x8xf32>
    %211 = vector.broadcast %43 : f32 to vector<16x8xf32>
    %212 = arith.mulf %211, %22 : vector<16x8xf32>
    %213 = arith.addf %210, %212 : vector<16x8xf32>
    %214 = vector.broadcast %50 : f32 to vector<16x8xf32>
    %215 = arith.mulf %214, %23 : vector<16x8xf32>
    %216 = arith.addf %213, %215 : vector<16x8xf32>
    %217 = vector.broadcast %51 : f32 to vector<16x8xf32>
    %218 = arith.mulf %217, %24 : vector<16x8xf32>
    %219 = arith.addf %216, %218 : vector<16x8xf32>
    %220 = vector.broadcast %52 : f32 to vector<16x8xf32>
    %221 = arith.mulf %220, %25 : vector<16x8xf32>
    %222 = arith.addf %219, %221 : vector<16x8xf32>
    %223 = vector.extract_strided_slice %170 {offsets = [0, 0], sizes = [8, 8], strides = [1, 1]} : vector<16x8xf32> to vector<8x8xf32>
    %224 = vector.extract_strided_slice %196 {offsets = [1, 0], sizes = [8, 8], strides = [1, 1]} : vector<16x8xf32> to vector<8x8xf32>
    %225 = arith.addf %223, %224 : vector<8x8xf32>
    %226 = vector.extract_strided_slice %222 {offsets = [2, 0], sizes = [8, 8], strides = [1, 1]} : vector<16x8xf32> to vector<8x8xf32>
    %227 = arith.addf %225, %226 : vector<8x8xf32>
    %228 = vector.broadcast %53 : f32 to vector<8x8xf32>
    %229 = arith.addf %227, %228 : vector<8x8xf32>
    %cst_12 = arith.constant 0.000000e+00 : f32
    %230 = vector.broadcast %cst_12 : f32 to vector<8x8xf32>
    %231 = arith.cmpf oge, %229, %230 : vector<8x8xf32>
    %232 = vector.broadcast %54 : f32 to vector<8x8xf32>
    %233 = arith.mulf %232, %229 : vector<8x8xf32>
    %234 = arith.select %231, %229, %233 : vector<8x8xi1>, vector<8x8xf32>
    %235 = arith.maximumf %144, %234 : vector<8x8xf32>
    %c0_13 = arith.constant 0 : index
    %c0_14 = arith.constant 0 : index
    %c0_15 = arith.constant 0 : index
    %236 = vector.load %arg4[%c0_13, %c0_14, %c0_15] : memref<2x8x4xf32, #tpu.memory_space<vmem>>, vector<1x8x4xf32>
    %237 = vector.shape_cast %236 : vector<1x8x4xf32> to vector<8x4xf32>
    %cst_16 = arith.constant dense<0.000000e+00> : vector<8x4xf32>
    %238 = tpu.matmul %235, %237, %cst_16 {dimension_numbers = #tpu.dot_dimension_numbers<[1], [0], [0], [1], [0, 0, 1, 1], [], []>} : vector<8x8xf32>, vector<8x4xf32>, vector<8x4xf32> -> vector<8x4xf32>
    %c1_17 = arith.constant 1 : index
    %c0_18 = arith.constant 0 : index
    %c0_19 = arith.constant 0 : index
    %239 = vector.load %arg4[%c1_17, %c0_18, %c0_19] : memref<2x8x4xf32, #tpu.memory_space<vmem>>, vector<1x8x4xf32>
    %240 = vector.shape_cast %239 : vector<1x8x4xf32> to vector<8x4xf32>
    %cst_20 = arith.constant dense<0.000000e+00> : vector<8x4xf32>
    %241 = tpu.matmul %235, %240, %cst_20 {dimension_numbers = #tpu.dot_dimension_numbers<[1], [0], [0], [1], [0, 0, 1, 1], [], []>} : vector<8x8xf32>, vector<8x4xf32>, vector<8x4xf32> -> vector<8x4xf32>
    %242 = arith.maximumf %238, %241 : vector<8x4xf32>
    %c0_21 = arith.constant 0 : index
    %c0_22 = arith.constant 0 : index
    %c0_23 = arith.constant 0 : index
    %243 = vector.load %arg5[%c0_21, %c0_22, %c0_23] : memref<2x4x8xf32, #tpu.memory_space<vmem>>, vector<1x4x8xf32>
    %244 = vector.shape_cast %243 : vector<1x4x8xf32> to vector<4x8xf32>
    %cst_24 = arith.constant dense<0.000000e+00> : vector<4x4xf32>
    %245 = tpu.matmul %244, %242, %cst_24 {dimension_numbers = #tpu.dot_dimension_numbers<[1], [0], [0], [1], [0, 0, 1, 1], [], []>} : vector<4x8xf32>, vector<8x4xf32>, vector<4x4xf32> -> vector<4x4xf32>
    %c1_25 = arith.constant 1 : index
    %c0_26 = arith.constant 0 : index
    %c0_27 = arith.constant 0 : index
    %246 = vector.load %arg5[%c1_25, %c0_26, %c0_27] : memref<2x4x8xf32, #tpu.memory_space<vmem>>, vector<1x4x8xf32>
    %247 = vector.shape_cast %246 : vector<1x4x8xf32> to vector<4x8xf32>
    %cst_28 = arith.constant dense<0.000000e+00> : vector<4x4xf32>
    %248 = tpu.matmul %247, %242, %cst_28 {dimension_numbers = #tpu.dot_dimension_numbers<[1], [0], [0], [1], [0, 0, 1, 1], [], []>} : vector<4x8xf32>, vector<8x4xf32>, vector<4x4xf32> -> vector<4x4xf32>
    %249 = arith.maximumf %245, %248 : vector<4x4xf32>
    %c0_29 = arith.constant 0 : index
    %c0_30 = arith.constant 0 : index
    %c0_31 = arith.constant 0 : index
    %c0_32 = arith.constant 0 : index
    %250 = vector.load %arg8[%c0_29, %c0_30, %c0_31, %c0_32] : memref<1x1x4x4xf32, #tpu.memory_space<vmem>>, vector<1x1x4x4xf32>
    %251 = vector.shape_cast %250 : vector<1x1x4x4xf32> to vector<4x4xf32>
    %252 = vector.shape_cast %249 : vector<4x4xf32> to vector<1x1x4x4xf32>
    tpu.vector_store %arg8[%c0_29, %c0_30, %c0_31, %c0_32], %252 {strides = array<i32>} : memref<1x1x4x4xf32, #tpu.memory_space<vmem>>, vector<1x1x4x4xf32>,
    return
  }
  func.func @transform_0(%arg0: i32, %arg1: i32, %arg2: i32) -> i32 {
    %c0_i32 = arith.constant 0 : i32
    %c0_i32_0 = arith.constant 0 : i32
    return %c0_i32 : i32
  }
  func.func @transform_1(%arg0: i32, %arg1: i32, %arg2: i32) -> (i32, i32, i32) {
    %c0_i32 = arith.constant 0 : i32
    %c0_i32_0 = arith.constant 0 : i32
    %c0_i32_1 = arith.constant 0 : i32
    %c0_i32_2 = arith.constant 0 : i32
    return %c0_i32, %c0_i32_0, %c0_i32_1 : i32, i32, i32
  }
  func.func @transform_2(%arg0: i32, %arg1: i32, %arg2: i32) -> (i32, i32, i32) {
    %c0_i32 = arith.constant 0 : i32
    %c0_i32_0 = arith.constant 0 : i32
    %c0_i32_1 = arith.constant 0 : i32
    %c0_i32_2 = arith.constant 0 : i32
    return %c0_i32, %c0_i32_0, %c0_i32_1 : i32, i32, i32
  }
  func.func @transform_3(%arg0: i32, %arg1: i32, %arg2: i32) -> (i32, i32, i32, i32) {
    %c0_i32 = arith.constant 0 : i32
    %c0_i32_0 = arith.constant 0 : i32
    %c0_i32_1 = arith.constant 0 : i32
    return %arg0, %arg1, %c0_i32, %c0_i32_0 : i32, i32, i32, i32
  }
  func.func @transform_4(%arg0: i32, %arg1: i32, %arg2: i32) -> (i32, i32, i32, i32) {
    %c1_i32 = arith.constant 1 : i32
    %0 = arith.addi %arg1, %c1_i32 : i32
    %c0_i32 = arith.constant 0 : i32
    %c0_i32_0 = arith.constant 0 : i32
    %c0_i32_1 = arith.constant 0 : i32
    return %arg0, %0, %c0_i32, %c0_i32_0 : i32, i32, i32, i32
  }
  func.func @transform_5(%arg0: i32, %arg1: i32, %arg2: i32) -> (i32, i32, i32, i32) {
    %c0_i32 = arith.constant 0 : i32
    %c0_i32_0 = arith.constant 0 : i32
    return %arg0, %arg1, %arg2, %c0_i32 : i32, i32, i32, i32
  }
}

module attributes {stable_mosaic.version = 11 : i64} {
  func.func @_mlp_head_kernel(%arg0: i32, %arg1: memref<8x128xbf16, #tpu.memory_space<vmem>>, %arg2: memref<128x1024xbf16, #tpu.memory_space<vmem>>, %arg3: memref<1x1024xf32, #tpu.memory_space<vmem>>, %arg4: memref<1024x4xf32, #tpu.memory_space<vmem>>, %arg5: memref<1x4xf32, #tpu.memory_space<vmem>>, %arg6: memref<8x4xf32, #tpu.memory_space<vmem>>, %arg7: memref<8x1024xf32, #tpu.memory_space<vmem>>) attributes {dimension_semantics = [#tpu.dimension_semantics<arbitrary>], iteration_bounds = array<i64: 1>, scalar_prefetch = 0 : i64, scratch_operands = 1 : i64, tpu.core_type = #tpu.core_type<tc>, window_params = [{transform_indices = @transform_0, window_bounds = array<i64: 8, 128>}, {transform_indices = @transform_1, window_bounds = array<i64: 128, 1024>}, {pipeline_mode = #tpu.pipeline_mode<synchronous>, transform_indices = @transform_2, window_bounds = array<i64: 1, 1024>}, {pipeline_mode = #tpu.pipeline_mode<synchronous>, transform_indices = @transform_3, window_bounds = array<i64: 1024, 4>}, {pipeline_mode = #tpu.pipeline_mode<synchronous>, transform_indices = @transform_4, window_bounds = array<i64: 1, 4>}, {pipeline_mode = #tpu.pipeline_mode<synchronous>, transform_indices = @transform_5, window_bounds = array<i64: 8, 4>}]} {
    %c0_i32 = arith.constant 0 : i32
    %0 = arith.cmpi eq, %arg0, %c0_i32 : i32
    %1 = arith.extui %0 : i1 to i32
    %c0_i32_0 = arith.constant 0 : i32
    %2 = arith.cmpi ne, %1, %c0_i32_0 : i32
    scf.if %2 {
      %cst_10 = arith.constant 0.000000e+00 : f32
      %12 = vector.broadcast %cst_10 : f32 to vector<8x1024xf32>
      %c0_11 = arith.constant 0 : index
      %c0_12 = arith.constant 0 : index
      %13 = vector.load %arg7[%c0_11, %c0_12] : memref<8x1024xf32, #tpu.memory_space<vmem>>, vector<8x1024xf32>
      tpu.vector_store %arg7[%c0_11, %c0_12], %12 {strides = array<i32>} : memref<8x1024xf32, #tpu.memory_space<vmem>>, vector<8x1024xf32>,
    } else {
    }
    %c0 = arith.constant 0 : index
    %c0_1 = arith.constant 0 : index
    %3 = vector.load %arg7[%c0, %c0_1] : memref<8x1024xf32, #tpu.memory_space<vmem>>, vector<8x1024xf32>
    %c0_2 = arith.constant 0 : index
    %c0_3 = arith.constant 0 : index
    %4 = vector.load %arg1[%c0_2, %c0_3] : memref<8x128xbf16, #tpu.memory_space<vmem>>, vector<8x128xbf16>
    %c0_4 = arith.constant 0 : index
    %c0_5 = arith.constant 0 : index
    %5 = vector.load %arg2[%c0_4, %c0_5] : memref<128x1024xbf16, #tpu.memory_space<vmem>>, vector<128x1024xbf16>
    %cst = arith.constant dense<0.000000e+00> : vector<8x1024xf32>
    %6 = tpu.matmul %4, %5, %cst {dimension_numbers = #tpu.dot_dimension_numbers<[1], [0], [0], [1], [0, 0, 1, 1], [], []>} : vector<8x128xbf16>, vector<128x1024xbf16>, vector<8x1024xf32> -> vector<8x1024xf32>
    %7 = arith.addf %3, %6 : vector<8x1024xf32>
    %c0_6 = arith.constant 0 : index
    %c0_7 = arith.constant 0 : index
    %8 = vector.load %arg7[%c0_6, %c0_7] : memref<8x1024xf32, #tpu.memory_space<vmem>>, vector<8x1024xf32>
    tpu.vector_store %arg7[%c0_6, %c0_7], %7 {strides = array<i32>} : memref<8x1024xf32, #tpu.memory_space<vmem>>, vector<8x1024xf32>,
    %c0_i32_8 = arith.constant 0 : i32
    %9 = arith.cmpi eq, %arg0, %c0_i32_8 : i32
    %10 = arith.extui %9 : i1 to i32
    %c0_i32_9 = arith.constant 0 : i32
    %11 = arith.cmpi ne, %10, %c0_i32_9 : i32
    scf.if %11 {
      %c0_10 = arith.constant 0 : index
      %c0_11 = arith.constant 0 : index
      %12 = vector.load %arg7[%c0_10, %c0_11] : memref<8x1024xf32, #tpu.memory_space<vmem>>, vector<8x1024xf32>
      %c0_12 = arith.constant 0 : index
      %c0_13 = arith.constant 0 : index
      %13 = vector.load %arg3[%c0_12, %c0_13] : memref<1x1024xf32, #tpu.memory_space<vmem>>, vector<1x1024xf32>
      %14 = vector.broadcast %13 : vector<1x1024xf32> to vector<8x1024xf32>
      %15 = arith.addf %12, %14 : vector<8x1024xf32>
      %cst_14 = arith.constant 0.000000e+00 : f32
      %16 = vector.broadcast %cst_14 : f32 to vector<8x1024xf32>
      %17 = arith.maximumf %15, %16 : vector<8x1024xf32>
      %c0_15 = arith.constant 0 : index
      %c0_16 = arith.constant 0 : index
      %18 = vector.load %arg4[%c0_15, %c0_16] : memref<1024x4xf32, #tpu.memory_space<vmem>>, vector<1024x4xf32>
      %cst_17 = arith.constant dense<0.000000e+00> : vector<8x4xf32>
      %19 = tpu.matmul %17, %18, %cst_17 {dimension_numbers = #tpu.dot_dimension_numbers<[1], [0], [0], [1], [0, 0, 1, 1], [], []>} : vector<8x1024xf32>, vector<1024x4xf32>, vector<8x4xf32> -> vector<8x4xf32>
      %c0_18 = arith.constant 0 : index
      %c0_19 = arith.constant 0 : index
      %20 = vector.load %arg5[%c0_18, %c0_19] : memref<1x4xf32, #tpu.memory_space<vmem>>, vector<1x4xf32>
      %21 = vector.broadcast %20 : vector<1x4xf32> to vector<8x4xf32>
      %22 = arith.addf %19, %21 : vector<8x4xf32>
      %c0_20 = arith.constant 0 : index
      %c0_21 = arith.constant 0 : index
      %23 = vector.load %arg6[%c0_20, %c0_21] : memref<8x4xf32, #tpu.memory_space<vmem>>, vector<8x4xf32>
      tpu.vector_store %arg6[%c0_20, %c0_21], %22 {strides = array<i32>} : memref<8x4xf32, #tpu.memory_space<vmem>>, vector<8x4xf32>,
    } else {
    }
    return
  }
  func.func @transform_0(%arg0: i32) -> (i32, i32) {
    %c0_i32 = arith.constant 0 : i32
    %c0_i32_0 = arith.constant 0 : i32
    return %c0_i32, %arg0 : i32, i32
  }
  func.func @transform_1(%arg0: i32) -> (i32, i32) {
    %c0_i32 = arith.constant 0 : i32
    %c0_i32_0 = arith.constant 0 : i32
    return %arg0, %c0_i32 : i32, i32
  }
  func.func @transform_2(%arg0: i32) -> (i32, i32) {
    %c0_i32 = arith.constant 0 : i32
    %c0_i32_0 = arith.constant 0 : i32
    %c0_i32_1 = arith.constant 0 : i32
    return %c0_i32, %c0_i32_0 : i32, i32
  }
  func.func @transform_3(%arg0: i32) -> (i32, i32) {
    %c0_i32 = arith.constant 0 : i32
    %c0_i32_0 = arith.constant 0 : i32
    %c0_i32_1 = arith.constant 0 : i32
    return %c0_i32, %c0_i32_0 : i32, i32
  }
  func.func @transform_4(%arg0: i32) -> (i32, i32) {
    %c0_i32 = arith.constant 0 : i32
    %c0_i32_0 = arith.constant 0 : i32
    %c0_i32_1 = arith.constant 0 : i32
    return %c0_i32, %c0_i32_0 : i32, i32
  }
  func.func @transform_5(%arg0: i32) -> (i32, i32) {
    %c0_i32 = arith.constant 0 : i32
    %c0_i32_0 = arith.constant 0 : i32
    %c0_i32_1 = arith.constant 0 : i32
    return %c0_i32, %c0_i32_0 : i32, i32
  }
}

</mosaic_0001>

<bundles_post_ra>
// kernel: _lambda_.5
= control target key start
LH: loop header
LB: loop body
LE: loop exit
PB: predicated region body
PF: predicated region fallthrough
CT: control target
= control target key end

     0   :  { %10 = vsyncpa [#allocation3], 0  ;;  %s1606_s18 = smov 0   ;;  %s1608_s19 = smov 0   ;;  %s2338_s0 = inlined_call_operand.vmem [shape: f32[29], index: 0, kind: input, shape index: {}]   ;;  %s2339_s1 = inlined_call_operand.vmem [shape: f32[2,16,8], index: 1, kind: input, shape index: {}]   ;;  %s2340_s2 = inlined_call_operand.vmem [shape: f32[2,8,16], index: 2, kind: input, shape index: {}]   ;;  %s2341_s3 = inlined_call_operand.vmem [shape: f32[2,10,24,18], index: 3, kind: input, shape index: {}, may-alias: {3,4}]   ;;  %s2342_s4 = inlined_call_operand.vmem [shape: f32[2,10,24,18], index: 4, kind: input, shape index: {}, may-alias: {3,4}]   ;;  %s2343_s5 = inlined_call_operand.vmem [shape: f32[2,4,8,8], index: 5, kind: output, shape index: {}]  }
   0x1   :  { %s1610_s20 = smov 0   ;;  %s1612_s21 = smov 0  }
   0x2   :  { %s1614_s22 = smov 0  }
   0x3 LB: > { %s1397_s23 = sadd.s32 4294967295, %s1571_s22   ;;  %s31_s24 = sadd.s32 1, %s1563_s20  ;;  %s1571_s22 = sphi %s1614_s22, %s16_s22   ;;  %s1567_s21 = sphi %s1612_s21, %s2347_s21   ;;  %s1563_s20 = sphi %s1610_s20, %s2346_s20   ;;  %s1559_s19 = sphi %s1608_s19, %s2345_s19   ;;  %s1555_s18 = sphi %s1606_s18, %s2344_s18  }
   0x4   : > { %p33_p0 = scmp.ge.s32.totalorder %s31_s24, 4  ;;  %s35_s25 = sadd.s32 1, %s1567_s21 }
   0x5   : > { %p1399_p1 = scmp.ge.s32.totalorder %s1571_s22, 1  ;;  %p191_p2 = scmp.lt.s32.totalorder %s1571_s22, 9 }
   0x6   : > { %s2349_s24 = smov (%p33_p0, %s31_s24), 0  ;;  %s2351_s25 = smov (!%p33_p0, %s35_s25), %s1567_s21 }
   0x7   : > { %p192_p3 = pnand %p1399_p1, %p191_p2  ;;  %p37_p4 = scmp.ge.s32.totalorder %s2351_s25, 2 }
   0x8   : > { %p1468_p5 = scmp.eq.s32.totalorder %s1397_s23, 0  ;;  %s203_s28 = sshll.u32 %s2338_s0, 4  ;;  %s204_s28 = int_to_ptr.vmem [resolvable:$true] %s203_s28 }
   0x9   : > { %p1464_p6 = pneg %p192_p3  ;;  %s2353_s25 = smov (%p37_p4, %s2351_s25), 0 }
   0xa   : > { %s1573_s29 = smov [#allocation2]   ;;  %252 = sbr.rel (%p192_p3) target bundleno = 674 (0x2a2), region = 40 }
   0xb   : > { %p1465_p7 = pnand %p1468_p5, %p1464_p6 }
   0xd   : > { %1467 = dma.vmem_to_smem (!%p1465_p7), %s204_s28, 16, %s1573_s29, [#allocation3]  }
   0xf   : > { %1550 = dma.done.wait (%p1468_p5), [#allocation3], 16  }
  0x10   : > { %1552 = vsyncadd (%p1468_p5), [#allocation3], 4294967280 }
  0x11   : > { %259 = sfence }
  0x12   : > { %s1645_s30 = sshll.u32 %s1555_s18, 1  ;;  %p305_p8 = scmp.lt.s32.totalorder %s1559_s19, 1  ;;  %vm744_vm0 = vcmask 1046528   ;;  %vm757_vm1 = vcmask 1045504   ;;  %vm1141_vm4 = vcmask 130048   ;;  %vm1249_vm7 = vcmask 64512  }
  0x13   : > { %p307_p9 = scmp.lt.s32.totalorder %s1645_s30, 9  ;;  %s1419_s6 = sld [smem:[#allocation2 + $0x4]] }
  0x14   : > { %s2355_s19 = smov (!%p305_p8, %s1559_s19), 1  ;;  %s1420_s10 = sld [smem:[#allocation2 + $0x5]] }
  0x15   : > { %s308_s7 = scalar_select %p307_p9, %s1645_s30, 9 }
  0x16   : > { %s1458_s8 = smul.u32 30, %s2355_s19  ;;  %s1574_s16 = smov 127  }
  0x17   : > { %s1457_s9 = smul.u32 3, %s308_s7  ;;  %s1575_s17 = smov 126  }
  0x18   : > { %s1422_s23 = sld [smem:[#allocation2 + $0x7]]  ;;  %s1456_s28 = sadd.s32 2, %s1645_s30 }
  0x19   : > { %s311_s11 = sadd.s32 %s1458_s8, %s1457_s9  ;;  %v1656_v0 = vstv %s1419_s6  ;;  %s1416_s26 = sld [smem:[#allocation2 + $0x1]] }
  0x1a   : > { %s1405_s12 = sshll.u32 %s311_s11, 3  ;;  %v1671_v4 = vstv %s1420_s10  ;;  %s1423_s27 = sld [smem:[#allocation2 + $0x8]] }
  0x1b   : > { %s1661_s15 = scalar_lea.vmem %s2341_s3, %s1405_s12  ;;  %p319_p10 = scmp.lt.s32.totalorder %s1456_s28, 9 }
  0x1c   : > { %v1664_v1 = vld [vmem:[%s1661_s15 + $0x18] sm:$0xff]  ;;  %v1667_v2 = vld [vmem:[%s1661_s15] sm:$0xff]  ;;  %v1684_v8 = vld [vmem:[%s1661_s15 + $0x8] sm:$0xff]  ;;  %s1417_s29 = sld [smem:[#allocation2 + $0x2]]  ;;  %p330_p11 = scmp.lt.s32.totalorder %s1555_s18, 3 }
  0x1d   : > { %v862_v3 = vmul.f32 %v1664_v1, %v1656_v0  ;;  %v482_v5 = vmul.f32 %v1656_v0, %v1667_v2  ;;  %v501_v6 = vmul.f32 %v1671_v4, %v1667_v2  ;;  %v1681_v7 = vld [vmem:[%s1661_s15 + $0x20] sm:$0xff]  ;;  %v483_v10 = vmul.f32 %v1656_v0, %v1684_v8  ;;  %s2357_s28 = smov (!%p319_p10, %s1456_s28), 9  ;;  %s1428_s30 = sld [smem:[#allocation2 + $0xd]]  ;;  %v1776_v38 = vld [vmem:[%s1661_s15 + $0x10] sm:$0xff]  ;;  %v1790_v43 = vld [vmem:[%s1661_s15 + $0x28] sm:$0xff] }
  0x1e   : > { %v863_v9 = vmul.f32 %v1681_v7, %v1656_v0  ;;  %v502_v11 = vmul.f32 %v1671_v4, %v1684_v8  ;;  %v1695_v12 = vstv %s1422_s23  ;;  %v880_v15 = vmul.f32 %v1664_v1, %v1671_v4  ;;  %s1459_s6 = smul.u32 3, %s2357_s28  ;;  %s1429_s12 = sld [smem:[#allocation2 + $0xe]] }
  0x1f   : > { %868 = vrot.lane.b32.xlu1 %v862_v3, %s1574_s16  ;;  %488 = vrot.lane.b32.xlu0 %v482_v5, %s1574_s16  ;;  %v615_v13 = vmul.f32 %v1695_v12, %v1684_v8  ;;  %v614_v14 = vmul.f32 %v1695_v12, %v1667_v2  ;;  %v985_v16 = vmul.f32 %v1664_v1, %v1695_v12  ;;  %v1715_v19 = vstv %s1416_s26  ;;  %s1431_s13 = sld [smem:[#allocation2 + $0x10]]  ;;  %s2359_s18 = smov (!%p330_p11, %s1555_s18), 3 }
  0x20   : > { %507 = vrot.lane.b32.xlu2 %v501_v6, %s1575_s17  ;;  %v881_v17 = vmul.f32 %v1681_v7, %v1671_v4  ;;  %v986_v18 = vmul.f32 %v1681_v7, %v1695_v12  ;;  %v1718_v20 = vstv %s1423_s27  ;;  %v779_v21 = vmul.f32 %v1664_v1, %v1715_v19  ;;  %s323_s7 = sadd.s32 %s1459_s6, %s1458_s8  ;;  %s1425_s14 = sld [smem:[#allocation2 + $0xa]] }
  0x21   : > { %v390_v22 = vmul.f32 %v1715_v19, %v1667_v2  ;;  %v633_v23 = vmul.f32 %v1718_v20, %v1667_v2  ;;  %v1003_v24 = vmul.f32 %v1664_v1, %v1718_v20  ;;  %v634_v25 = vmul.f32 %v1718_v20, %v1684_v8  ;;  %s1407_s9 = sshll.u32 %s323_s7, 3  ;;  %s1432_s23 = sld [smem:[#allocation2 + $0x11]] }
  0x22   : > { %v1004_v26 = vmul.f32 %v1681_v7, %v1718_v20  ;;  %v1740_v27 = vstv %s1417_s29  ;;  %s1753_s8 = scalar_lea.vmem %s2342_s4, %s1407_s9  ;;  %v484_v40 = vmul.f32 %v1656_v0, %v1776_v38  ;;  %v864_v46 = vmul.f32 %v1790_v43, %v1656_v0  ;;  %s1418_s26 = sld [smem:[#allocation2 + $0x3]] }
  0x23   : > { %v1742_v28 = vstv %s1428_s30  ;;  %v791_v29 = vmul.f32 %v1664_v1, %v1740_v27  ;;  %v403_v30 = vmul.f32 %v1740_v27, %v1667_v2  ;;  %v1759_v32 = vld [vmem:[%s1753_s8] sm:$0xff]  ;;  %v1762_v33 = vld [vmem:[%s1753_s8 + $0x8] sm:$0xff]  ;;  %v616_v56 = vmul.f32 %v1695_v12, %v1776_v38  ;;  %s1426_s27 = sld [smem:[#allocation2 + $0xb]] }
  0x24   : > { %v527_v31 = vmul.f32 %v1664_v1, %v1742_v28  ;;  %v904_v34 = vmul.f32 %v1742_v28, %v1759_v32  ;;  %v528_v35 = vmul.f32 %v1681_v7, %v1742_v28  ;;  %v905_v36 = vmul.f32 %v1742_v28, %v1762_v33  ;;  %s1437_s28 = sld [smem:[#allocation2 + $0x16]] }
  0x25   : > { %v1773_v37 = vstv %s1429_s12  ;;  %v1787_v42 = vstv %s1431_s13  ;;  %v503_v57 = vmul.f32 %v1671_v4, %v1776_v38  ;;  %v882_v60 = vmul.f32 %v1790_v43, %v1671_v4  ;;  %s1421_s29 = sld [smem:[#allocation2 + $0x6]] }
  0x26   : > { %v546_v39 = vmul.f32 %v1664_v1, %v1773_v37  ;;  %v547_v41 = vmul.f32 %v1681_v7, %v1773_v37  ;;  %v660_v44 = vmul.f32 %v1681_v7, %v1787_v42  ;;  %v659_v45 = vmul.f32 %v1664_v1, %v1787_v42  ;;  %s1427_s30 = sld [smem:[#allocation2 + $0xc]] }
  0x27   : > { %870 = vrot.lane.b32.xlu1 %v863_v9, %s1574_s16  ;;  %490 = vrot.lane.b32.xlu0 %v483_v10, %s1574_s16  ;;  %v923_v47 = vmul.f32 %v1773_v37, %v1762_v33  ;;  %v922_v48 = vmul.f32 %v1773_v37, %v1759_v32  ;;  %v1027_v49 = vmul.f32 %v1787_v42, %v1759_v32  ;;  %v1810_v50 = vstv %s1425_s14  ;;  %s1438_s6 = sld [smem:[#allocation2 + $0x17]] }
  0x28   : > { %509 = vrot.lane.b32.xlu2 %v502_v11, %s1575_s17  ;;  %v421_v51 = vmul.f32 %v1664_v1, %v1810_v50  ;;  %v1028_v52 = vmul.f32 %v1787_v42, %v1762_v33  ;;  %v807_v53 = vmul.f32 %v1810_v50, %v1759_v32  ;;  %v1821_v54 = vstv %s1432_s23  ;;  %s1440_s7 = sld [smem:[#allocation2 + $0x19]] }
  0x29   : > { %v678_v58 = vmul.f32 %v1664_v1, %v1821_v54  ;;  %v679_v61 = vmul.f32 %v1681_v7, %v1821_v54  ;;  %v987_v62 = vmul.f32 %v1790_v43, %v1695_v12  ;;  %v1046_v0 = vmul.f32 %v1821_v54, %v1762_v33  ;;  %s357_s9 = sld [smem:[#allocation2]] }
  0x2a   : > { %v1045_v3 = vmul.f32 %v1821_v54, %v1759_v32  ;;  %v1845_v4 = vstv %s1418_s26  ;;  %v391_v5 = vmul.f32 %v1715_v19, %v1684_v8  ;;  %v1856_v10 = vstv %s1426_s27  ;;  %s1430_s10 = sld [smem:[#allocation2 + $0xf]] }
  0x2b   : > { %v859_v6 = vmul.f32 %v1664_v1, %v1845_v4  ;;  %v478_v9 = vmul.f32 %v1845_v4, %v1667_v2  ;;  %s1434_s11 = sld [smem:[#allocation2 + $0x13]] }
  0x2c   : > { %s1424_s12 = sld [smem:[#allocation2 + $0x9]] }
  0x2d   : > { %s1441_s13 = sld [smem:[#allocation2 + $0x1a]] }
  0x2e   : > { %s1435_s14 = sld [smem:[#allocation2 + $0x14]] }
  0x2f   : > { %622 = vrot.lane.b32.xlu1 %v615_v13, %s1574_s16  ;;  %620 = vrot.lane.b32.xlu0 %v614_v14, %s1574_s16 }
  0x30   : > { %886 = vrot.lane.b32.xlu2 %v880_v15, %s1575_s17 }
  0x37   : > { %991 = vrot.lane.b32.xlu1 %v985_v16, %s1574_s16  ;;  %888 = vrot.lane.b32.xlu0 %v881_v17, %s1575_s17  ;;  %v780_v16 = vmul.f32 %v1681_v7, %v1715_v19  ;;  %v434_v17 = vmul.f32 %v1664_v1, %v1856_v10 }
  0x38   : > { %993 = vrot.lane.b32.xlu2 %v986_v18, %s1574_s16 }
  0x3f   : > { %783 = vrot.lane.b32.xlu1 %v779_v21, %s1574_s16  ;;  %394 = vrot.lane.b32.xlu0 %v390_v22, %s1574_s16  ;;  %v819_v22 = vmul.f32 %v1856_v10, %v1759_v32 }
  0x40   : > { %639 = vrot.lane.b32.xlu2 %v633_v23, %s1575_s17  ;;  %v479_v23 = vmul.f32 %v1845_v4, %v1684_v8 }
  0x47   : > { %1009 = vrot.lane.b32.xlu1 %v1003_v24, %s1575_s17  ;;  %641 = vrot.lane.b32.xlu0 %v634_v25, %s1575_s17  ;;  %v1871_v24 = vstv %s1437_s28 }
  0x48   : > { %1011 = vrot.lane.b32.xlu2 %v1004_v26, %s1575_s17  ;;  %v1873_v26 = vstv %s1421_s29 }
  0x4f   : > { %795 = vrot.lane.b32.xlu1 %v791_v29, %s1575_s17  ;;  %407 = vrot.lane.b32.xlu0 %v403_v30, %s1575_s17 }
  0x50   : > { %533 = vrot.lane.b32.xlu2 %v527_v31, %s1574_s16  ;;  %v983_v31 = vmul.f32 %v1681_v7, %v1873_v26 }
  0x57   : > { %910 = vrot.lane.b32.xlu1 %v904_v34, %s1574_s16  ;;  %535 = vrot.lane.b32.xlu0 %v528_v35, %s1574_s16  ;;  %v573_v34 = vmul.f32 %v1871_v24, %v1762_v33  ;;  %v572_v35 = vmul.f32 %v1871_v24, %v1759_v32 }
  0x58   : > { %912 = vrot.lane.b32.xlu2 %v905_v36, %s1574_s16 }
  0x5f   : > { %552 = vrot.lane.b32.xlu1 %v546_v39, %s1575_s17  ;;  %492 = vrot.lane.b32.xlu0 %v484_v40, %s1574_s16  ;;  %v635_v39 = vmul.f32 %v1718_v20, %v1776_v38  ;;  %v610_v40 = vmul.f32 %v1873_v26, %v1667_v2 }
  0x60   : > { %554 = vrot.lane.b32.xlu2 %v547_v41, %s1575_s17 }
  0x67   : > { %667 = vrot.lane.b32.xlu1 %v660_v44, %s1574_s16  ;;  %665 = vrot.lane.b32.xlu0 %v659_v45, %s1574_s16  ;;  %v1891_v44 = vld [vmem:[%s1753_s8 + $0x20] sm:$0xff]  ;;  %v1894_v45 = vld [vmem:[%s1753_s8 + $0x18] sm:$0xff] }
  0x68   : > { %872 = vrot.lane.b32.xlu2 %v864_v46, %s1574_s16 }
  0x6f   : > { %930 = vrot.lane.b32.xlu1 %v923_v47, %s1575_s17  ;;  %928 = vrot.lane.b32.xlu0 %v922_v48, %s1575_s17 }
  0x70   : > { %1033 = vrot.lane.b32.xlu2 %v1027_v49, %s1574_s16 }
  0x77   : > { %425 = vrot.lane.b32.xlu1 %v421_v51, %s1574_s16  ;;  %1035 = vrot.lane.b32.xlu0 %v1028_v52, %s1574_s16  ;;  %v1896_v51 = vstv %s1427_s30 }
  0x78   : > { %811 = vrot.lane.b32.xlu2 %v807_v53, %s1574_s16  ;;  %v947_v53 = vmul.f32 %v1891_v44, %v1871_v24 }
  0x7a   : > { %v508_v55 = vpop.permute.xlu2 %507 }
  0x7f   : > { %624 = vrot.lane.b32.xlu1 %v616_v56, %s1574_s16  ;;  %511 = vrot.lane.b32.xlu0 %v503_v57, %s1575_s17  ;;  %v860_v56 = vmul.f32 %v1681_v7, %v1845_v4 }
  0x80   : > { %684 = vrot.lane.b32.xlu2 %v678_v58, %s1575_s17  ;;  %v1005_v58 = vmul.f32 %v1790_v43, %v1718_v20  ;;  %v792_v20 = vmul.f32 %v1681_v7, %v1740_v27 }
  0x82   : > { %v510_v59 = vpop.permute.xlu2 %509 }
  0x87   : > { %890 = vrot.lane.b32.xlu1 %v882_v60, %s1575_s17  ;;  %686 = vrot.lane.b32.xlu0 %v679_v61, %s1575_s17 }
  0x88   : > { %995 = vrot.lane.b32.xlu2 %v987_v62, %s1574_s16 }
  0x8a   : > { %v887_v63 = vpop.permute.xlu2 %886 }
  0x8f   : > { %1053 = vrot.lane.b32.xlu1 %v1046_v0, %s1575_s17  ;;  %1051 = vrot.lane.b32.xlu0 %v1045_v3, %s1575_s17 }
  0x90   : > { %396 = vrot.lane.b32.xlu2 %v391_v5, %s1574_s16 }
  0x91   : > { %v869_v11 = vpop.permute.xlu1 %868  ;;  %v489_v12 = vpop.permute.xlu0 %488 }
  0x92   : > { %v877_v13 = vadd.f32 %v869_v11, %v859_v6  ;;  %v994_v14 = vpop.permute.xlu2 %993  ;;  %v497_v15 = vadd.f32 %v489_v12, %v478_v9  ;;  %v404_v6 = vmul.f32 %v1740_v27, %v1684_v8  ;;  %v529_v9 = vmul.f32 %v1790_v43, %v1742_v28 }
  0x93   : > { %v1001_v41 = vadd.f32 %v994_v14, %v983_v31  ;;  %v899_v11 = vmul.f32 %v1896_v51, %v1762_v33  ;;  %v1928_v12 = vstv %s1438_s6  ;;  %v1930_v27 = vstv %s1440_s7  ;;  %v1948_v31 = vld [vmem:[%s1753_s8 + $0x10] sm:$0xff] }
  0x94   : > { %v1862_v18 = vadd.f32 %v887_v63, %v877_v13  ;;  %v516_v21 = vadd.f32 %v508_v55, %v497_v15  ;;  %v946_v55 = vmul.f32 %v1894_v45, %v1871_v24 }
  0x97   : > { %785 = vrot.lane.b32.xlu1 %v780_v16, %s1574_s16  ;;  %438 = vrot.lane.b32.xlu0 %v434_v17, %s1575_s17 }
  0x98   : > { %823 = vrot.lane.b32.xlu2 %v819_v22, %s1575_s17  ;;  %v591_v22 = vmul.f32 %v1928_v12, %v1759_v32 }
  0x99   : > { %v871_v19 = vpop.permute.xlu1 %870  ;;  %v491_v25 = vpop.permute.xlu0 %490 }
  0x9a   : > { %v640_v29 = vpop.permute.xlu2 %639  ;;  %v498_v30 = vadd.f32 %v491_v25, %v479_v23  ;;  %v878_v60 = vadd.f32 %v871_v19, %v860_v56  ;;  %v611_v23 = vmul.f32 %v1873_v26, %v1684_v8  ;;  %v982_v19 = vmul.f32 %v1664_v1, %v1873_v26 }
  0x9b   : > { %v704_v25 = vmul.f32 %v1930_v27, %v1759_v32 }
  0x9c   : > { %v1881_v36 = vadd.f32 %v510_v59, %v498_v30  ;;  %v520_v59 = vmul.f32 %v1664_v1, %v1896_v51 }
  0x9e   : > { %v523_v62 = vadd.f32 %v520_v59, %v516_v21  ;;  %v592_v21 = vmul.f32 %v1928_v12, %v1762_v33 }
  0x9f   : > { %580 = vrot.lane.b32.xlu1 %v573_v34, %s1574_s16  ;;  %578 = vrot.lane.b32.xlu0 %v572_v35, %s1574_s16  ;;  %v1950_v34 = vstv %s357_s9  ;;  %s1442_s9 = sld [smem:[#allocation2 + $0x1b]] }
  0xa0   : > { %643 = vrot.lane.b32.xlu2 %v635_v39, %s1575_s17 }
  0xa1   : > { %v623_v46 = vpop.permute.xlu1 %622  ;;  %v621_v47 = vpop.permute.xlu0 %620 }
  0xa2   : > { %v1012_v48 = vpop.permute.xlu2 %1011  ;;  %v629_v49 = vadd.f32 %v621_v47, %v610_v40 }
  0xa3   : > { %v1898_v52 = vadd.f32 %v1012_v48, %v1001_v41  ;;  %v906_v48 = vmul.f32 %v1742_v28, %v1948_v31 }
  0xa4   : > { %v1906_v57 = vadd.f32 %v640_v29, %v629_v49  ;;  %v630_v29 = vadd.f32 %v623_v46, %v611_v23  ;;  %v705_v49 = vmul.f32 %v1930_v27, %v1762_v33  ;;  %v777_v46 = vmul.f32 %v1664_v1, %v1950_v34 }
  0xa7   : > { %954 = vrot.lane.b32.xlu1 %v947_v53, %s1574_s16  ;;  %952 = vrot.lane.b32.xlu0 %v946_v55, %s1574_s16  ;;  %v387_v53 = vmul.f32 %v1950_v34, %v1667_v2  ;;  %v964_v55 = vmul.f32 %v1894_v45, %v1928_v12  ;;  %v1069_v2 = vmul.f32 %v1894_v45, %v1930_v27 }
  0xa8   : > { %1013 = vrot.lane.b32.xlu2 %v1005_v58, %s1575_s17 }
  0xa9   : > { %v992_v61 = vpop.permute.xlu1 %991  ;;  %v889_v63 = vpop.permute.xlu0 %888 }
  0xaa   : > { %v534_v0 = vpop.permute.xlu2 %533  ;;  %v896_v3 = vadd.f32 %v889_v63, %v878_v60  ;;  %v1000_v30 = vadd.f32 %v992_v61, %v982_v19  ;;  %v965_v63 = vmul.f32 %v1891_v44, %v1928_v12 }
  0xab   : > { %v1915_v5 = vadd.f32 %v534_v0, %v523_v62  ;;  %v1070_v0 = vmul.f32 %v1891_v44, %v1930_v27 }
  0xac   : > { %v902_v14 = vadd.f32 %v899_v11, %v896_v3  ;;  %v898_v3 = vmul.f32 %v1896_v51, %v1759_v32 }
  0xae   : > { %v901_v11 = vadd.f32 %v898_v3, %v1862_v18 }
  0xaf   : > { %797 = vrot.lane.b32.xlu1 %v792_v20, %s1575_s17  ;;  %409 = vrot.lane.b32.xlu0 %v404_v6, %s1575_s17  ;;  %v1979_v20 = vstv %s1430_s10  ;;  %v521_v6 = vmul.f32 %v1681_v7, %v1896_v51  ;;  %s1443_s10 = sld [smem:[#allocation2 + $0x1c]] }
  0xb0   : > { %537 = vrot.lane.b32.xlu2 %v529_v9, %s1574_s16  ;;  %v1021_v9 = vmul.f32 %v1979_v20, %v1759_v32 }
  0xb1   : > { %v784_v13 = vpop.permute.xlu1 %783  ;;  %v395_v15 = vpop.permute.xlu0 %394 }
  0xb2   : > { %v913_v16 = vpop.permute.xlu2 %912  ;;  %v789_v56 = vadd.f32 %v784_v13, %v777_v46  ;;  %v400_v58 = vadd.f32 %v395_v15, %v387_v53  ;;  %v524_v13 = vadd.f32 %v521_v6, %v1881_v36 }
  0xb3   : > { %v1932_v17 = vadd.f32 %v913_v16, %v902_v14  ;;  %v1990_v14 = vstv %s1434_s11 }
  0xb4   : > { %v452_v18 = vmul.f32 %v1990_v14, %v1759_v32 }
  0xb7   : > { %599 = vrot.lane.b32.xlu1 %v592_v21, %s1575_s17  ;;  %597 = vrot.lane.b32.xlu0 %v591_v22, %s1575_s17 }
  0xb8   : > { %710 = vrot.lane.b32.xlu2 %v704_v25, %s1574_s16  ;;  %v1992_v25 = vstv %s1424_s12 }
  0xb9   : > { %v1010_v35 = vpop.permute.xlu1 %1009  ;;  %v642_v39 = vpop.permute.xlu0 %641 }
  0xba   : > { %v1018_v40 = vadd.f32 %v1010_v35, %v1000_v30  ;;  %v555_v41 = vpop.permute.xlu2 %554  ;;  %v1952_v47 = vadd.f32 %v642_v39, %v630_v29  ;;  %v835_v30 = vmul.f32 %v1894_v45, %v1990_v14  ;;  %v548_v35 = vmul.f32 %v1790_v43, %v1773_v37 }
  0xbb   : > { %v803_v39 = vmul.f32 %v1992_v25, %v1759_v32 }
  0xbc   : > { %v1024_v16 = vadd.f32 %v1021_v9, %v1018_v40  ;;  %v2009_v40 = vstv %s1441_s13 }
  0xbf   : > { %914 = vrot.lane.b32.xlu1 %v906_v48, %s1574_s16  ;;  %712 = vrot.lane.b32.xlu0 %v705_v49, %s1574_s16 }
  0xc0   : > { %970 = vrot.lane.b32.xlu2 %v964_v55, %s1575_s17 }
  0xc1   : > { %v796_v28 = vpop.permute.xlu1 %795  ;;  %v408_v59 = vpop.permute.xlu0 %407 }
  0xc2   : > { %v801_v60 = vadd.f32 %v796_v28, %v789_v56  ;;  %v1967_v61 = vpop.permute.xlu2 %872  ;;  %v1969_v62 = vadd.f32 %v408_v59, %v400_v58  ;;  %v723_v56 = vmul.f32 %v2009_v40, %v1759_v32  ;;  %v661_v58 = vmul.f32 %v1790_v43, %v1787_v42 }
  0xc3   : > { %v653_v28 = vmul.f32 %v1681_v7, %v1979_v20  ;;  %v724_v59 = vmul.f32 %v2009_v40, %v1762_v33 }
  0xc4   : > { %v805_v49 = vadd.f32 %v803_v39, %v801_v60  ;;  %v652_v60 = vmul.f32 %v1664_v1, %v1979_v20  ;;  %v1022_v39 = vmul.f32 %v1979_v20, %v1762_v33 }
  0xc7   : > { %1075 = vrot.lane.b32.xlu1 %v1069_v2, %s1574_s16  ;;  %972 = vrot.lane.b32.xlu0 %v965_v63, %s1575_s17  ;;  %v655_v2 = vadd.f32 %v652_v60, %v1906_v57 }
  0xc8   : > { %1077 = vrot.lane.b32.xlu2 %v1070_v0, %s1574_s16 }
  0xc9   : > { %v911_v15 = vpop.permute.xlu1 %910  ;;  %v536_v21 = vpop.permute.xlu0 %535 }
  0xca   : > { %v919_v22 = vadd.f32 %v911_v15, %v901_v11  ;;  %v1034_v23 = vpop.permute.xlu2 %1033  ;;  %v543_v19 = vadd.f32 %v536_v21, %v524_v13  ;;  %v1029_v11 = vmul.f32 %v1787_v42, %v1948_v31  ;;  %v924_v13 = vmul.f32 %v1773_v37, %v1948_v31 }
  0xcb   : > { %v1994_v29 = vadd.f32 %v1034_v23, %v1024_v16  ;;  %v2040_v21 = vstv %s1435_s14  ;;  %s1408_s14 = sshll.u32 %s2355_s19, 2 }
  0xcc   : > { %v2000_v36 = vadd.f32 %v555_v41, %v543_v19  ;;  %v422_v19 = vmul.f32 %v1681_v7, %v1810_v50 }
  0xcf   : > { %839 = vrot.lane.b32.xlu1 %v835_v30, %s1574_s16  ;;  %456 = vrot.lane.b32.xlu0 %v452_v18, %s1574_s16  ;;  %v1088_v30 = vmul.f32 %v1891_v44, %v2009_v40  ;;  %v416_v18 = vmul.f32 %v1664_v1, %v1992_v25 }
  0xd0   : > { %556 = vrot.lane.b32.xlu2 %v548_v35, %s1575_s17  ;;  %v465_v35 = vmul.f32 %v2040_v21, %v1759_v32 }
  0xd1   : > { %v553_v48 = vpop.permute.xlu1 %552  ;;  %v493_v46 = vpop.permute.xlu0 %492 }
  0xd2   : > { %v2012_v41 = vadd.f32 %v553_v48, %v1915_v5  ;;  %v812_v53 = vpop.permute.xlu2 %811  ;;  %v656_v5 = vadd.f32 %v653_v28, %v1952_v47  ;;  %v1087_v47 = vmul.f32 %v1894_v45, %v2009_v40  ;;  %v808_v28 = vmul.f32 %v1810_v50, %v1762_v33 }
  0xd3   : > { %v817_v55 = vadd.f32 %v812_v53, %v805_v49  ;;  %v435_v50 = vmul.f32 %v1681_v7, %v1856_v10 }
  0xd7   : > { %729 = vrot.lane.b32.xlu1 %v723_v56, %s1575_s17  ;;  %669 = vrot.lane.b32.xlu0 %v661_v58, %s1574_s16  ;;  %v847_v58 = vmul.f32 %v1894_v45, %v2040_v21 }
  0xd8   : > { %731 = vrot.lane.b32.xlu2 %v724_v59, %s1575_s17  ;;  %v480_v59 = vmul.f32 %v1845_v4, %v1776_v38 }
  0xd9   : > { %v668_v63 = vpop.permute.xlu1 %667  ;;  %v666_v0 = vpop.permute.xlu0 %665 }
  0xda   : > { %v675_v3 = vadd.f32 %v668_v63, %v656_v5  ;;  %v685_v6 = vpop.permute.xlu2 %684  ;;  %v674_v9 = vadd.f32 %v666_v0, %v655_v2 }
  0xdc   : > { %v2033_v15 = vadd.f32 %v685_v6, %v674_v9  ;;  %v1047_v6 = vmul.f32 %v1821_v54, %v1948_v31  ;;  %v861_v9 = vmul.f32 %v1790_v43, %v1845_v4 }
  0xdf   : > { %1037 = vrot.lane.b32.xlu1 %v1029_v11, %s1574_s16  ;;  %932 = vrot.lane.b32.xlu0 %v924_v13, %s1575_s17  ;;  %v612_v11 = vmul.f32 %v1873_v26, %v1776_v38  ;;  %v2091_v13 = vld [vmem:[%s1753_s8 + $0x28] sm:$0xff]  ;;  %s1436_s8 = sld [smem:[#allocation2 + $0x15]] }
  0xe0   : > { %1093 = vrot.lane.b32.xlu2 %v1087_v47, %s1575_s17  ;;  %v948_v38 = vmul.f32 %v2091_v13, %v1871_v24 }
  0xe1   : > { %v931_v57 = vpop.permute.xlu1 %930  ;;  %v929_v16 = vpop.permute.xlu0 %928 }
  0xe2   : > { %v2043_v42 = vadd.f32 %v931_v57, %v1932_v17  ;;  %v996_v23 = vpop.permute.xlu2 %995  ;;  %v2045_v37 = vadd.f32 %v929_v16, %v919_v22  ;;  %v418_v17 = vadd.f32 %v416_v18, %v1969_v62  ;;  %v1025_v22 = vadd.f32 %v1022_v39, %v1898_v52 }
  0xe3   : > { %v680_v62 = vmul.f32 %v1790_v43, %v1821_v54  ;;  %v499_v52 = vadd.f32 %v493_v46, %v480_v59  ;;  %v820_v46 = vmul.f32 %v1856_v10, %v1762_v33  ;;  %v984_v18 = vmul.f32 %v1790_v43, %v1873_v26 }
  0xe4   : > { %v966_v26 = vmul.f32 %v2091_v13, %v1928_v12 }
  0xe5   : > { %v2129_v59 = vstv %s1436_s8  ;;  %s336_s8 = sadd.s32 %s1408_s14, %s2359_s18 }
  0xe7   : > { %427 = vrot.lane.b32.xlu1 %v422_v19, %s1574_s16  ;;  %1095 = vrot.lane.b32.xlu0 %v1088_v30, %s1575_s17  ;;  %v593_v30 = vmul.f32 %v1928_v12, %v1948_v31 }
  0xe8   : > { %469 = vrot.lane.b32.xlu2 %v465_v35, %s1575_s17 }
  0xe9   : > { %v426_v48 = vpop.permute.xlu1 %425  ;;  %v1036_v49 = vpop.permute.xlu0 %1035 }
  0xea   : > { %v431_v53 = vadd.f32 %v426_v48, %v418_v17  ;;  %v2062_v1 = vpop.permute.xlu2 %396  ;;  %v1043_v56 = vadd.f32 %v1036_v49, %v1025_v22  ;;  %v706_v49 = vmul.f32 %v1930_v27, %v1948_v31 }
  0xef   : > { %851 = vrot.lane.b32.xlu1 %v847_v58, %s1575_s17  ;;  %813 = vrot.lane.b32.xlu0 %v808_v28, %s1574_s16  ;;  %v522_v58 = vmul.f32 %v1790_v43, %v1896_v51 }
  0xf0   : > { %688 = vrot.lane.b32.xlu2 %v680_v62, %s1575_s17 }
  0xf1   : > { %v625_v60 = vpop.permute.xlu1 %624  ;;  %v512_v5 = vpop.permute.xlu0 %511 }
  0xf2   : > { %v824_v2 = vpop.permute.xlu2 %823  ;;  %v518_v63 = vadd.f32 %v512_v5, %v499_v52  ;;  %v631_v54 = vadd.f32 %v625_v60, %v612_v11  ;;  %v453_v60 = vmul.f32 %v1990_v14, %v1762_v33  ;;  %v566_v5 = vmul.f32 %v2129_v59, %v1762_v33 }
  0xf3   : > { %v2075_v0 = vadd.f32 %v824_v2, %v817_v55  ;;  %v879_v55 = vadd.f32 %v1967_v61, %v861_v9  ;;  %v574_v61 = vmul.f32 %v1871_v24, %v1948_v31  ;;  %v565_v2 = vmul.f32 %v2129_v59, %v1759_v32 }
  0xf7   : > { %440 = vrot.lane.b32.xlu1 %v435_v50, %s1575_s17  ;;  %1055 = vrot.lane.b32.xlu0 %v1047_v6, %s1575_s17  ;;  %v568_v50 = vadd.f32 %v565_v2, %v2012_v41  ;;  %v848_v41 = vmul.f32 %v1891_v44, %v2040_v21 }
  0xf8   : > { %825 = vrot.lane.b32.xlu2 %v820_v46, %s1575_s17 }
  0xf9   : > { %v891_v47 = vpop.permute.xlu1 %890  ;;  %v687_v57 = vpop.permute.xlu0 %686 }
  0xfa   : > { %v2094_v4 = vadd.f32 %v891_v47, %v879_v55  ;;  %v644_v16 = vpop.permute.xlu2 %643  ;;  %v2096_v10 = vadd.f32 %v687_v57, %v675_v3  ;;  %v1002_v3 = vadd.f32 %v996_v23, %v984_v18  ;;  %v1071_v23 = vmul.f32 %v2091_v13, %v1930_v27 }
  0xfb   : > { %v2098_v19 = vadd.f32 %v644_v16, %v631_v54  ;;  %v836_v27 = vmul.f32 %v1891_v44, %v1990_v14  ;;  %v466_v55 = vmul.f32 %v2040_v21, %v1762_v33  ;;  %v1089_v54 = vmul.f32 %v2091_v13, %v2009_v40 }
  0xfc   : > { %v941_v47 = vmul.f32 %v1891_v44, %v2129_v59  ;;  %v778_v21 = vmul.f32 %v1681_v7, %v1950_v34 }
  0xfe   : > { %v944_v57 = vadd.f32 %v941_v47, %v2043_v42 }
  0xff   : > { %956 = vrot.lane.b32.xlu1 %v948_v38, %s1574_s16  ;;  %582 = vrot.lane.b32.xlu0 %v574_v61, %s1574_s16 }
 0x100   : > { %601 = vrot.lane.b32.xlu2 %v593_v30, %s1575_s17 }
 0x101   : > { %v1054_v35 = vpop.permute.xlu1 %1053  ;;  %v1052_v39 = vpop.permute.xlu0 %1051 }
 0x102   : > { %v2111_v17 = vadd.f32 %v1054_v35, %v1043_v56  ;;  %v1014_v22 = vpop.permute.xlu2 %1013  ;;  %v2114_v24 = vadd.f32 %v1052_v39, %v1994_v29  ;;  %v525_v56 = vadd.f32 %v522_v58, %v518_v63  ;;  %v725_v63 = vmul.f32 %v2009_v40, %v1948_v31 }
 0x103   : > { %v2116_v48 = vadd.f32 %v1014_v22, %v1002_v3  ;;  %v388_v3 = vmul.f32 %v1950_v34, %v1684_v8 }
 0x105   : > { %v401_v35 = vadd.f32 %v2062_v1, %v388_v3  ;;  %v900_v1 = vmul.f32 %v1896_v51, %v1948_v31 }
 0x107   : > { %974 = vrot.lane.b32.xlu1 %v966_v26, %s1575_s17  ;;  %714 = vrot.lane.b32.xlu0 %v706_v49, %s1574_s16 }
 0x108   : > { %1079 = vrot.lane.b32.xlu2 %v1071_v23, %s1574_s16 }
 0x109   : > { %v786_v29 = vpop.permute.xlu1 %785  ;;  %v439_v28 = vpop.permute.xlu0 %438 }
 0x10a   : > { %v538_v12 = vpop.permute.xlu2 %537  ;;  %v2131_v62 = vadd.f32 %v439_v28, %v431_v53  ;;  %v569_v53 = vadd.f32 %v566_v5, %v2000_v36  ;;  %v940_v36 = vmul.f32 %v1894_v45, %v2129_v59  ;;  %v790_v39 = vadd.f32 %v786_v29, %v778_v21 }
 0x10b   : > { %v2133_v52 = vadd.f32 %v538_v12, %v525_v56  ;;  %v903_v12 = vadd.f32 %v900_v1, %v2094_v4 }
 0x10c   : > { %v943_v16 = vadd.f32 %v940_v36, %v2045_v37 }
 0x10f   : > { %841 = vrot.lane.b32.xlu1 %v836_v27, %s1574_s16  ;;  %458 = vrot.lane.b32.xlu0 %v453_v60, %s1574_s16  ;;  %s1433_s16 = sld [smem:[#allocation2 + $0x12]] }
 0x110   : > { %733 = vrot.lane.b32.xlu2 %v725_v63, %s1575_s17 }
 0x111   : > { %v581_v14 = vpop.permute.xlu1 %580  ;;  %v579_v6 = vpop.permute.xlu0 %578 }
 0x112   : > { %v588_v9 = vadd.f32 %v581_v14, %v569_v53  ;;  %v2150_v46 = vpop.permute.xlu2 %710  ;;  %v587_v11 = vadd.f32 %v579_v6, %v568_v50 }
 0x115   : > { %v2193_v51 = vstv %s1433_s16  ;;  %s1409_s16 = sshll.u32 %s336_s8, 3 }
 0x116   : > { %v447_v4 = vmul.f32 %v2193_v51, %v1759_v32  ;;  %s338_s26 = scalar_lea.vmem %s2343_s5, %s1409_s16 }
 0x117   : > { %471 = vrot.lane.b32.xlu1 %v466_v55, %s1575_s17  ;;  %1097 = vrot.lane.b32.xlu0 %v1089_v54, %s1575_s17 }
 0x118   : > { %853 = vrot.lane.b32.xlu2 %v848_v41, %s1575_s17  ;;  %s1439_s17 = sld [smem:[#allocation2 + $0x18]]  ;;  %v449_v36 = vadd.f32 %v447_v4, %v2131_v62 }
 0x119   : > { %v955_v40 = vpop.permute.xlu1 %954  ;;  %v953_v38 = vpop.permute.xlu0 %952 }
 0x11a   : > { %v962_v61 = vadd.f32 %v955_v40, %v944_v57  ;;  %v971_v30 = vpop.permute.xlu2 %970  ;;  %v961_v18 = vadd.f32 %v953_v38, %v943_v16 }
 0x11c   : > { %v979_v63 = vadd.f32 %v971_v30, %v961_v18 }
 0x11e   : > { %v2198_v55 = vstv %s1439_s17 }
 0x11f   : > { %v698_v54 = vmul.f32 %v2198_v55, %v1762_v33  ;;  %v697_v16 = vmul.f32 %v2198_v55, %v1759_v32  ;;  %v1140_v32 = vld [vmem:[%s2339_s1 + $0x8] sm:$0xff] }
 0x120   : > { %1162 = vmatpush.msra.mxu0 %v1140_v32 }
 0x121   : > { %v798_v22 = vpop.permute.xlu1 %797  ;;  %v410_v42 = vpop.permute.xlu0 %409  ;;  %v701_v40 = vadd.f32 %v698_v54, %v2096_v10  ;;  %v700_v3 = vadd.f32 %v697_v16, %v2033_v15  ;;  %v1447_v10 = vld [vmem:[%s2339_s1 + $0x18] sm:$0xff] }
 0x122   : > { %v2172_v26 = vadd.f32 %v798_v22, %v790_v39  ;;  %v2174_v37 = vpop.permute.xlu2 %1077  ;;  %v2176_v49 = vadd.f32 %v410_v42, %v401_v35  ;;  %1188 = vmatpush.msra.mxu1 %v1447_v10 }
 0x123   : > { %v719_v35 = vadd.f32 %v2150_v46, %v700_v3 }
 0x129   : > { %v600_v23 = vpop.permute.xlu1 %599  ;;  %v598_v58 = vpop.permute.xlu0 %597 }
 0x12a   : > { %v2178_v56 = vadd.f32 %v600_v23, %v588_v9  ;;  %v2180_v28 = vpop.permute.xlu2 %556  ;;  %v606_v8 = vadd.f32 %v598_v58, %v587_v11  ;;  %v1108_v9 = vrot.slane %v979_v63, 1  ;;  %v1063_v23 = vmul.f32 %v1894_v45, %v2198_v55 }
 0x12c   : > { %v746_v7 = vrot.slane %v2178_v56, 1  ;;  %v745_v34 = vrot.slane %v606_v8, 1  ;;  %v1139_v8 = vld [vmem:[%s2339_s1] sm:$0xff] }
 0x12d   : > { %1163 = vmatpush.msra.mxu0 %v1139_v8 }
 0x12e   : > { %v747_v29 = vsel %vm744_vm0, %v745_v34, %v746_v7  ;;  %v1446_v34 = vld [vmem:[%s2339_s1 + $0x10] sm:$0xff] }
 0x12f   : > { %1189 = vmatpush.msra.mxu1 %v1446_v34 }
 0x131   : > { %v915_v27 = vpop.permute.xlu1 %914  ;;  %v713_v60 = vpop.permute.xlu0 %712 }
 0x132   : > { %v2189_v5 = vadd.f32 %v915_v27, %v903_v12  ;;  %v732_v2 = vpop.permute.xlu2 %731  ;;  %v720_v30 = vadd.f32 %v713_v60, %v701_v40  ;;  %v1064_v27 = vmul.f32 %v1891_v44, %v2198_v55  ;;  %v1066_v60 = vadd.f32 %v1063_v23, %v2114_v24 }
 0x133   : > { %v563_v23 = vadd.f32 %v2180_v28, %v2133_v52  ;;  %v804_v52 = vmul.f32 %v1992_v25, %v1762_v33  ;;  %v942_v28 = vmul.f32 %v2091_v13, %v2129_v59 }
 0x134   : > { %v2211_v39 = vadd.f32 %v732_v2, %v720_v30 }
 0x136   : > { %v759_v15 = vrot.slane %v2211_v39, 2 }
 0x139   : > { %v1076_v53 = vpop.permute.xlu1 %1075  ;;  %v973_v50 = vpop.permute.xlu0 %972 }
 0x13a   : > { %v2191_v14 = vadd.f32 %v973_v50, %v962_v61  ;;  %v1094_v6 = vpop.permute.xlu2 %1093  ;;  %v1084_v63 = vadd.f32 %v1076_v53, %v1066_v60  ;;  %v1067_v50 = vadd.f32 %v1064_v27, %v2111_v17 }
 0x13c   : > { %v1109_v11 = vrot.slane %v2191_v14, 1  ;;  %v1102_v4 = vadd.f32 %v1094_v6, %v1084_v63  ;;  %v2251_v6 = vstv %s1442_s9  ;;  %v448_v14 = vmul.f32 %v2193_v51, %v1762_v33 }
 0x13e   : > { %v1110_v47 = vsel %vm744_vm0, %v1108_v9, %v1109_v11  ;;  %v1085_v9 = vadd.f32 %v2174_v37, %v1067_v50 }
 0x141   : > { %v840_v41 = vpop.permute.xlu1 %839  ;;  %v457_v57 = vpop.permute.xlu0 %456 }
 0x142   : > { %v462_v38 = vadd.f32 %v457_v57, %v449_v36  ;;  %v470_v61 = vpop.permute.xlu2 %469  ;;  %v831_v57 = vmul.f32 %v1894_v45, %v2193_v51 }
 0x144   : > { %v475_v18 = vadd.f32 %v470_v61, %v462_v38  ;;  %v1120_v38 = vrot.slane %v1102_v4, 2  ;;  %v833_v53 = vadd.f32 %v831_v57, %v2075_v0  ;;  %v699_v57 = vmul.f32 %v2198_v55, %v1948_v31 }
 0x146   : > { %v752_v21 = vadd.f32 %v747_v29, %v475_v18  ;;  %v845_v37 = vadd.f32 %v840_v41, %v833_v53  ;;  %v654_v41 = vmul.f32 %v1790_v43, %v1979_v20 }
 0x149   : > { %v730_v22 = vpop.permute.xlu1 %729  ;;  %v2213_v62 = vpop.permute.xlu0 %669 }
 0x14a   : > { %v738_v42 = vadd.f32 %v730_v22, %v719_v35  ;;  %v689_v2 = vpop.permute.xlu2 %688  ;;  %v2254_v35 = vstv %s1443_s10 }
 0x14c   : > { %v758_v46 = vrot.slane %v738_v42, 2 }
 0x14e   : > { %v760_v58 = vsel %vm757_vm1, %v758_v46, %v759_v15 }
 0x14f   : > { %v765_v1 = vadd.f32 %v760_v58, %v752_v21 }
 0x151   : > { %v2233_v29 = vpop.permute.xlu1 %1037  ;;  %v933_v12 = vpop.permute.xlu0 %932  ;;  %v768_v45 = vadd.f32 %v2251_v6, %v765_v1  ;;  %v657_v1 = vadd.f32 %v654_v41, %v2098_v19 }
 0x152   : > { %v826_v40 = vpop.permute.xlu2 %825 }
 0x153   : > { %v773_v0 = vmul.f32 %v2254_v35, %v768_v45  ;;  %vm770_vm2 = vcmp.ge.f32.partialorder %v768_v45, 0.0  ;;  %v676_v43 = vadd.f32 %v2213_v62, %v657_v1  ;;  %v806_v62 = vadd.f32 %v804_v52, %v2172_v26 }
 0x155   : > { %v775_v58 = vsel %vm770_vm2, %v768_v45, %v773_v0  ;;  %v695_v4 = vadd.f32 %v689_v2, %v676_v43  ;;  %v1513_v45 = vld [vmem:[%s1661_s15 + $0x20] sm:$0xff] }
 0x159   : > { %v2240_v54 = vpop.permute.xlu1 %427  ;;  %v1096_v36 = vpop.permute.xlu0 %1095 }
 0x15a   : > { %v2244_v16 = vadd.f32 %v1096_v36, %v1085_v9  ;;  %v602_v21 = vpop.permute.xlu2 %601  ;;  %v939_v9 = vadd.f32 %v933_v12, %v2189_v5  ;;  %v1023_v5 = vmul.f32 %v1979_v20, %v1948_v31 }
 0x15c   : > { %v1121_v24 = vrot.slane %v2244_v16, 2 }
 0x15e   : > { %v1122_v17 = vsel %vm757_vm1, %v1120_v38, %v1121_v24  ;;  %v945_v38 = vadd.f32 %v942_v28, %v939_v9 }
 0x161   : > { %v852_v61 = vpop.permute.xlu1 %851  ;;  %v814_v30 = vpop.permute.xlu0 %813 }
 0x162   : > { %v857_v18 = vadd.f32 %v852_v61, %v845_v37  ;;  %v1080_v27 = vpop.permute.xlu2 %1079  ;;  %v818_v12 = vadd.f32 %v814_v30, %v806_v62  ;;  %v702_v61 = vadd.f32 %v699_v57, %v695_v4  ;;  %v1451_v62 = vld [vmem:[%s2340_s2 + $0x8] sm:$0xff] }
 0x164   : > { %v1115_v3 = vadd.f32 %v1110_v47, %v857_v18  ;;  %v567_v47 = vmul.f32 %v2129_v59, %v1948_v31  ;;  %v832_v31 = vmul.f32 %v1891_v44, %v2193_v51 }
 0x166   : > { %v1127_v22 = vadd.f32 %v1122_v17, %v1115_v3  ;;  %v570_v60 = vadd.f32 %v567_v47, %v563_v23  ;;  %v417_v3 = vmul.f32 %v1513_v45, %v1992_v25  ;;  %v1065_v25 = vmul.f32 %v2091_v13, %v2198_v55 }
 0x168   : > { %v1129_v42 = vadd.f32 %v1127_v22, %v2251_v6  ;;  %v1026_v22 = vadd.f32 %v1023_v5, %v2116_v48  ;;  %v419_v56 = vadd.f32 %v417_v3, %v2176_v49 }
 0x169   : > { %v441_v32 = vpop.permute.xlu1 %440  ;;  %v1056_v10 = vpop.permute.xlu0 %1055 }
 0x16a   : > { %vm1131_vm3 = vcmp.ge.f32.partialorder %v1129_v42, 0.0  ;;  %v1133_v46 = vmul.f32 %v1129_v42, %v2254_v35  ;;  %v734_v17 = vpop.permute.xlu2 %733  ;;  %v1044_v20 = vadd.f32 %v2233_v29, %v1026_v22  ;;  %v432_v48 = vadd.f32 %v2240_v54, %v419_v56 }
 0x16c   : > { %v1135_v8 = vsel %vm1131_vm3, %v1129_v42, %v1133_v46  ;;  %v830_v42 = vadd.f32 %v826_v40, %v818_v12  ;;  %v1062_v40 = vadd.f32 %v1056_v10, %v1044_v20  ;;  %v445_v49 = vadd.f32 %v441_v32, %v432_v48 }
 0x16d   : > { %v1137_v34 = vmax.f32 %v775_v58, %v1135_v8 }
 0x16e   : > { %v834_v46 = vadd.f32 %v832_v31, %v830_v42 }
 0x16f   : > { %1444 = vmatmul.msk.f32.vlgmr.msra.gmra.mxu0 %vm1141_vm4, %v1137_v34  ;;  %1448 = vmatmul.msk.f32.vlgmr.msra.gmra.mxu1 %vm1141_vm4, %v1137_v34  ;;  %v450_v34 = vadd.f32 %v448_v14, %v445_v49 }
 0x171   : > { %v957_v63 = vpop.permute.xlu1 %956  ;;  %v583_v50 = vpop.permute.xlu0 %582 }
 0x172   : > { %v589_v19 = vadd.f32 %v583_v50, %v570_v60  ;;  %v963_v37 = vadd.f32 %v957_v63, %v945_v38  ;;  %v854_v47 = vpop.permute.xlu2 %853 }
 0x174   : > { %v608_v36 = vadd.f32 %v602_v21, %v589_v19 }
 0x176   : > { %v748_v53 = vrot.slane %v608_v36, 1 }
 0x178   : > { %v749_v59 = vsel %vm744_vm0, %v746_v7, %v748_v53 }
 0x179   : > { %v975_v2 = vpop.permute.xlu1 %974  ;;  %v715_v18 = vpop.permute.xlu0 %714 }
 0x17a   : > { %v981_v21 = vadd.f32 %v975_v2, %v963_v37  ;;  %v721_v26 = vadd.f32 %v715_v18, %v702_v61 }
 0x17c   : > { %v1111_v0 = vrot.slane %v981_v21, 1  ;;  %v740_v41 = vadd.f32 %v734_v17, %v721_v26 }
 0x17e   : > { %v761_v7 = vrot.slane %v740_v41, 2  ;;  %v1112_v30 = vsel %vm744_vm0, %v1109_v11, %v1111_v0  ;;  %v1068_v11 = vadd.f32 %v1065_v25, %v1062_v40 }
 0x180   : > { %v762_v44 = vsel %vm757_vm1, %v759_v15, %v761_v7  ;;  %v1086_v55 = vadd.f32 %v1080_v27, %v1068_v11 }
 0x181   : > { %v842_v29 = vpop.permute.xlu1 %841  ;;  %v459_v23 = vpop.permute.xlu0 %458 }
 0x182   : > { %v846_v58 = vadd.f32 %v842_v29, %v834_v46  ;;  %v463_v54 = vadd.f32 %v459_v23, %v450_v34 }
 0x184   : > { %v858_v8 = vadd.f32 %v854_v47, %v846_v58 }
 0x186   : > { %v1116_v13 = vadd.f32 %v1112_v30, %v858_v8 }
 0x189   : > { %v472_v10 = vpop.permute.xlu1 %471  ;;  %v1098_v1 = vpop.permute.xlu0 %1097 }
 0x18a   : > { %v476_v43 = vadd.f32 %v472_v10, %v463_v54  ;;  %v1104_v60 = vadd.f32 %v1098_v1, %v1086_v55 }
 0x18c   : > { %v753_v39 = vadd.f32 %v749_v59, %v476_v43  ;;  %v1123_v63 = vrot.slane %v1104_v60, 2 }
 0x18e   : > { %v766_v15 = vadd.f32 %v762_v44, %v753_v39  ;;  %v1124_v32 = vsel %vm757_vm1, %v1121_v24, %v1123_v63 }
 0x18f   : > { %v1128_v50 = vadd.f32 %v1124_v32, %v1116_v13 }
 0x190   : > { %v769_v33 = vadd.f32 %v2251_v6, %v766_v15 }
 0x191   : > { %v1130_v51 = vadd.f32 %v1128_v50, %v2251_v6 }
 0x192   : > { %vm771_vm5 = vcmp.ge.f32.partialorder %v769_v33, 0.0  ;;  %v774_v27 = vmul.f32 %v2254_v35, %v769_v33 }
 0x193   : > { %vm1132_vm6 = vcmp.ge.f32.partialorder %v1130_v51, 0.0  ;;  %v1134_v9 = vmul.f32 %v1130_v51, %v2254_v35  ;;  %v1199_v35 = vld [vmem:[%s2340_s2] sm:$0xff] }
 0x194   : > { %v776_v52 = vsel %vm771_vm5, %v769_v33, %v774_v27 }
 0x195   : > { %v1136_v28 = vsel %vm1132_vm6, %v1130_v51, %v1134_v9 }
 0x196   : > { %v1138_v19 = vmax.f32 %v776_v52, %v1136_v28 }
 0x198   : > { %1445 = vmatmul.msk.f32.gmra.mxu0 %vm1141_vm4, %v1138_v19  ;;  %1449 = vmatmul.msk.f32.gmra.mxu1 %vm1141_vm4, %v1138_v19 }
 0x1ec   : > { %v1165_v16 = vpop.f32.mrf.mxu0  ;;  %v1191_v24 = vpop.f32.mrf.mxu1 }
 0x1ed   : > { %v1197_v57 = vmax.f32 %v1165_v16, %v1191_v24 }
 0x215   : > { %v1168_v4 = vpop.f32.mrf.mxu0  ;;  %v1194_v6 = vpop.f32.mrf.mxu1 }
 0x216   : > { %v1198_v36 = vmax.f32 %v1168_v4, %v1194_v6 }
 0x218   : > { %1217 = vmatpush.msra.mxu2 %v1198_v36  ;;  %1242 = vmatpush.msra.mxu3 %v1198_v36 }
 0x21a   : > { %1218 = vmatpush.msra.mxu2 %v1197_v57  ;;  %1243 = vmatpush.msra.mxu3 %v1197_v57 }
 0x21b   : > { %1450 = vmatmul.msk.f32.vlgmr.msra.gmra.mxu2 %vm1141_vm4, %v1199_v35  ;;  %1452 = vmatmul.msk.f32.vlgmr.msra.gmra.mxu3 %vm1141_vm4, %v1451_v62 }
 0x29e   : > { %v1220_v38 = vpop.f32.mrf.mxu2  ;;  %v1245_v53 = vpop.f32.mrf.mxu3 }
 0x29f   : > { %v1248_v17 = vmax.f32 %v1220_v38, %v1245_v53 }
 0x2a1   : > { %1250 = vst.msk [vmem:[%s338_s26] sm:$0xff] %vm1249_vm7, %v1248_v17 }
 0x2a2 PF: > { %s16_s22 = sadd.s32 1, %s1571_s22   ;;  %s2344_s18 = smov %s1563_s20 }
 0x2a3   : > { %p13_p12 = scmp.ge.s32.totalorder %s16_s22, 10   ;;  %s2345_s19 = smov %s1567_s21 }
 0x2a4   : > { %s2346_s20 = smov %s2349_s24  ;;  %s2347_s21 = smov %s2353_s25 }
 0x2a5   :  { %15 = sbr.rel (!%p13_p12) target bundleno = 3 (0x3), region = 84 }
 0x2aa   :  { %1284 = vsyncpa [#allocation3], 1 }
 0x2ab   :  { %1286 = vsyncpa [#allocation3 + $0x1], 1 }

// kernel: _lambda_.4
= control target key start
LH: loop header
LB: loop body
LE: loop exit
PB: predicated region body
PF: predicated region fallthrough
CT: control target
= control target key end

     0   :  { %10 = vsyncpa [#allocation3], 0  ;;  %s2253_s18 = smov 0   ;;  %s2255_s19 = smov 0   ;;  %s3555_s0 = inlined_call_operand.vmem [shape: f32[29], index: 0, kind: input, shape index: {}]   ;;  %s3556_s1 = inlined_call_operand.vmem [shape: f32[2,32,16], index: 1, kind: input, shape index: {}]   ;;  %s3557_s2 = inlined_call_operand.vmem [shape: f32[2,16,32], index: 2, kind: input, shape index: {}]   ;;  %s3558_s3 = inlined_call_operand.vmem [shape: f32[2,18,40,34], index: 3, kind: input, shape index: {}, may-alias: {3,4}]   ;;  %s3559_s4 = inlined_call_operand.vmem [shape: f32[2,18,40,34], index: 4, kind: input, shape index: {}, may-alias: {3,4}]   ;;  %s3560_s5 = inlined_call_operand.vmem [shape: f32[2,8,16,16], index: 5, kind: output, shape index: {}]  }
   0x1   :  { %s2257_s20 = smov 0   ;;  %s2259_s21 = smov 0  }
   0x2   :  { %s2261_s22 = smov 0  }
   0x3 LB: > { %s2009_s23 = sadd.s32 4294967295, %s2218_s22   ;;  %s31_s24 = sadd.s32 1, %s2210_s20  ;;  %s2218_s22 = sphi %s2261_s22, %s16_s22   ;;  %s2214_s21 = sphi %s2259_s21, %s3629_s21   ;;  %s2210_s20 = sphi %s2257_s20, %s3628_s20   ;;  %s2206_s19 = sphi %s2255_s19, %s3627_s19   ;;  %s2202_s18 = sphi %s2253_s18, %s3626_s18  }
   0x4   : > { %p33_p0 = scmp.ge.s32.totalorder %s31_s24, 8  ;;  %s35_s25 = sadd.s32 1, %s2214_s21 }
   0x5   : > { %p2011_p1 = scmp.ge.s32.totalorder %s2218_s22, 1  ;;  %p191_p2 = scmp.lt.s32.totalorder %s2218_s22, 17 }
   0x6   : > { %s3631_s24 = smov (%p33_p0, %s31_s24), 0  ;;  %s3633_s25 = smov (!%p33_p0, %s35_s25), %s2214_s21 }
   0x7   : > { %p192_p3 = pnand %p2011_p1, %p191_p2  ;;  %p37_p4 = scmp.ge.s32.totalorder %s3633_s25, 2 }
   0x8   : > { %p2102_p5 = scmp.eq.s32.totalorder %s2009_s23, 0  ;;  %s203_s28 = sshll.u32 %s3555_s0, 4  ;;  %s204_s28 = int_to_ptr.vmem [resolvable:$true] %s203_s28 }
   0x9   : > { %p2098_p6 = pneg %p192_p3  ;;  %s3635_s25 = smov (%p37_p4, %s3633_s25), 0 }
   0xa   : > { %s2220_s29 = smov [#allocation2]   ;;  %252 = sbr.rel (%p192_p3) target bundleno = 881 (0x371), region = 40 }
   0xb   : > { %p2099_p7 = pnand %p2102_p5, %p2098_p6 }
   0xd   : > { %2101 = dma.vmem_to_smem (!%p2099_p7), %s204_s28, 16, %s2220_s29, [#allocation3]  }
   0xf   : > { %2197 = dma.done.wait (%p2102_p5), [#allocation3], 16  }
  0x10   : > { %2199 = vsyncadd (%p2102_p5), [#allocation3], 4294967280 }
  0x11   : > { %259 = sfence }
  0x12   : > { %s2290_s30 = sshll.u32 %s2202_s18, 1  ;;  %p307_p8 = scmp.lt.s32.totalorder %s2206_s19, 1  ;;  %vm1005_vm0 = vcmask 1046528   ;;  %vm1028_vm1 = vcmask 1045504   ;;  %vm1706_vm4 = vcmask 261120   ;;  %vm1851_vm11 = vcmask 130048  }
  0x13   : > { %p309_p9 = scmp.lt.s32.totalorder %s2290_s30, 17  ;;  %s2033_s9 = sld [smem:[#allocation2 + $0x1]] }
  0x14   : > { %s3637_s19 = smov (!%p307_p8, %s2206_s19), 1  ;;  %s2034_s15 = sld [smem:[#allocation2 + $0x2]] }
  0x15   : > { %s310_s6 = scalar_select %p309_p9, %s2290_s30, 17 }
  0x16   : > { %s2092_s7 = smul.u32 90, %s3637_s19  ;;  %s2221_s16 = smov 127  }
  0x17   : > { %s2091_s8 = smul.u32 5, %s310_s6  ;;  %s2222_s17 = smov 126  }
  0x18   : > { %s2042_s23 = sld [smem:[#allocation2 + $0xa]]  ;;  %s2082_s26 = sadd.s32 2, %s2290_s30 }
  0x19   : > { %s313_s10 = sadd.s32 %s2092_s7, %s2091_s8  ;;  %v2307_v1 = vstv %s2033_s9  ;;  %p321_p10 = scmp.lt.s32.totalorder %s2082_s26, 17 }
  0x1a   : > { %s2017_s11 = sshll.u32 %s313_s10, 3  ;;  %v2318_v5 = vstv %s2034_s15  ;;  %s2043_s27 = sld [smem:[#allocation2 + $0xb]] }
  0x1b   : > { %s2302_s14 = scalar_lea.vmem %s3558_s3, %s2017_s11  ;;  %s3639_s26 = smov (!%p321_p10, %s2082_s26), 17 }
  0x1c   : > { %v2305_v0 = vld [vmem:[%s2302_s14 + $0x10] sm:$0xff]  ;;  %v2310_v2 = vld [vmem:[%s2302_s14] sm:$0xff]  ;;  %v2321_v6 = vld [vmem:[%s2302_s14 + $0x18] sm:$0xff]  ;;  %s2093_s28 = smul.u32 5, %s3639_s26  ;;  %s2051_s30 = sld [smem:[#allocation2 + $0x13]] }
  0x1d   : > { %v407_v3 = vmul.f32 %v2307_v1, %v2305_v0  ;;  %v405_v4 = vmul.f32 %v2307_v1, %v2310_v2  ;;  %v2324_v7 = vld [vmem:[%s2302_s14 + $0x8] sm:$0xff]  ;;  %v430_v8 = vmul.f32 %v2318_v5, %v2310_v2  ;;  %v408_v9 = vmul.f32 %v2307_v1, %v2321_v6  ;;  %v2353_v17 = vld [vmem:[%s2302_s14 + $0x30] sm:$0xff]  ;;  %v2356_v18 = vld [vmem:[%s2302_s14 + $0x38] sm:$0xff]  ;;  %s2052_s10 = sld [smem:[#allocation2 + $0x14]]  ;;  %p333_p11 = scmp.lt.s32.totalorder %s2202_s18, 7 }
  0x1e   : > { %v406_v10 = vmul.f32 %v2307_v1, %v2324_v7  ;;  %v431_v11 = vmul.f32 %v2318_v5, %v2324_v7  ;;  %v433_v12 = vmul.f32 %v2318_v5, %v2321_v6  ;;  %v432_v13 = vmul.f32 %v2318_v5, %v2305_v0  ;;  %v2344_v14 = vld [vmem:[%s2302_s14 + $0x28] sm:$0xff]  ;;  %v2364_v21 = vld [vmem:[%s2302_s14 + $0x40] sm:$0xff]  ;;  %s325_s29 = sadd.s32 %s2093_s28, %s2092_s7  ;;  %s2036_s11 = sld [smem:[#allocation2 + $0x4]] }
  0x1f   : > { %417 = vrot.lane.b32.xlu1 %v407_v3, %s2221_s16  ;;  %413 = vrot.lane.b32.xlu0 %v405_v4, %s2221_s16  ;;  %v2346_v15 = vstv %s2042_s23  ;;  %s2019_s6 = sshll.u32 %s325_s29, 3  ;;  %s2037_s12 = sld [smem:[#allocation2 + $0x5]]  ;;  %v2443_v46 = vld [vmem:[%s2302_s14 + $0x20] sm:$0xff] }
  0x20   : > { %438 = vrot.lane.b32.xlu2 %v430_v8, %s2222_s17  ;;  %v464_v16 = vmul.f32 %v2344_v14, %v2346_v15  ;;  %v466_v19 = vmul.f32 %v2356_v18, %v2346_v15  ;;  %v465_v20 = vmul.f32 %v2353_v17, %v2346_v15  ;;  %v467_v22 = vmul.f32 %v2364_v21, %v2346_v15  ;;  %s2382_s9 = scalar_lea.vmem %s3559_s4, %s2019_s6  ;;  %s2045_s13 = sld [smem:[#allocation2 + $0xd]]  ;;  %v2482_v60 = vld [vmem:[%s2302_s14 + $0x48] sm:$0xff] }
  0x21   : > { %v2372_v23 = vstv %s2043_s27  ;;  %v2389_v27 = vld [vmem:[%s2382_s9] sm:$0xff]  ;;  %v2399_v31 = vld [vmem:[%s2382_s9 + $0x8] sm:$0xff]  ;;  %v2406_v33 = vld [vmem:[%s2382_s9 + $0x10] sm:$0xff]  ;;  %s2046_s15 = sld [smem:[#allocation2 + $0xe]]  ;;  %s3641_s18 = smov (!%p333_p11, %s2202_s18), 7 }
  0x22   : > { %v490_v24 = vmul.f32 %v2353_v17, %v2372_v23  ;;  %v489_v25 = vmul.f32 %v2344_v14, %v2372_v23  ;;  %v491_v26 = vmul.f32 %v2356_v18, %v2372_v23  ;;  %v2391_v28 = vstv %s2051_s30  ;;  %v2409_v34 = vld [vmem:[%s2382_s9 + $0x18] sm:$0xff]  ;;  %s2054_s23 = sld [smem:[#allocation2 + $0x16]] }
  0x23   : > { %v523_v29 = vmul.f32 %v2391_v28, %v2389_v27  ;;  %v492_v30 = vmul.f32 %v2364_v21, %v2372_v23  ;;  %v524_v32 = vmul.f32 %v2391_v28, %v2399_v31  ;;  %v526_v35 = vmul.f32 %v2391_v28, %v2409_v34  ;;  %s2039_s26 = sld [smem:[#allocation2 + $0x7]] }
  0x24   : > { %v525_v36 = vmul.f32 %v2391_v28, %v2406_v33  ;;  %v2416_v37 = vstv %s2052_s10  ;;  %v2431_v42 = vstv %s2036_s11  ;;  %s2040_s27 = sld [smem:[#allocation2 + $0x8]] }
  0x25   : > { %v548_v38 = vmul.f32 %v2416_v37, %v2389_v27  ;;  %v550_v39 = vmul.f32 %v2416_v37, %v2406_v33  ;;  %v549_v40 = vmul.f32 %v2416_v37, %v2399_v31  ;;  %v551_v41 = vmul.f32 %v2416_v37, %v2409_v34  ;;  %s2048_s28 = sld [smem:[#allocation2 + $0x10]] }
  0x26   : > { %v580_v43 = vmul.f32 %v2431_v42, %v2324_v7  ;;  %v579_v44 = vmul.f32 %v2431_v42, %v2310_v2  ;;  %v581_v45 = vmul.f32 %v2431_v42, %v2305_v0  ;;  %v583_v47 = vmul.f32 %v2431_v42, %v2443_v46  ;;  %s2035_s29 = sld [smem:[#allocation2 + $0x3]] }
  0x27   : > { %419 = vrot.lane.b32.xlu1 %v408_v9, %s2221_s16  ;;  %415 = vrot.lane.b32.xlu0 %v406_v10, %s2221_s16  ;;  %v582_v48 = vmul.f32 %v2431_v42, %v2321_v6  ;;  %v2450_v49 = vstv %s2037_s12  ;;  %v2465_v54 = vstv %s2045_s13  ;;  %s2044_s30 = sld [smem:[#allocation2 + $0xc]] }
  0x28   : > { %440 = vrot.lane.b32.xlu2 %v431_v11, %s2222_s17  ;;  %v610_v50 = vmul.f32 %v2450_v49, %v2310_v2  ;;  %v612_v51 = vmul.f32 %v2450_v49, %v2305_v0  ;;  %v611_v52 = vmul.f32 %v2450_v49, %v2324_v7  ;;  %v613_v53 = vmul.f32 %v2450_v49, %v2321_v6  ;;  %s2049_s6 = sld [smem:[#allocation2 + $0x11]] }
  0x29   : > { %v652_v55 = vmul.f32 %v2344_v14, %v2465_v54  ;;  %v614_v56 = vmul.f32 %v2450_v49, %v2443_v46  ;;  %v653_v57 = vmul.f32 %v2353_v17, %v2465_v54  ;;  %v655_v58 = vmul.f32 %v2364_v21, %v2465_v54  ;;  %s2053_s7 = sld [smem:[#allocation2 + $0x15]] }
  0x2a   : > { %v654_v59 = vmul.f32 %v2356_v18, %v2465_v54  ;;  %v656_v62 = vmul.f32 %v2482_v60, %v2465_v54  ;;  %v2490_v63 = vstv %s2046_s15  ;;  %s2038_s8 = sld [smem:[#allocation2 + $0x6]] }
  0x2b   : > { %v684_v3 = vmul.f32 %v2353_v17, %v2490_v63  ;;  %v683_v4 = vmul.f32 %v2344_v14, %v2490_v63  ;;  %v685_v9 = vmul.f32 %v2356_v18, %v2490_v63  ;;  %v687_v10 = vmul.f32 %v2482_v60, %v2490_v63  ;;  %s2055_s10 = sld [smem:[#allocation2 + $0x17]] }
  0x2c   : > { %v686_v11 = vmul.f32 %v2364_v21, %v2490_v63  ;;  %s2047_s11 = sld [smem:[#allocation2 + $0xf]] }
  0x2d   : > { %s2057_s12 = sld [smem:[#allocation2 + $0x19]] }
  0x2e   : > { %s370_s13 = sld [smem:[#allocation2]] }
  0x2f   : > { %444 = vrot.lane.b32.xlu1 %v433_v12, %s2222_s17  ;;  %442 = vrot.lane.b32.xlu0 %v432_v13, %s2222_s17  ;;  %v2508_v12 = vstv %s2054_s23  ;;  %s2058_s15 = sld [smem:[#allocation2 + $0x1a]] }
  0x30   : > { %472 = vrot.lane.b32.xlu2 %v464_v16, %s2221_s16  ;;  %v725_v16 = vmul.f32 %v2508_v12, %v2389_v27  ;;  %s2041_s23 = sld [smem:[#allocation2 + $0x9]] }
  0x37   : > { %476 = vrot.lane.b32.xlu1 %v466_v19, %s2221_s16  ;;  %474 = vrot.lane.b32.xlu0 %v465_v20, %s2221_s16 }
  0x38   : > { %478 = vrot.lane.b32.xlu2 %v467_v22, %s2221_s16  ;;  %v727_v22 = vmul.f32 %v2508_v12, %v2406_v33 }
  0x3f   : > { %499 = vrot.lane.b32.xlu1 %v490_v24, %s2222_s17  ;;  %497 = vrot.lane.b32.xlu0 %v489_v25, %s2222_s17  ;;  %v726_v24 = vmul.f32 %v2508_v12, %v2399_v31 }
  0x40   : > { %501 = vrot.lane.b32.xlu2 %v491_v26, %s2222_s17  ;;  %v728_v26 = vmul.f32 %v2508_v12, %v2409_v34 }
  0x47   : > { %531 = vrot.lane.b32.xlu1 %v523_v29, %s2221_s16  ;;  %503 = vrot.lane.b32.xlu0 %v492_v30, %s2222_s17 }
  0x48   : > { %533 = vrot.lane.b32.xlu2 %v524_v32, %s2221_s16  ;;  %v1234_v32 = vmul.f32 %v2353_v17, %v2431_v42 }
  0x4f   : > { %537 = vrot.lane.b32.xlu1 %v526_v35, %s2221_s16  ;;  %535 = vrot.lane.b32.xlu0 %v525_v36, %s2221_s16  ;;  %v1233_v35 = vmul.f32 %v2344_v14, %v2431_v42  ;;  %v2540_v36 = vstv %s2039_s26  ;;  %s2056_s26 = sld [smem:[#allocation2 + $0x18]] }
  0x50   : > { %556 = vrot.lane.b32.xlu2 %v548_v38, %s2222_s17 }
  0x57   : > { %560 = vrot.lane.b32.xlu1 %v550_v39, %s2222_s17  ;;  %558 = vrot.lane.b32.xlu0 %v549_v40, %s2222_s17  ;;  %v793_v39 = vmul.f32 %v2540_v36, %v2310_v2 }
  0x58   : > { %562 = vrot.lane.b32.xlu2 %v551_v41, %s2222_s17 }
  0x5f   : > { %591 = vrot.lane.b32.xlu1 %v580_v43, %s2221_s16  ;;  %589 = vrot.lane.b32.xlu0 %v579_v44, %s2221_s16  ;;  %v1263_v43 = vmul.f32 %v2344_v14, %v2450_v49  ;;  %v794_v44 = vmul.f32 %v2540_v36, %v2324_v7 }
  0x60   : > { %593 = vrot.lane.b32.xlu2 %v581_v45, %s2221_s16 }
  0x67   : > { %597 = vrot.lane.b32.xlu1 %v583_v47, %s2221_s16  ;;  %595 = vrot.lane.b32.xlu0 %v582_v48, %s2221_s16  ;;  %v1264_v47 = vmul.f32 %v2353_v17, %v2450_v49 }
  0x68   : > { %620 = vrot.lane.b32.xlu2 %v610_v50, %s2222_s17 }
  0x6f   : > { %624 = vrot.lane.b32.xlu1 %v612_v51, %s2222_s17  ;;  %622 = vrot.lane.b32.xlu0 %v611_v52, %s2222_s17  ;;  %v1439_v51 = vmul.f32 %v2353_v17, %v2540_v36  ;;  %v1438_v52 = vmul.f32 %v2344_v14, %v2540_v36 }
  0x70   : > { %626 = vrot.lane.b32.xlu2 %v613_v53, %s2222_s17 }
  0x77   : > { %662 = vrot.lane.b32.xlu1 %v652_v55, %s2221_s16  ;;  %628 = vrot.lane.b32.xlu0 %v614_v56, %s2222_s17  ;;  %v1068_v55 = vmul.f32 %v2344_v14, %v2307_v1  ;;  %v2578_v56 = vstv %s2040_s27  ;;  %s2050_s27 = sld [smem:[#allocation2 + $0x12]] }
  0x78   : > { %664 = vrot.lane.b32.xlu2 %v653_v57, %s2221_s16 }
  0x7a   : > { %v2484_v61 = vpop.permute.xlu2 %438 }
  0x7f   : > { %668 = vrot.lane.b32.xlu1 %v655_v58, %s2221_s16  ;;  %666 = vrot.lane.b32.xlu0 %v654_v59, %s2221_s16  ;;  %v825_v59 = vmul.f32 %v2578_v56, %v2324_v7 }
  0x80   : > { %670 = vrot.lane.b32.xlu2 %v656_v62, %s2221_s16  ;;  %v824_v62 = vmul.f32 %v2578_v56, %v2310_v2 }
  0x82   : > { %v2497_v8 = vpop.permute.xlu2 %440 }
  0x83   : > { %3568 = vst [vmem:[#allocation5_spill] sm:$0xff] %v2497_v8 }
  0x87   : > { %695 = vrot.lane.b32.xlu1 %v684_v3, %s2222_s17  ;;  %693 = vrot.lane.b32.xlu0 %v683_v4, %s2222_s17  ;;  %v1468_v4 = vmul.f32 %v2344_v14, %v2578_v56 }
  0x88   : > { %697 = vrot.lane.b32.xlu2 %v685_v9, %s2222_s17 }
  0x8a   : > { %v2510_v13 = vpop.permute.xlu2 %472 }
  0x8f   : > { %701 = vrot.lane.b32.xlu1 %v687_v10, %s2222_s17  ;;  %699 = vrot.lane.b32.xlu0 %v686_v11, %s2222_s17  ;;  %v1092_v11 = vmul.f32 %v2344_v14, %v2318_v5 }
  0x90   : > { %735 = vrot.lane.b32.xlu2 %v725_v16, %s2221_s16  ;;  %v1469_v16 = vmul.f32 %v2353_v17, %v2578_v56 }
  0x91   : > { %v2516_v19 = vpop.permute.xlu1 %417  ;;  %v2518_v20 = vpop.permute.xlu0 %413 }
  0x92   : > { %3569 = vst [vmem:[#allocation6_spill] sm:$0xff] %v2516_v19  ;;  %v2525_v25 = vpop.permute.xlu2 %478  ;;  %v2841_v19 = vld [vmem:[%s2382_s9 + $0x20] sm:$0xff] }
  0x93   : > { %3570 = vst [vmem:[#allocation7_spill] sm:$0xff] %v2525_v25 }
  0x97   : > { %739 = vrot.lane.b32.xlu1 %v727_v22, %s2221_s16  ;;  %737 = vrot.lane.b32.xlu0 %v726_v24, %s2221_s16  ;;  %v1303_v24 = vmul.f32 %v2465_v54, %v2389_v27 }
  0x98   : > { %741 = vrot.lane.b32.xlu2 %v728_v26, %s2221_s16  ;;  %v2608_v26 = vstv %s2048_s28 }
  0x99   : > { %v2531_v29 = vpop.permute.xlu1 %419  ;;  %v2533_v30 = vpop.permute.xlu0 %415 }
  0x9a   : > { %3571 = vst [vmem:[#allocation8_spill] sm:$0xff] %v2531_v29  ;;  %v2542_v38 = vpop.permute.xlu2 %501 }
  0x9b   : > { %3572 = vst [vmem:[#allocation9_spill] sm:$0xff] %v2533_v30 }
  0x9c   : > { %3573 = vst [vmem:[#allocation10_spill] sm:$0xff] %v2542_v38 }
  0x9f   : > { %1245 = vrot.lane.b32.xlu1 %v1234_v32, %s2221_s16  ;;  %1243 = vrot.lane.b32.xlu0 %v1233_v35, %s2221_s16 }
  0xa0   : > { %803 = vrot.lane.b32.xlu2 %v793_v39, %s2221_s16  ;;  %v866_v39 = vmul.f32 %v2344_v14, %v2608_v26 }
  0xa1   : > { %v2548_v40 = vpop.permute.xlu1 %444  ;;  %v2550_v41 = vpop.permute.xlu0 %442 }
  0xa2   : > { %3574 = vst [vmem:[#allocation11_spill] sm:$0xff] %v2548_v40  ;;  %v2557_v45 = vpop.permute.xlu2 %533 }
  0xa3   : > { %3575 = vst [vmem:[#allocation12_spill] sm:$0xff] %v2550_v41 }
  0xa4   : > { %3576 = vst [vmem:[#allocation13_spill] sm:$0xff] %v2557_v45 }
  0xa7   : > { %1273 = vrot.lane.b32.xlu1 %v1263_v43, %s2222_s17  ;;  %805 = vrot.lane.b32.xlu0 %v794_v44, %s2221_s16  ;;  %v1304_v43 = vmul.f32 %v2465_v54, %v2399_v31 }
  0xa8   : > { %1275 = vrot.lane.b32.xlu2 %v1264_v47, %s2222_s17  ;;  %v867_v47 = vmul.f32 %v2353_v17, %v2608_v26 }
  0xa9   : > { %v2563_v48 = vpop.permute.xlu1 %476  ;;  %v2565_v50 = vpop.permute.xlu0 %474 }
  0xaa   : > { %3577 = vst [vmem:[#allocation14_spill] sm:$0xff] %v2563_v48  ;;  %v2572_v53 = vpop.permute.xlu2 %556  ;;  %v2816_v48 = vstv %s2057_s12  ;;  %s2020_s12 = sshll.u32 %s3641_s18, 1 }
  0xab   : > { %3578 = vst [vmem:[#allocation15_spill] sm:$0xff] %v2565_v50 }
  0xaf   : > { %1450 = vrot.lane.b32.xlu1 %v1439_v51, %s2221_s16  ;;  %1448 = vrot.lane.b32.xlu0 %v1438_v52, %s2221_s16 }
  0xb0   : > { %1076 = vrot.lane.b32.xlu2 %v1068_v55, %s2221_s16  ;;  %v2627_v55 = vstv %s2035_s29 }
  0xb1   : > { %v2580_v57 = vpop.permute.xlu1 %499  ;;  %v2582_v58 = vpop.permute.xlu0 %497 }
  0xb2   : > { %3579 = vst [vmem:[#allocation16_spill] sm:$0xff] %v2580_v57  ;;  %v2589_v3 = vpop.permute.xlu2 %562 }
  0xb3   : > { %3580 = vst [vmem:[#allocation17_spill] sm:$0xff] %v2589_v3  ;;  %v1333_v3 = vmul.f32 %v2490_v63, %v2389_v27 }
  0xb7   : > { %836 = vrot.lane.b32.xlu1 %v825_v59, %s2222_s17  ;;  %834 = vrot.lane.b32.xlu0 %v824_v62, %s2222_s17  ;;  %v1236_v59 = vmul.f32 %v2364_v21, %v2431_v42  ;;  %v1235_v62 = vmul.f32 %v2356_v18, %v2431_v42 }
  0xb8   : > { %1478 = vrot.lane.b32.xlu2 %v1468_v4, %s2222_s17 }
  0xb9   : > { %v2595_v9 = vpop.permute.xlu1 %531  ;;  %v2597_v10 = vpop.permute.xlu0 %503 }
  0xba   : > { %3581 = vst [vmem:[#allocation18_spill] sm:$0xff] %v2597_v10  ;;  %v594_v22 = vpop.permute.xlu2 %593 }
  0xbf   : > { %1100 = vrot.lane.b32.xlu1 %v1092_v11, %s2222_s17  ;;  %1480 = vrot.lane.b32.xlu0 %v1469_v16, %s2222_s17  ;;  %v573_v11 = vmul.f32 %v2627_v55, %v2310_v2  ;;  %v1237_v16 = vmul.f32 %v2482_v60, %v2431_v42  ;;  %v1508_v42 = vmul.f32 %v2608_v26, %v2389_v27 }
  0xc0   : > { %1313 = vrot.lane.b32.xlu2 %v1303_v24, %s2221_s16 }
  0xc1   : > { %v2610_v32 = vpop.permute.xlu1 %537  ;;  %v2612_v35 = vpop.permute.xlu0 %535 }
  0xc2   : > { %3582 = vst [vmem:[#allocation19_spill] sm:$0xff] %v2610_v32  ;;  %v621_v44 = vpop.permute.xlu2 %620 }
  0xc3   : > { %3583 = vst [vmem:[#allocation20_spill] sm:$0xff] %v2612_v35 }
  0xc7   : > { %876 = vrot.lane.b32.xlu1 %v866_v39, %s2221_s16  ;;  %1315 = vrot.lane.b32.xlu0 %v1304_v43, %s2221_s16 }
  0xc8   : > { %878 = vrot.lane.b32.xlu2 %v867_v47, %s2221_s16  ;;  %v1334_v47 = vmul.f32 %v2490_v63, %v2399_v31 }
  0xc9   : > { %v2623_v51 = vpop.permute.xlu1 %560  ;;  %v2625_v52 = vpop.permute.xlu0 %558 }
  0xca   : > { %3584 = vst [vmem:[#allocation21_spill] sm:$0xff] %v2623_v51  ;;  %v627_v4 = vpop.permute.xlu2 %626 }
  0xcb   : > { %3585 = vst [vmem:[#allocation22_spill] sm:$0xff] %v2625_v52 }
  0xcf   : > { %1249 = vrot.lane.b32.xlu1 %v1236_v59, %s2221_s16  ;;  %1247 = vrot.lane.b32.xlu0 %v1235_v62, %s2221_s16  ;;  %v576_v59 = vmul.f32 %v2627_v55, %v2321_v6 }
  0xd0   : > { %1251 = vrot.lane.b32.xlu2 %v1237_v16, %s2221_s16 }
  0xd1   : > { %v592_v24 = vpop.permute.xlu1 %591  ;;  %v590_v39 = vpop.permute.xlu0 %589 }
  0xd2   : > { %v604_v43 = vadd.f32 %v590_v39, %v573_v11  ;;  %v665_v52 = vpop.permute.xlu2 %664  ;;  %v1509_v39 = vmul.f32 %v2608_v26, %v2399_v31 }
  0xd4   : > { %v635_v32 = vadd.f32 %v621_v44, %v604_v43  ;;  %v1124_v44 = vmul.f32 %v2346_v15, %v2389_v27  ;;  %v575_v43 = vmul.f32 %v2627_v55, %v2305_v0 }
  0xd7   : > { %1345 = vrot.lane.b32.xlu1 %v1334_v47, %s2222_s17  ;;  %1343 = vrot.lane.b32.xlu0 %v1333_v3, %s2222_s17  ;;  %v574_v47 = vmul.f32 %v2627_v55, %v2324_v7 }
  0xd8   : > { %1518 = vrot.lane.b32.xlu2 %v1508_v42, %s2221_s16  ;;  %v2664_v42 = vstv %s2044_s30  ;;  %s2059_s30 = sld [smem:[#allocation2 + $0x1b]] }
  0xd9   : > { %v598_v62 = vpop.permute.xlu1 %597  ;;  %v596_v11 = vpop.permute.xlu0 %595  ;;  %v605_v45 = vadd.f32 %v592_v24, %v574_v47  ;;  %v642_v35 = vmul.f32 %v2353_v17, %v2664_v42  ;;  %v2675_v24 = vstv %s2049_s6 }
  0xda   : > { %v607_v16 = vadd.f32 %v596_v11, %v576_v59  ;;  %v671_v3 = vpop.permute.xlu2 %670  ;;  %v795_v59 = vmul.f32 %v2540_v36, %v2305_v0  ;;  %v606_v11 = vadd.f32 %v594_v22, %v575_v43  ;;  %v641_v43 = vmul.f32 %v2344_v14, %v2664_v42 }
  0xdc   : > { %v638_v51 = vadd.f32 %v627_v4, %v607_v16  ;;  %v797_v16 = vmul.f32 %v2540_v36, %v2443_v46 }
  0xdf   : > { %1132 = vrot.lane.b32.xlu1 %v1124_v44, %s2221_s16  ;;  %1520 = vrot.lane.b32.xlu0 %v1509_v39, %s2221_s16  ;;  %v796_v44 = vmul.f32 %v2540_v36, %v2321_v6  ;;  %v577_v39 = vmul.f32 %v2627_v55, %v2443_v46 }
  0xe0   : > { %807 = vrot.lane.b32.xlu2 %v795_v59, %s2221_s16  ;;  %v646_v59 = vadd.f32 %v641_v43, %v635_v32  ;;  %v643_v32 = vmul.f32 %v2356_v18, %v2664_v42  ;;  %v1266_v43 = vmul.f32 %v2364_v21, %v2450_v49 }
  0xe1   : > { %v625_v10 = vpop.permute.xlu1 %624  ;;  %v623_v25 = vpop.permute.xlu0 %622 }
  0xe2   : > { %v637_v38 = vadd.f32 %v625_v10, %v606_v11  ;;  %v636_v4 = vadd.f32 %v623_v25, %v605_v45  ;;  %v698_v47 = vpop.permute.xlu2 %697  ;;  %v897_v25 = vmul.f32 %v2344_v14, %v2675_v24  ;;  %v608_v45 = vadd.f32 %v598_v62, %v577_v39 }
  0xe3   : > { %v645_v11 = vmul.f32 %v2482_v60, %v2664_v42  ;;  %v644_v62 = vmul.f32 %v2364_v21, %v2664_v42 }
  0xe4   : > { %v647_v22 = vadd.f32 %v642_v35, %v636_v4 }
  0xe6   : > { %v678_v10 = vadd.f32 %v665_v52, %v647_v22  ;;  %v1265_v52 = vmul.f32 %v2356_v18, %v2450_v49 }
  0xe7   : > { %811 = vrot.lane.b32.xlu1 %v797_v16, %s2221_s16  ;;  %809 = vrot.lane.b32.xlu0 %v796_v44, %s2221_s16  ;;  %v898_v16 = vmul.f32 %v2353_v17, %v2675_v24 }
  0xe8   : > { %907 = vrot.lane.b32.xlu2 %v897_v25, %s2222_s17  ;;  %v649_v25 = vadd.f32 %v644_v62, %v638_v51  ;;  %v1441_v51 = vmul.f32 %v2364_v21, %v2540_v36 }
  0xe9   : > { %v663_v35 = vpop.permute.xlu1 %662  ;;  %v629_v4 = vpop.permute.xlu0 %628 }
  0xea   : > { %v677_v57 = vadd.f32 %v663_v35, %v646_v59  ;;  %v639_v50 = vadd.f32 %v629_v4, %v608_v45  ;;  %v736_v44 = vpop.permute.xlu2 %735  ;;  %v648_v45 = vadd.f32 %v643_v32, %v637_v38  ;;  %v1440_v4 = vmul.f32 %v2356_v18, %v2540_v36 }
  0xeb   : > { %v2707_v38 = vstv %s2053_s7 }
  0xec   : > { %v650_v22 = vadd.f32 %v645_v11, %v639_v50 }
  0xee   : > { %v681_v39 = vadd.f32 %v671_v3, %v650_v22  ;;  %v1267_v3 = vmul.f32 %v2482_v60, %v2450_v49  ;;  %v1538_v49 = vmul.f32 %v2675_v24, %v2389_v27 }
  0xef   : > { %1277 = vrot.lane.b32.xlu1 %v1265_v52, %s2222_s17  ;;  %909 = vrot.lane.b32.xlu0 %v898_v16, %s2222_s17  ;;  %v714_v16 = vmul.f32 %v2707_v38, %v2389_v27 }
  0xf0   : > { %1279 = vrot.lane.b32.xlu2 %v1266_v43, %s2222_s17 }
  0xf1   : > { %v669_v59 = vpop.permute.xlu1 %668  ;;  %v667_v50 = vpop.permute.xlu0 %666 }
  0xf2   : > { %v680_v11 = vadd.f32 %v669_v59, %v649_v25  ;;  %v679_v35 = vadd.f32 %v667_v50, %v648_v45  ;;  %v742_v22 = vpop.permute.xlu2 %741 }
  0xf4   : > { %v710_v52 = vadd.f32 %v698_v47, %v679_v35  ;;  %v1442_v47 = vmul.f32 %v2482_v60, %v2540_v36  ;;  %v1539_v35 = vmul.f32 %v2675_v24, %v2399_v31 }
  0xf7   : > { %1452 = vrot.lane.b32.xlu1 %v1440_v4, %s2221_s16  ;;  %1281 = vrot.lane.b32.xlu0 %v1267_v3, %s2222_s17 }
  0xf8   : > { %1454 = vrot.lane.b32.xlu2 %v1441_v51, %s2221_s16  ;;  %v1069_v51 = vmul.f32 %v2353_v17, %v2307_v1 }
  0xf9   : > { %v696_v62 = vpop.permute.xlu1 %695  ;;  %v694_v32 = vpop.permute.xlu0 %693 }
  0xfa   : > { %v709_v43 = vadd.f32 %v696_v62, %v678_v10  ;;  %v708_v25 = vadd.f32 %v694_v32, %v677_v57  ;;  %v2716_v59 = vpop.permute.xlu2 %803  ;;  %v717_v57 = vmul.f32 %v2707_v38, %v2409_v34  ;;  %v716_v62 = vmul.f32 %v2707_v38, %v2406_v33 }
  0xfb   : > { %v715_v32 = vmul.f32 %v2707_v38, %v2399_v31 }
  0xfc   : > { %v719_v45 = vadd.f32 %v714_v16, %v708_v25 }
  0xfe   : > { %v2718_v50 = vadd.f32 %v736_v44, %v719_v45  ;;  %v1071_v44 = vmul.f32 %v2364_v21, %v2307_v1 }
  0xff   : > { %1548 = vrot.lane.b32.xlu1 %v1538_v49, %s2222_s17  ;;  %1456 = vrot.lane.b32.xlu0 %v1442_v47, %s2221_s16  ;;  %v720_v47 = vadd.f32 %v715_v32, %v709_v43  ;;  %v828_v43 = vmul.f32 %v2578_v56, %v2443_v46 }
 0x100   : > { %1550 = vrot.lane.b32.xlu2 %v1539_v35, %s2222_s17 }
 0x101   : > { %v702_v10 = vpop.permute.xlu1 %701  ;;  %v700_v4 = vpop.permute.xlu0 %699 }
 0x102   : > { %v2726_v3 = vadd.f32 %v702_v10, %v681_v39  ;;  %v711_v36 = vadd.f32 %v700_v4, %v680_v11  ;;  %v1276_v25 = vpop.permute.xlu2 %1275  ;;  %v1148_v39 = vmul.f32 %v2372_v23, %v2389_v27  ;;  %v721_v11 = vadd.f32 %v716_v62, %v710_v52 }
 0x103   : > { %v826_v4 = vmul.f32 %v2578_v56, %v2305_v0  ;;  %v1229_v52 = vmul.f32 %v2353_v17, %v2627_v55 }
 0x104   : > { %3586 = vst [vmem:[#allocation23_spill] sm:$0xff] %v2726_v3  ;;  %v722_v16 = vadd.f32 %v717_v57, %v711_v36 }
 0x106   : > { %v2737_v49 = vadd.f32 %v742_v22, %v722_v16  ;;  %v827_v22 = vmul.f32 %v2578_v56, %v2321_v6 }
 0x107   : > { %1082 = vrot.lane.b32.xlu1 %v1071_v44, %s2221_s16  ;;  %1078 = vrot.lane.b32.xlu0 %v1069_v51, %s2221_s16  ;;  %v2761_v44 = vld [vmem:[%s2382_s9 + $0x30] sm:$0xff]  ;;  %v2764_v51 = vld [vmem:[%s2382_s9 + $0x28] sm:$0xff] }
 0x108   : > { %3587 = vst [vmem:[#allocation24_spill] sm:$0xff] %v2737_v49  ;;  %1156 = vrot.lane.b32.xlu2 %v1148_v39, %s2222_s17  ;;  %v1374_v0 = vmul.f32 %v2761_v44, %v2508_v12  ;;  %v1373_v32 = vmul.f32 %v2764_v51, %v2508_v12 }
 0x109   : > { %v740_v45 = vpop.permute.xlu1 %739  ;;  %v738_v35 = vpop.permute.xlu0 %737 }
 0x10a   : > { %v2743_v57 = vadd.f32 %v740_v45, %v721_v11  ;;  %v2745_v10 = vadd.f32 %v738_v35, %v720_v47  ;;  %v2752_v36 = vpop.permute.xlu2 %1076  ;;  %v1228_v11 = vmul.f32 %v2344_v14, %v2627_v55  ;;  %v1470_v45 = vmul.f32 %v2356_v18, %v2578_v56 }
 0x10c   : > { %3588 = vst [vmem:[#allocation25_spill] sm:$0xff] %v2743_v57 }
 0x10f   : > { %840 = vrot.lane.b32.xlu1 %v827_v22, %s2222_s17  ;;  %838 = vrot.lane.b32.xlu0 %v826_v4, %s2222_s17  ;;  %v1293_v22 = vmul.f32 %v2664_v42, %v2389_v27 }
 0x110   : > { %842 = vrot.lane.b32.xlu2 %v828_v43, %s2222_s17  ;;  %v1472_v43 = vmul.f32 %v2482_v60, %v2578_v56 }
 0x111   : > { %v1246_v6 = vpop.permute.xlu1 %1245  ;;  %v1244_v16 = vpop.permute.xlu0 %1243 }
 0x112   : > { %v1259_v62 = vadd.f32 %v1246_v6, %v1229_v52  ;;  %v1479_v47 = vpop.permute.xlu2 %1478  ;;  %v1258_v35 = vadd.f32 %v1244_v16, %v1228_v11  ;;  %v1471_v6 = vmul.f32 %v2364_v21, %v2578_v56 }
 0x114   : > { %v2771_v39 = vadd.f32 %v1276_v25, %v1259_v62 }
 0x117   : > { %1385 = vrot.lane.b32.xlu1 %v1374_v0, %s2221_s16  ;;  %1383 = vrot.lane.b32.xlu0 %v1373_v32, %s2221_s16  ;;  %v2786_v0 = vstv %s2038_s8 }
 0x118   : > { %1482 = vrot.lane.b32.xlu2 %v1470_v45, %s2222_s17  ;;  %v1433_v11 = vmul.f32 %v2344_v14, %v2786_v0  ;;  %v1093_v45 = vmul.f32 %v2353_v17, %v2318_v5 }
 0x119   : > { %v1274_v4 = vpop.permute.xlu1 %1273  ;;  %v806_v25 = vpop.permute.xlu0 %805 }
 0x11a   : > { %v1288_v52 = vadd.f32 %v1274_v4, %v1258_v35  ;;  %v1314_v32 = vpop.permute.xlu2 %1313  ;;  %v2796_v35 = vstv %s2055_s10 }
 0x11c   : > { %v1298_v62 = vadd.f32 %v1293_v22, %v1288_v52  ;;  %v756_v52 = vmul.f32 %v2796_v35, %v2389_v27 }
 0x11e   : > { %v2788_v16 = vadd.f32 %v1314_v32, %v1298_v62  ;;  %v787_v62 = vmul.f32 %v2786_v0, %v2310_v2 }
 0x11f   : > { %1486 = vrot.lane.b32.xlu1 %v1472_v43, %s2222_s17  ;;  %1484 = vrot.lane.b32.xlu0 %v1471_v6, %s2222_s17  ;;  %v1095_v43 = vmul.f32 %v2364_v21, %v2318_v5  ;;  %v788_v6 = vmul.f32 %v2786_v0, %v2324_v7 }
 0x120   : > { %1102 = vrot.lane.b32.xlu2 %v1093_v45, %s2222_s17  ;;  %v2811_v45 = vstv %s2047_s11 }
 0x121   : > { %v1451_v56 = vpop.permute.xlu1 %1450  ;;  %v1449_v22 = vpop.permute.xlu0 %1448  ;;  %v819_v49 = vadd.f32 %v806_v25, %v788_v6  ;;  %v856_v2 = vmul.f32 %v2353_v17, %v2811_v45  ;;  %v1498_v29 = vmul.f32 %v2811_v45, %v2389_v27 }
 0x122   : > { %v1463_v4 = vadd.f32 %v1449_v22, %v1433_v11  ;;  %v879_v57 = vpop.permute.xlu2 %878  ;;  %v757_v11 = vmul.f32 %v2796_v35, %v2399_v31  ;;  %v818_v22 = vadd.f32 %v2716_v59, %v787_v62  ;;  %v939_v59 = vmul.f32 %v2816_v48, %v2389_v27 }
 0x123   : > { %v1434_v62 = vmul.f32 %v2353_v17, %v2786_v0 }
 0x124   : > { %v1493_v32 = vadd.f32 %v1479_v47, %v1463_v4 }
 0x127   : > { %766 = vrot.lane.b32.xlu1 %v756_v52, %s2222_s17  ;;  %1106 = vrot.lane.b32.xlu0 %v1095_v43, %s2222_s17  ;;  %v2818_v52 = vstv %s370_s13  ;;  %v940_v43 = vmul.f32 %v2816_v48, %v2399_v31  ;;  %s2021_s13 = sshll.u32 %s3637_s19, 4 }
 0x128   : > { %3589 = vst [vmem:[#allocation26_spill] sm:$0xff] %v2818_v52  ;;  %768 = vrot.lane.b32.xlu2 %v757_v11, %s2222_s17  ;;  %v1064_v25 = vmul.f32 %v2344_v14, %v2818_v52  ;;  %v1305_v11 = vmul.f32 %v2465_v54, %v2406_v33 }
 0x129   : > { %v837_v7 = vpop.permute.xlu1 %836  ;;  %v835_v47 = vpop.permute.xlu0 %834 }
 0x12a   : > { %v850_v4 = vadd.f32 %v837_v7, %v819_v49  ;;  %v849_v40 = vadd.f32 %v835_v47, %v818_v22  ;;  %v2829_v49 = vpop.permute.xlu2 %1251  ;;  %v1088_v7 = vadd.f32 %v2752_v36, %v1064_v25  ;;  %v1464_v47 = vadd.f32 %v1451_v56, %v1434_v62 }
 0x12b   : > { %v855_v36 = vmul.f32 %v2344_v14, %v2811_v45  ;;  %v1294_v56 = vmul.f32 %v2664_v42, %v2399_v31 }
 0x12c   : > { %v861_v6 = vadd.f32 %v856_v2, %v850_v4 }
 0x12d   : > { %v860_v62 = vadd.f32 %v855_v36, %v849_v40  ;;  %v1579_v40 = vmul.f32 %v2761_v44, %v2816_v48 }
 0x12e   : > { %v2831_v22 = vadd.f32 %v879_v57, %v861_v6  ;;  %v1307_v57 = vmul.f32 %v2465_v54, %v2841_v19 }
 0x12f   : > { %951 = vrot.lane.b32.xlu1 %v940_v43, %s2221_s16  ;;  %949 = vrot.lane.b32.xlu0 %v939_v59, %s2221_s16  ;;  %v1306_v43 = vmul.f32 %v2465_v54, %v2409_v34  ;;  %v1503_v59 = vadd.f32 %v1498_v29, %v1493_v32  ;;  %v1299_v54 = vadd.f32 %v1294_v56, %v2771_v39 }
 0x130   : > { %1317 = vrot.lane.b32.xlu2 %v1305_v11, %s2221_s16  ;;  %v1578_v11 = vmul.f32 %v2764_v51, %v2816_v48 }
 0x131   : > { %v1101_v41 = vpop.permute.xlu1 %1100  ;;  %v1481_v8 = vpop.permute.xlu0 %1480 }
 0x132   : > { %v1112_v2 = vadd.f32 %v1101_v41, %v1088_v7  ;;  %v1494_v4 = vadd.f32 %v1481_v8, %v1464_v47  ;;  %v1519_v25 = vpop.permute.xlu2 %1518  ;;  %v1403_v8 = vmul.f32 %v2764_v51, %v2796_v35  ;;  %v1404_v7 = vmul.f32 %v2761_v44, %v2796_v35 }
 0x133   : > { %v2852_v41 = vadd.f32 %v1519_v25, %v1503_v59  ;;  %v1180_v59 = vmul.f32 %v2764_v51, %v2391_v28  ;;  %v869_v25 = vmul.f32 %v2364_v21, %v2608_v26 }
 0x137   : > { %1321 = vrot.lane.b32.xlu1 %v1307_v57, %s2221_s16  ;;  %1319 = vrot.lane.b32.xlu0 %v1306_v43, %s2221_s16  ;;  %v868_v43 = vmul.f32 %v2356_v18, %v2608_v26 }
 0x138   : > { %1413 = vrot.lane.b32.xlu2 %v1403_v8, %s2222_s17  ;;  %v1231_v8 = vmul.f32 %v2364_v21, %v2627_v55 }
 0x139   : > { %v877_v29 = vpop.permute.xlu1 %876  ;;  %v1316_v32 = vpop.permute.xlu0 %1315 }
 0x13a   : > { %v891_v6 = vadd.f32 %v877_v29, %v860_v62  ;;  %v1329_v14 = vadd.f32 %v1316_v32, %v1299_v54  ;;  %v2864_v47 = vpop.permute.xlu2 %807  ;;  %v2883_v62 = vstv %s2058_s15  ;;  %s340_s15 = sadd.s32 %s2021_s13, %s2020_s12 }
 0x13f   : > { %1588 = vrot.lane.b32.xlu1 %v1578_v11, %s2221_s16  ;;  %1415 = vrot.lane.b32.xlu0 %v1404_v7, %s2222_s17  ;;  %v970_v7 = vmul.f32 %v2883_v62, %v2389_v27 }
 0x140   : > { %1590 = vrot.lane.b32.xlu2 %v1579_v40, %s2221_s16  ;;  %v870_v40 = vmul.f32 %v2482_v60, %v2608_v26 }
 0x141   : > { %v1250_v39 = vpop.permute.xlu1 %1249  ;;  %v1248_v57 = vpop.permute.xlu0 %1247 }
 0x142   : > { %v908_v36 = vpop.permute.xlu2 %907 }
 0x143   : > { %v2875_v56 = vadd.f32 %v908_v36, %v891_v6  ;;  %v2890_v6 = vstv %s2041_s23  ;;  %s2022_s23 = sshll.u32 %s340_s15, 3 }
 0x144   : > { %s342_s28 = scalar_lea.vmem %s3560_s5, %s2022_s23 }
 0x147   : > { %880 = vrot.lane.b32.xlu1 %v868_v43, %s2221_s16  ;;  %1188 = vrot.lane.b32.xlu0 %v1180_v59, %s2221_s16  ;;  %v1261_v43 = vadd.f32 %v1250_v39, %v1231_v8  ;;  %v1116_v59 = vmul.f32 %v2890_v6, %v2389_v27  ;;  %v1336_v27 = vmul.f32 %v2490_v63, %v2409_v34 }
 0x148   : > { %882 = vrot.lane.b32.xlu2 %v869_v25, %s2221_s16  ;;  %v971_v25 = vmul.f32 %v2883_v62, %v2399_v31 }
 0x149   : > { %v1346_v54 = vpop.permute.xlu1 %1345  ;;  %v1344_v29 = vpop.permute.xlu0 %1343 }
 0x14a   : > { %v2885_v32 = vadd.f32 %v1346_v54, %v1329_v14  ;;  %v2888_v11 = vadd.f32 %v1344_v29, %v2788_v16  ;;  %v1499_v14 = vmul.f32 %v2811_v45, %v2399_v31  ;;  %v1280_v36 = vpop.permute.xlu2 %1279  ;;  %v1120_v54 = vadd.f32 %v1116_v59, %v1112_v2 }
 0x14b   : > { %v2901_v16 = vadd.f32 %v1280_v36, %v1261_v43  ;;  %v1335_v43 = vmul.f32 %v2490_v63, %v2406_v33  ;;  %v1337_v2 = vmul.f32 %v2490_v63, %v2841_v19  ;;  %v1510_v59 = vmul.f32 %v2608_v26, %v2406_v33 }
 0x14c   : > { %v1504_v29 = vadd.f32 %v1499_v14, %v1494_v4  ;;  %v1230_v14 = vmul.f32 %v2356_v18, %v2627_v55  ;;  %v1512_v63 = vmul.f32 %v2608_v26, %v2841_v19 }
 0x14f   : > { %980 = vrot.lane.b32.xlu1 %v970_v7, %s2222_s17  ;;  %884 = vrot.lane.b32.xlu0 %v870_v40, %s2221_s16  ;;  %v1511_v40 = vmul.f32 %v2608_v26, %v2409_v34  ;;  %v1232_v26 = vmul.f32 %v2482_v60, %v2627_v55  ;;  %v1204_v55 = vmul.f32 %v2764_v51, %v2416_v37 }
 0x150   : > { %982 = vrot.lane.b32.xlu2 %v971_v25, %s2222_s17 }
 0x151   : > { %v1133_v30 = vpop.permute.xlu1 %1132  ;;  %v1521_v39 = vpop.permute.xlu0 %1520 }
 0x152   : > { %v1144_v8 = vadd.f32 %v1133_v30, %v1120_v54  ;;  %v1534_v3 = vadd.f32 %v1521_v39, %v1504_v29  ;;  %v2912_v7 = vpop.permute.xlu2 %1454  ;;  %v1260_v54 = vadd.f32 %v1248_v57, %v1230_v14  ;;  %v791_v14 = vmul.f32 %v2786_v0, %v2443_v46 }
 0x153   : > { %v899_v46 = vmul.f32 %v2356_v18, %v2675_v24 }
 0x157   : > { %1349 = vrot.lane.b32.xlu1 %v1336_v27, %s2222_s17  ;;  %1347 = vrot.lane.b32.xlu0 %v1335_v43, %s2222_s17 }
 0x158   : > { %1351 = vrot.lane.b32.xlu2 %v1337_v2, %s2222_s17  ;;  %v1608_v2 = vmul.f32 %v2764_v51, %v2883_v62 }
 0x159   : > { %v812_v4 = vpop.permute.xlu1 %811  ;;  %v2918_v30 = vpop.permute.xlu0 %809 }
 0x15a   : > { %v1551_v36 = vpop.permute.xlu2 %1550 }
 0x15b   : > { %v2927_v25 = vadd.f32 %v1551_v36, %v1534_v3  ;;  %v1609_v3 = vmul.f32 %v2761_v44, %v2883_v62 }
 0x15f   : > { %1524 = vrot.lane.b32.xlu1 %v1511_v40, %s2221_s16  ;;  %1522 = vrot.lane.b32.xlu0 %v1510_v59, %s2221_s16  ;;  %v1262_v59 = vadd.f32 %v2829_v49, %v1232_v26  ;;  %v1435_v49 = vmul.f32 %v2356_v18, %v2786_v0  ;;  %v1065_v18 = vmul.f32 %v2353_v17, %v2818_v52 }
 0x160   : > { %1526 = vrot.lane.b32.xlu2 %v1512_v63, %s2221_s16  ;;  %v1541_v17 = vmul.f32 %v2675_v24, %v2409_v34 }
 0x161   : > { %v1278_v29 = vpop.permute.xlu1 %1277  ;;  %v910_v39 = vpop.permute.xlu0 %909 }
 0x162   : > { %v2933_v27 = vadd.f32 %v1278_v29, %v1260_v54  ;;  %v2936_v43 = vadd.f32 %v910_v39, %v2831_v22  ;;  %v1157_v40 = vpop.permute.xlu2 %1156  ;;  %v1125_v22 = vmul.f32 %v2346_v15, %v2399_v31  ;;  %v822_v29 = vadd.f32 %v812_v4, %v791_v14 }
 0x163   : > { %v2945_v57 = vadd.f32 %v1157_v40, %v1144_v8  ;;  %v1127_v8 = vmul.f32 %v2346_v15, %v2409_v34  ;;  %v901_v4 = vmul.f32 %v2482_v60, %v2675_v24 }
 0x167   : > { %1620 = vrot.lane.b32.xlu1 %v1609_v3, %s2222_s17  ;;  %1618 = vrot.lane.b32.xlu0 %v1608_v2, %s2222_s17 }
 0x168   : > { %1134 = vrot.lane.b32.xlu2 %v1125_v22, %s2221_s16  ;;  %v900_v22 = vmul.f32 %v2364_v21, %v2675_v24 }
 0x169   : > { %v1453_v36 = vpop.permute.xlu1 %1452  ;;  %v1282_v63 = vpop.permute.xlu0 %1281 }
 0x16a   : > { %v2954_v54 = vadd.f32 %v1282_v63, %v1262_v59  ;;  %v843_v39 = vpop.permute.xlu2 %842  ;;  %v1465_v59 = vadd.f32 %v1453_v36, %v1435_v49  ;;  %v1542_v36 = vmul.f32 %v2675_v24, %v2841_v19 }
 0x16b   : > { %v2961_v3 = vadd.f32 %v843_v39, %v822_v29  ;;  %v2995_v29 = vld [vmem:[%s2302_s14 + $0x10] sm:$0xff] }
 0x16c   : > { %3590 = vst [vmem:[#allocation27_spill] sm:$0xff] %v2995_v29  ;;  %v789_v39 = vmul.f32 %v2995_v29, %v2786_v0 }
 0x16f   : > { %1212 = vrot.lane.b32.xlu1 %v1204_v55, %s2222_s17  ;;  %1138 = vrot.lane.b32.xlu0 %v1127_v8, %s2221_s16 }
 0x170   : > { %911 = vrot.lane.b32.xlu2 %v899_v46, %s2222_s17  ;;  %v3000_v46 = vld [vmem:[%s2302_s14 + $0x18] sm:$0xff] }
 0x171   : > { %v1549_v2 = vpop.permute.xlu1 %1548  ;;  %v2969_v26 = vpop.permute.xlu0 %1456  ;;  %3591 = vst [vmem:[#allocation28_spill] sm:$0xff] %v3000_v46  ;;  %v790_v49 = vmul.f32 %v3000_v46, %v2786_v0 }
 0x172   : > { %v2972_v40 = vadd.f32 %v1549_v2, %v2852_v41  ;;  %v1483_v14 = vpop.permute.xlu2 %1482  ;;  %v1540_v41 = vmul.f32 %v2675_v24, %v2406_v33 }
 0x173   : > { %v2979_v63 = vadd.f32 %v1483_v14, %v1465_v59  ;;  %v820_v59 = vadd.f32 %v2864_v47, %v789_v39  ;;  %v821_v14 = vadd.f32 %v2918_v30, %v790_v49  ;;  %v1364_v47 = vmul.f32 %v2761_v44, %v2707_v38 }
 0x174   : > { %v1363_v30 = vmul.f32 %v2764_v51, %v2707_v38  ;;  %v729_v49 = vmul.f32 %v2508_v12, %v2841_v19 }
 0x177   : > { %915 = vrot.lane.b32.xlu1 %v901_v4, %s2222_s17  ;;  %913 = vrot.lane.b32.xlu0 %v900_v22, %s2222_s17  ;;  %v3008_v22 = vld [vmem:[%s2302_s14 + $0x38] sm:$0xff] }
 0x178   : > { %1552 = vrot.lane.b32.xlu2 %v1540_v41, %s2222_s17  ;;  %3592 = vst [vmem:[#allocation29_spill] sm:$0xff] %v3008_v22  ;;  %v1070_v24 = vmul.f32 %v3008_v22, %v2307_v1  ;;  %v1149_v1 = vmul.f32 %v2372_v23, %v2399_v31  ;;  %v1369_v31 = vadd.f32 %v1364_v47, %v2885_v32 }
 0x179   : > { %v2987_v55 = vpop.permute.xlu1 %1082  ;;  %v1079_v8 = vpop.permute.xlu0 %1078 }
 0x17a   : > { %v1089_v21 = vadd.f32 %v1079_v8, %v1065_v18  ;;  %v1103_v2 = vpop.permute.xlu2 %1102 }
 0x17c   : > { %v3004_v4 = vadd.f32 %v1103_v2, %v1089_v21  ;;  %v1368_v2 = vadd.f32 %v1363_v30, %v2888_v11  ;;  %v3063_v30 = vld [vmem:[%s2382_s9 + $0x48] sm:$0xff] }
 0x17f   : > { %1556 = vrot.lane.b32.xlu1 %v1542_v36, %s2222_s17  ;;  %1554 = vrot.lane.b32.xlu0 %v1541_v17, %s2222_s17  ;;  %v1151_v36 = vmul.f32 %v2372_v23, %v2409_v34  ;;  %v1295_v34 = vmul.f32 %v2664_v42, %v2406_v33 }
 0x180   : > { %1080 = vrot.lane.b32.xlu2 %v1070_v24, %s2221_s16  ;;  %v3040_v24 = vld [vmem:[%s2382_s9 + $0x40] sm:$0xff] }
 0x181   : > { %v841_v18 = vpop.permute.xlu1 %840  ;;  %v839_v41 = vpop.permute.xlu0 %838  ;;  %v1376_v32 = vmul.f32 %v3040_v24, %v2508_v12  ;;  %v1300_v47 = vadd.f32 %v1295_v34, %v2933_v27 }
 0x182   : > { %v3015_v8 = vadd.f32 %v841_v18, %v821_v14  ;;  %v3017_v21 = vadd.f32 %v839_v41, %v820_v59  ;;  %v769_v17 = vpop.permute.xlu2 %768 }
 0x183   : > { %v3029_v39 = vadd.f32 %v769_v17, %v2745_v10  ;;  %v3043_v10 = vld [vmem:[%s2382_s9 + $0x38] sm:$0xff] }
 0x184   : > { %v1375_v33 = vmul.f32 %v3043_v10, %v2508_v12 }
 0x187   : > { %1162 = vrot.lane.b32.xlu1 %v1151_v36, %s2222_s17  ;;  %1158 = vrot.lane.b32.xlu0 %v1149_v1, %s2222_s17  ;;  %v3055_v36 = vld [vmem:[%s2302_s14 + $0x40] sm:$0xff]  ;;  %v1437_v1 = vmul.f32 %v2482_v60, %v2786_v0 }
 0x188   : > { %743 = vrot.lane.b32.xlu2 %v729_v49, %s2221_s16  ;;  %3593 = vst [vmem:[#allocation30_spill] sm:$0xff] %v3055_v36  ;;  %v1436_v11 = vmul.f32 %v3055_v36, %v2786_v0 }
 0x189   : > { %v1386_v59 = vpop.permute.xlu1 %1385  ;;  %v1384_v14 = vpop.permute.xlu0 %1383 }
 0x18a   : > { %v3045_v18 = vadd.f32 %v1386_v59, %v1369_v31  ;;  %v3047_v41 = vadd.f32 %v1384_v14, %v1368_v2  ;;  %v1318_v17 = vpop.permute.xlu2 %1317  ;;  %v1377_v31 = vmul.f32 %v3063_v30, %v2508_v12  ;;  %v1466_v2 = vadd.f32 %v2912_v7, %v1436_v11  ;;  %v3079_v14 = vld [vmem:[%s2382_s9 + $0x10] sm:$0xff] }
 0x18b   : > { %v3065_v49 = vadd.f32 %v1318_v17, %v1300_v47  ;;  %v1467_v59 = vadd.f32 %v2969_v26, %v1437_v1  ;;  %v1094_v12 = vmul.f32 %v3008_v22, %v2318_v5  ;;  %v1067_v7 = vmul.f32 %v3055_v36, %v2818_v52 }
 0x18d   : > { %v1091_v1 = vadd.f32 %v2987_v55, %v1067_v7  ;;  %v943_v7 = vmul.f32 %v2816_v48, %v2841_v19 }
 0x18f   : > { %1389 = vrot.lane.b32.xlu1 %v1376_v32, %s2221_s16  ;;  %1387 = vrot.lane.b32.xlu0 %v1375_v33, %s2221_s16  ;;  %v758_v32 = vmul.f32 %v3079_v14, %v2796_v35  ;;  %v3091_v33 = vld [vmem:[%s2382_s9 + $0x18] sm:$0xff] }
 0x190   : > { %1391 = vrot.lane.b32.xlu2 %v1377_v31, %s2221_s16  ;;  %v759_v11 = vmul.f32 %v3091_v33, %v2796_v35  ;;  %v942_v55 = vmul.f32 %v3091_v33, %v2816_v48 }
 0x191   : > { %v1487_v60 = vpop.permute.xlu1 %1486  ;;  %v1485_v0 = vpop.permute.xlu0 %1484 }
 0x192   : > { %v3073_v27 = vadd.f32 %v1487_v60, %v1467_v59  ;;  %v3075_v34 = vadd.f32 %v1485_v0, %v1466_v2  ;;  %v3087_v26 = vpop.permute.xlu2 %1413  ;;  %v941_v2 = vmul.f32 %v3079_v14, %v2816_v48  ;;  %v760_v59 = vmul.f32 %v2796_v35, %v2841_v19 }
 0x197   : > { %770 = vrot.lane.b32.xlu1 %v758_v32, %s2222_s17  ;;  %1104 = vrot.lane.b32.xlu0 %v1094_v12, %s2222_s17  ;;  %v1405_v12 = vmul.f32 %v3043_v10, %v2796_v35 }
 0x198   : > { %772 = vrot.lane.b32.xlu2 %v759_v11, %s2222_s17 }
 0x199   : > { %v767_v47 = vpop.permute.xlu1 %766  ;;  %v1107_v17 = vpop.permute.xlu0 %1106 }
 0x19a   : > { %v3098_v5 = vadd.f32 %v767_v47, %v2718_v50  ;;  %v3100_v31 = vadd.f32 %v1107_v17, %v1091_v1  ;;  %v3107_v60 = vpop.permute.xlu2 %1590  ;;  %v858_v50 = vmul.f32 %v3055_v36, %v2811_v45  ;;  %v1297_v1 = vmul.f32 %v2664_v42, %v2841_v19 }
 0x19b   : > { %v1296_v47 = vmul.f32 %v3091_v33, %v2664_v42  ;;  %v1406_v36 = vmul.f32 %v3040_v24, %v2796_v35 }
 0x19c   : > { %3594 = vst [vmem:[#allocation31_spill] sm:$0xff] %v3100_v31  ;;  %v863_v11 = vadd.f32 %v858_v50, %v3015_v8  ;;  %v1302_v8 = vadd.f32 %v1297_v1, %v2954_v54  ;;  %v2154_v1 = vld [vmem:[%s2302_s14 + $0x28] sm:$0xff] }
 0x19d   : > { %v1301_v50 = vadd.f32 %v1296_v47, %v2901_v16  ;;  %v455_v16 = vmul.f32 %v2154_v1, %v2890_v6  ;;  %v1582_v47 = vmul.f32 %v3063_v30, %v2816_v48 }
 0x19f   : > { %953 = vrot.lane.b32.xlu1 %v941_v2, %s2221_s16  ;;  %774 = vrot.lane.b32.xlu0 %v760_v59, %s2222_s17  ;;  %v2153_v59 = vld [vmem:[%s2302_s14] sm:$0xff] }
 0x1a0   : > { %955 = vrot.lane.b32.xlu2 %v942_v55, %s2221_s16  ;;  %v400_v55 = vmul.f32 %v2153_v59, %v2818_v52  ;;  %v1407_v59 = vmul.f32 %v3063_v30, %v2796_v35 }
 0x1a1   : > { %v3115_v0 = vpop.permute.xlu1 %951  ;;  %v3117_v32 = vpop.permute.xlu0 %949 }
 0x1a2   : > { %v883_v17 = vpop.permute.xlu2 %882 }
 0x1a3   : > { %v3129_v2 = vadd.f32 %v883_v17, %v863_v11  ;;  %v425_v17 = vadd.f32 %v2518_v20, %v400_v55  ;;  %v1581_v20 = vmul.f32 %v3040_v24, %v2816_v48  ;;  %v857_v55 = vmul.f32 %v3008_v22, %v2811_v45 }
 0x1a5   : > { %3595 = vst [vmem:[#allocation32_spill] sm:$0xff] %v3129_v2  ;;  %v450_v54 = vadd.f32 %v2484_v61, %v425_v17  ;;  %v1181_v61 = vmul.f32 %v2761_v44, %v2391_v28  ;;  %v3168_v17 = vstv %s2056_s26 }
 0x1a7   : > { %1417 = vrot.lane.b32.xlu1 %v1405_v12, %s2222_s17  ;;  %957 = vrot.lane.b32.xlu0 %v943_v7, %s2221_s16  ;;  %v1580_v12 = vmul.f32 %v3043_v10, %v2816_v48  ;;  %v459_v35 = vadd.f32 %v455_v16, %v450_v54  ;;  %v3177_v48 = vld [vmem:[%s2382_s9 + $0x8] sm:$0xff]  ;;  %v862_v54 = vadd.f32 %v857_v55, %v3017_v21  ;;  %v2156_v16 = vld [vmem:[%s2382_s9] sm:$0xff] }
 0x1a8   : > { %1419 = vrot.lane.b32.xlu2 %v1406_v36, %s2222_s17  ;;  %v973_v21 = vmul.f32 %v3091_v33, %v2883_v62  ;;  %v972_v55 = vmul.f32 %v3079_v14, %v2883_v62 }
 0x1a9   : > { %v1322_v46 = vpop.permute.xlu1 %1321  ;;  %v1320_v42 = vpop.permute.xlu0 %1319 }
 0x1aa   : > { %v1332_v29 = vadd.f32 %v1322_v46, %v1302_v8  ;;  %v3139_v11 = vadd.f32 %v1320_v42, %v1301_v50  ;;  %v983_v7 = vpop.permute.xlu2 %982  ;;  %v484_v42 = vadd.f32 %v2510_v13, %v459_v35  ;;  %v1502_v13 = vmul.f32 %v2811_v45, %v2841_v19 }
 0x1ac   : > { %v509_v1 = vadd.f32 %v2582_v58, %v484_v42  ;;  %v1507_v42 = vadd.f32 %v1502_v13, %v3073_v27  ;;  %v1117_v27 = vmul.f32 %v3177_v48, %v2890_v6 }
 0x1af   : > { %1592 = vrot.lane.b32.xlu1 %v1580_v12, %s2221_s16  ;;  %1421 = vrot.lane.b32.xlu0 %v1407_v59, %s2222_s17  ;;  %v1183_v12 = vmul.f32 %v3040_v24, %v2391_v28  ;;  %v3174_v59 = vstv %s2050_s27 }
 0x1b0   : > { %1594 = vrot.lane.b32.xlu2 %v1581_v20, %s2221_s16  ;;  %v514_v20 = vmul.f32 %v2156_v16, %v3174_v59 }
 0x1b1   : > { %v3154_v46 = vpop.permute.xlu1 %1588  ;;  %v3156_v36 = vpop.permute.xlu0 %1415 }
 0x1b2   : > { %v1352_v8 = vpop.permute.xlu2 %1351  ;;  %v518_v52 = vadd.f32 %v514_v20, %v509_v1  ;;  %v1121_v20 = vadd.f32 %v1117_v27, %v3004_v4  ;;  %v1705_v4 = vld [vmem:[%s3556_s1 + $0x18] sm:$0xff]  ;;  %v1126_v27 = vmul.f32 %v3079_v14, %v2346_v15  ;;  %v1703_v15 = vld [vmem:[%s3556_s1 + $0x8] sm:$0xff] }
 0x1b3   : > { %v3165_v50 = vadd.f32 %v1352_v8, %v1332_v29  ;;  %v929_v29 = vmul.f32 %v3177_v48, %v3168_v17  ;;  %1731 = vmatpush.msra.mxu0 %v1705_v4  ;;  %2083 = vmatpush.msra.mxu2 %v1705_v4 }
 0x1b4   : > { %v543_v31 = vadd.f32 %v2595_v9, %v518_v52 }
 0x1b5   : > { %3596 = vst [vmem:[#allocation33_spill] sm:$0xff] %v3165_v50  ;;  %v934_v58 = vadd.f32 %v929_v29, %v2936_v43  ;;  %v2157_v50 = vld [vmem:[%s2302_s14 + $0x48] sm:$0xff]  ;;  %v974_v43 = vmul.f32 %v2883_v62, %v2841_v19 }
 0x1b6   : > { %v859_v22 = vmul.f32 %v2157_v50, %v2811_v45  ;;  %v568_v1 = vadd.f32 %v2572_v53, %v543_v31 }
 0x1b7   : > { %1190 = vrot.lane.b32.xlu1 %v1181_v61, %s2221_s16  ;;  %1596 = vrot.lane.b32.xlu0 %v1582_v47, %s2221_s16  ;;  %v928_v47 = vmul.f32 %v2156_v16, %v3168_v17  ;;  %v965_v16 = vadd.f32 %v3115_v0, %v934_v58  ;;  %v1612_v58 = vmul.f32 %v3063_v30, %v2883_v62 }
 0x1b8   : > { %1194 = vrot.lane.b32.xlu2 %v1183_v12, %s2221_s16 }
 0x1b9   : > { %v881_v35 = vpop.permute.xlu1 %880  ;;  %v3187_v61 = vpop.permute.xlu0 %1188  ;;  %v933_v12 = vadd.f32 %v928_v47, %v2875_v56  ;;  %v3215_v56 = vadd.f32 %v983_v7, %v965_v16 }
 0x1ba   : > { %v3190_v8 = vadd.f32 %v881_v35, %v862_v54  ;;  %v1527_v2 = vpop.permute.xlu2 %1526  ;;  %v1006_v54 = vrot.slane %v3098_v5, 1  ;;  %v1007_v5 = vrot.slane %v3029_v39, 1 }
 0x1bb   : > { %v3204_v35 = vadd.f32 %v1527_v2, %v1507_v42  ;;  %v964_v0 = vadd.f32 %v3117_v32, %v933_v12  ;;  %v864_v2 = vadd.f32 %v859_v22, %v2961_v3  ;;  %v1611_v32 = vmul.f32 %v3040_v24, %v2883_v62  ;;  %v2068_v42 = vld [vmem:[%s3556_s1 + $0x38] sm:$0xff] }
 0x1bc   : > { %v1008_v50 = vsel %vm1005_vm0, %v1006_v54, %v1007_v5  ;;  %v1610_v3 = vmul.f32 %v3043_v10, %v2883_v62  ;;  %v1030_v22 = vrot.slane %v3215_v56, 2  ;;  %1765 = vmatpush.msra.mxu1 %v2068_v42  ;;  %2087 = vmatpush.msra.mxu3 %v2068_v42  ;;  %v1205_v62 = vmul.f32 %v2761_v44, %v2416_v37 }
 0x1bd   : > { %v1019_v47 = vadd.f32 %v1008_v50, %v568_v1  ;;  %v1207_v50 = vmul.f32 %v3040_v24, %v2416_v37 }
 0x1bf   : > { %986 = vrot.lane.b32.xlu1 %v973_v21, %s2222_s17  ;;  %984 = vrot.lane.b32.xlu0 %v972_v55, %s2222_s17 }
 0x1c0   : > { %988 = vrot.lane.b32.xlu2 %v974_v43, %s2222_s17 }
 0x1c1   : > { %v981_v9 = vpop.permute.xlu1 %980  ;;  %v885_v52 = vpop.permute.xlu0 %884 }
 0x1c2   : > { %v995_v29 = vadd.f32 %v981_v9, %v964_v0  ;;  %v3221_v13 = vadd.f32 %v885_v52, %v864_v2  ;;  %v1135_v21 = vpop.permute.xlu2 %1134  ;;  %v1501_v0 = vmul.f32 %v3091_v33, %v2811_v45  ;;  %v2067_v9 = vld [vmem:[%s3556_s1 + $0x30] sm:$0xff] }
 0x1c3   : > { %v3234_v31 = vadd.f32 %v1135_v21, %v1121_v20  ;;  %1766 = vmatpush.msra.mxu1 %v2067_v9  ;;  %2088 = vmatpush.msra.mxu3 %v2067_v9  ;;  %v1150_v21 = vmul.f32 %v3079_v14, %v2372_v23  ;;  %v1206_v23 = vmul.f32 %v3043_v10, %v2416_v37 }
 0x1c4   : > { %v1029_v7 = vrot.slane %v995_v29, 2  ;;  %v2065_v29 = vld [vmem:[%s3556_s1 + $0x20] sm:$0xff]  ;;  %v1506_v1 = vadd.f32 %v1501_v0, %v3075_v34  ;;  %v1182_v34 = vmul.f32 %v3043_v10, %v2391_v28  ;;  %v3315_v0 = vadd.f32 %v3156_v36, %v3045_v18 }
 0x1c5   : > { %v1119_v37 = vmul.f32 %v3091_v33, %v2890_v6  ;;  %v718_v36 = vmul.f32 %v2707_v38, %v2841_v19 }
 0x1c6   : > { %v1031_v53 = vsel %vm1028_vm1, %v1029_v7, %v1030_v22 }
 0x1c7   : > { %v3236_v55 = vadd.f32 %v1031_v53, %v1019_v47  ;;  %1624 = vrot.lane.b32.xlu1 %v1611_v32, %s2222_s17  ;;  %1622 = vrot.lane.b32.xlu0 %v1610_v3, %s2222_s17  ;;  %v1568_v53 = vmul.f32 %v2764_v51, %v3168_v17 }
 0x1c8   : > { %1626 = vrot.lane.b32.xlu2 %v1612_v58, %s2222_s17 }
 0x1c9   : > { %v1350_v54 = vpop.permute.xlu1 %1349  ;;  %v1348_v16 = vpop.permute.xlu0 %1347  ;;  %v1573_v42 = vadd.f32 %v1568_v53, %v2972_v40 }
 0x1ca   : > { %v3249_v12 = vadd.f32 %v1350_v54, %v3139_v11  ;;  %v3252_v43 = vadd.f32 %v1348_v16, %v3065_v49  ;;  %v1500_v11 = vmul.f32 %v3079_v14, %v2811_v45  ;;  %v912_v2 = vpop.permute.xlu2 %911  ;;  %v1704_v49 = vld [vmem:[%s3556_s1 + $0x10] sm:$0xff]  ;;  %v2066_v45 = vld [vmem:[%s3556_s1 + $0x28] sm:$0xff]  ;;  %v1172_v16 = vmul.f32 %v2764_v51, %v3174_v59 }
 0x1cb   : > { %v3270_v52 = vadd.f32 %v912_v2, %v3190_v8  ;;  %1732 = vmatpush.msra.mxu0 %v1704_v49  ;;  %v1702_v8 = vld [vmem:[%s3556_s1] sm:$0xff]  ;;  %1767 = vmatpush.msra.mxu1 %v2066_v45  ;;  %v3597_v2 = vld [vmem:[#allocation31_spill] sm:$0xff] }
 0x1cc   : > { %v1505_v32 = vadd.f32 %v1500_v11, %v2979_v63  ;;  %2084 = vmatpush.msra.mxu2 %v1704_v49  ;;  %2089 = vmatpush.msra.mxu3 %v2066_v45  ;;  %v1569_v63 = vmul.f32 %v2761_v44, %v3168_v17  ;;  %v1123_v49 = vadd.f32 %v1119_v37, %v3597_v2 }
 0x1cd   : > { %1733 = vmatpush.msra.mxu0 %v1703_v15  ;;  %1768 = vmatpush.msra.mxu1 %v2065_v29 }
 0x1ce   : > { %2085 = vmatpush.msra.mxu2 %v1703_v15  ;;  %2090 = vmatpush.msra.mxu3 %v2065_v29  ;;  %v1574_v28 = vadd.f32 %v1569_v63, %v2927_v25  ;;  %v1428_v25 = vadd.f32 %v3087_v26, %v3047_v41  ;;  %v3332_v15 = vstv %s2059_s30 }
 0x1cf   : > { %1214 = vrot.lane.b32.xlu1 %v1205_v62, %s2222_s17  ;;  %1136 = vrot.lane.b32.xlu0 %v1126_v27, %s2221_s16  ;;  %v1603_v27 = vadd.f32 %v3154_v46, %v1573_v42  ;;  %v1644_v46 = vrot.slane %v3315_v0, 1  ;;  %v3599_v42 = vld [vmem:[#allocation32_spill] sm:$0xff]  ;;  %v1174_v0 = vmul.f32 %v3043_v10, %v3174_v59 }
 0x1d0   : > { %1734 = vmatpush.msra.mxu0 %v1702_v8  ;;  %1218 = vrot.lane.b32.xlu2 %v1207_v50, %s2222_s17  ;;  %v1604_v62 = vadd.f32 %v3107_v60, %v1574_v28  ;;  %v1176_v60 = vadd.f32 %v1172_v16, %v2945_v57  ;;  %v1643_v9 = vrot.slane %v1428_v25, 1 }
 0x1d1   : > { %v1525_v3 = vpop.permute.xlu1 %1524  ;;  %v1523_v7 = vpop.permute.xlu0 %1522  ;;  %2086 = vmatpush.msra.mxu2 %v1702_v8 }
 0x1d2   : > { %v3290_v20 = vadd.f32 %v1525_v3, %v1506_v1  ;;  %v1535_v47 = vadd.f32 %v1523_v7, %v1505_v32  ;;  %v1553_v58 = vpop.permute.xlu2 %1552  ;;  %v1200_v18 = vadd.f32 %v3187_v61, %v1176_v60  ;;  %v1645_v57 = vsel %vm1005_vm0, %v1643_v9, %v1644_v46  ;;  %v3598_v32 = vld [vmem:[#allocation23_spill] sm:$0xff] }
 0x1d3   : > { %v1047_v61 = vadd.f32 %v3332_v15, %v3236_v55  ;;  %v723_v3 = vadd.f32 %v718_v36, %v3598_v32  ;;  %v3600_v36 = vld [vmem:[#allocation26_spill] sm:$0xff] }
 0x1d4   : > { %v3301_v4 = vadd.f32 %v1553_v58, %v1535_v47 }
 0x1d5   : > { %vm1051_vm2 = vcmp.ge.f32.partialorder %v1047_v61, 0.0 }
 0x1d7   : > { %1160 = vrot.lane.b32.xlu0 %v1150_v21, %s2222_s17  ;;  %1192 = vrot.lane.b32.xlu1 %v1182_v34, %s2221_s16  ;;  %s2060_s16 = sld [smem:[#allocation2 + $0x1c]] }
 0x1d8   : > { %1216 = vrot.lane.b32.xlu2 %v1206_v23, %s2222_s17 }
 0x1d9   : > { %v1621_v44 = vpop.permute.xlu1 %1620  ;;  %v1619_v54 = vpop.permute.xlu0 %1618 }
 0x1da   : > { %v3322_v40 = vadd.f32 %v1621_v44, %v1604_v62  ;;  %v3324_v11 = vpop.permute.xlu2 %1080  ;;  %v1633_v51 = vadd.f32 %v1619_v54, %v1603_v27 }
 0x1dc   : > { %v1666_v41 = vrot.slane %v3322_v40, 2  ;;  %v1665_v26 = vrot.slane %v1633_v51, 2 }
 0x1dd   : > { %v3346_v21 = vstv %s2060_s16 }
 0x1de   : > { %v1667_v7 = vsel %vm1028_vm1, %v1665_v26, %v1666_v41  ;;  %v1056_v58 = vmul.f32 %v3346_v21, %v1047_v61 }
 0x1e0   : > { %v1060_v16 = vsel %vm1051_vm2, %v1047_v61, %v1056_v58 }
 0x1e1   : > { %v1213_v45 = vpop.permute.xlu1 %1212  ;;  %v1139_v50 = vpop.permute.xlu0 %1138 }
 0x1e2   : > { %v1224_v8 = vadd.f32 %v1213_v45, %v1200_v18  ;;  %v3335_v29 = vadd.f32 %v1139_v50, %v1123_v49  ;;  %v744_v47 = vpop.permute.xlu2 %743  ;;  %v2158_v18 = vld [vmem:[%s2302_s14 + $0x8] sm:$0xff]  ;;  %v3601_v49 = vld [vmem:[#allocation27_spill] sm:$0xff]  ;;  %v3602_v45 = vld [vmem:[#allocation9_spill] sm:$0xff] }
 0x1e3   : > { %v3348_v63 = vadd.f32 %v744_v47, %v723_v3  ;;  %v401_v2 = vmul.f32 %v2158_v18, %v3600_v36  ;;  %v402_v9 = vmul.f32 %v3601_v49, %v3600_v36  ;;  %v3605_v3 = vld [vmem:[#allocation5_spill] sm:$0xff]  ;;  %v3606_v47 = vld [vmem:[#allocation12_spill] sm:$0xff] }
 0x1e4   : > { %v1656_v1 = vadd.f32 %v1645_v57, %v1224_v8  ;;  %v3603_v8 = vld [vmem:[#allocation6_spill] sm:$0xff] }
 0x1e5   : > { %v426_v50 = vadd.f32 %v3602_v45, %v401_v2  ;;  %v427_v57 = vadd.f32 %v3603_v8, %v402_v9  ;;  %v3611_v2 = vld [vmem:[#allocation14_spill] sm:$0xff]  ;;  %v3612_v9 = vld [vmem:[#allocation15_spill] sm:$0xff] }
 0x1e6   : > { %v1678_v34 = vadd.f32 %v1667_v7, %v1656_v1 }
 0x1e7   : > { %v451_v7 = vadd.f32 %v3605_v3, %v426_v50 }
 0x1e8   : > { %v1682_v53 = vadd.f32 %v1678_v34, %v3332_v15  ;;  %v452_v34 = vadd.f32 %v3606_v47, %v427_v57  ;;  %v515_v57 = vmul.f32 %v3177_v48, %v3174_v59 }
 0x1e9   : > { %v916_v23 = vpop.permute.xlu1 %915  ;;  %v914_v28 = vpop.permute.xlu0 %913 }
 0x1ea   : > { %v3353_v55 = vadd.f32 %v916_v23, %v3221_v13  ;;  %v3356_v44 = vadd.f32 %v914_v28, %v3599_v42  ;;  %vm1686_vm3 = vcmp.ge.f32.partialorder %v1682_v53, 0.0  ;;  %v1690_v54 = vmul.f32 %v1682_v53, %v3346_v21  ;;  %v3359_v27 = vpop.permute.xlu2 %1391  ;;  %v2159_v23 = vld [vmem:[%s2302_s14 + $0x30] sm:$0xff] }
 0x1eb   : > { %v456_v28 = vmul.f32 %v2159_v23, %v2890_v6  ;;  %v3615_v23 = vld [vmem:[#allocation24_spill] sm:$0xff] }
 0x1ec   : > { %v1694_v62 = vsel %vm1686_vm3, %v1682_v53, %v1690_v54  ;;  %v3607_v53 = vld [vmem:[#allocation29_spill] sm:$0xff]  ;;  %v3608_v54 = vld [vmem:[#allocation8_spill] sm:$0xff] }
 0x1ed   : > { %v1698_v37 = vmax.f32 %v1060_v16, %v1694_v62  ;;  %v457_v58 = vmul.f32 %v3607_v53, %v2890_v6 }
 0x1ef   : > { %2061 = vmatmul.msk.f32.vlgmr.msra.gmra.mxu0 %vm1706_vm4, %v1698_v37  ;;  %2069 = vmatmul.msk.f32.vlgmr.msra.gmra.mxu1 %vm1706_vm4, %v1698_v37  ;;  %v461_v62 = vadd.f32 %v457_v58, %v452_v34  ;;  %v460_v37 = vadd.f32 %v456_v28, %v451_v7  ;;  %v516_v7 = vmul.f32 %v3079_v14, %v3174_v59 }
 0x1f1   : > { %v1557_v25 = vpop.permute.xlu1 %1556  ;;  %v1555_v51 = vpop.permute.xlu0 %1554  ;;  %v486_v49 = vadd.f32 %v3611_v2, %v461_v62  ;;  %v485_v45 = vadd.f32 %v3612_v9, %v460_v37  ;;  %v3618_v2 = vld [vmem:[#allocation18_spill] sm:$0xff] }
 0x1f2   : > { %v3364_v13 = vadd.f32 %v1557_v25, %v3204_v35  ;;  %v3367_v60 = vadd.f32 %v1555_v51, %v3290_v20  ;;  %v773_v26 = vpop.permute.xlu2 %772  ;;  %v3604_v35 = vld [vmem:[#allocation28_spill] sm:$0xff]  ;;  %v3609_v25 = vld [vmem:[#allocation30_spill] sm:$0xff]  ;;  %v3610_v51 = vld [vmem:[#allocation11_spill] sm:$0xff] }
 0x1f3   : > { %v403_v32 = vmul.f32 %v3604_v35, %v3600_v36  ;;  %v784_v28 = vadd.f32 %v773_v26, %v3615_v23  ;;  %v3621_v26 = vld [vmem:[#allocation21_spill] sm:$0xff]  ;;  %v1366_v23 = vmul.f32 %v3040_v24, %v2707_v38 }
 0x1f5   : > { %v428_v16 = vadd.f32 %v3608_v54, %v403_v32  ;;  %v3614_v32 = vld [vmem:[#allocation10_spill] sm:$0xff]  ;;  %v3616_v54 = vld [vmem:[#allocation7_spill] sm:$0xff] }
 0x1f6   : > { %v511_v47 = vadd.f32 %v3614_v32, %v486_v49 }
 0x1f7   : > { %v453_v18 = vadd.f32 %v3610_v51, %v428_v16  ;;  %v3617_v51 = vld [vmem:[#allocation25_spill] sm:$0xff] }
 0x1f8   : > { %v520_v62 = vadd.f32 %v516_v7, %v511_v47 }
 0x1f9   : > { %v3375_v61 = vpop.permute.xlu1 %1162  ;;  %v1159_v1 = vpop.permute.xlu0 %1158 }
 0x1fa   : > { %v3380_v20 = vadd.f32 %v1159_v1, %v3234_v31  ;;  %v3388_v42 = vpop.permute.xlu2 %955  ;;  %v458_v31 = vmul.f32 %v3609_v25, %v2890_v6  ;;  %v3613_v1 = vld [vmem:[#allocation16_spill] sm:$0xff] }
 0x1fb   : > { %v510_v35 = vadd.f32 %v3613_v1, %v485_v45  ;;  %v3620_v45 = vld [vmem:[#allocation13_spill] sm:$0xff] }
 0x1fc   : > { %v462_v3 = vadd.f32 %v458_v31, %v453_v18  ;;  %v517_v31 = vmul.f32 %v3091_v33, %v3174_v59  ;;  %v3619_v18 = vld [vmem:[#allocation20_spill] sm:$0xff] }
 0x1fd   : > { %v519_v58 = vadd.f32 %v515_v57, %v510_v35  ;;  %v545_v49 = vadd.f32 %v3619_v18, %v520_v62  ;;  %v1011_v57 = vrot.slane %v784_v28, 1  ;;  %v3623_v28 = vld [vmem:[#allocation19_spill] sm:$0xff]  ;;  %v1371_v18 = vadd.f32 %v1366_v23, %v3249_v12 }
 0x1fe   : > { %v487_v16 = vadd.f32 %v3616_v54, %v462_v3  ;;  %v3622_v3 = vld [vmem:[#allocation22_spill] sm:$0xff]  ;;  %v1367_v12 = vmul.f32 %v3063_v30, %v2707_v38 }
 0x1ff   : > { %v544_v1 = vadd.f32 %v3620_v45, %v519_v58  ;;  %v570_v32 = vadd.f32 %v3621_v26, %v545_v49  ;;  %v1365_v49 = vmul.f32 %v3043_v10, %v2707_v38 }
 0x200   : > { %v512_v9 = vadd.f32 %v3618_v2, %v487_v16 }
 0x201   : > { %v1390_v50 = vpop.permute.xlu1 %1389  ;;  %v1388_v8 = vpop.permute.xlu0 %1387  ;;  %v569_v47 = vadd.f32 %v3622_v3, %v544_v1  ;;  %v3624_v1 = vld [vmem:[#allocation17_spill] sm:$0xff] }
 0x202   : > { %v1420_v34 = vpop.permute.xlu2 %1419  ;;  %v521_v62 = vadd.f32 %v517_v31, %v512_v9  ;;  %v1401_v45 = vadd.f32 %v1390_v50, %v1371_v18  ;;  %v1370_v31 = vadd.f32 %v1365_v49, %v3252_v43  ;;  %v1171_v49 = vadd.f32 %v3375_v61, %v3335_v29 }
 0x204   : > { %v1431_v3 = vadd.f32 %v1420_v34, %v1401_v45  ;;  %v932_v45 = vmul.f32 %v3168_v17, %v2841_v19 }
 0x209   : > { %v771_v37 = vpop.permute.xlu1 %770  ;;  %v3404_v25 = vpop.permute.xlu0 %1104 }
 0x20a   : > { %v783_v48 = vadd.f32 %v771_v37, %v3617_v51  ;;  %v3414_v7 = vpop.permute.xlu2 %1594  ;;  %v546_v51 = vadd.f32 %v3623_v28, %v521_v62  ;;  %v3625_v28 = vld [vmem:[#allocation33_spill] sm:$0xff] }
 0x20c   : > { %v1009_v35 = vrot.slane %v783_v48, 1 }
 0x20e   : > { %v1010_v54 = vsel %vm1005_vm0, %v1007_v5, %v1009_v35  ;;  %v1012_v16 = vsel %vm1005_vm0, %v1009_v35, %v1011_v57  ;;  %v571_v35 = vadd.f32 %v3624_v1, %v546_v51  ;;  %v1372_v51 = vadd.f32 %v1367_v12, %v3625_v28 }
 0x20f   : > { %v3422_v37 = vadd.f32 %v1010_v54, %v569_v47  ;;  %v3424_v58 = vadd.f32 %v1012_v16, %v570_v32  ;;  %v1400_v47 = vadd.f32 %v1388_v8, %v1370_v31  ;;  %v930_v31 = vmul.f32 %v3079_v14, %v3168_v17 }
 0x210   : > { %v1402_v8 = vadd.f32 %v3359_v27, %v1372_v51  ;;  %v931_v27 = vmul.f32 %v3091_v33, %v3168_v17 }
 0x211   : > { %v954_v48 = vpop.permute.xlu1 %953  ;;  %v775_v2 = vpop.permute.xlu0 %774  ;;  %v935_v19 = vadd.f32 %v930_v31, %v3270_v52 }
 0x212   : > { %v785_v39 = vadd.f32 %v775_v2, %v3348_v63  ;;  %v1195_v9 = vpop.permute.xlu2 %1194  ;;  %v1648_v63 = vrot.slane %v1431_v3, 1  ;;  %v937_v3 = vadd.f32 %v932_v45, %v3353_v55 }
 0x213   : > { %v966_v33 = vadd.f32 %v954_v48, %v935_v19 }
 0x214   : > { %v1013_v5 = vrot.slane %v785_v39, 1  ;;  %v1175_v39 = vmul.f32 %v3040_v24, %v3174_v59 }
 0x216   : > { %v1014_v26 = vsel %vm1005_vm0, %v1011_v57, %v1013_v5 }
 0x217   : > { %v1022_v32 = vadd.f32 %v1014_v26, %v571_v35  ;;  %v1179_v26 = vadd.f32 %v1175_v39, %v1171_v49 }
 0x219   : > { %v1418_v54 = vpop.permute.xlu1 %1417  ;;  %v958_v16 = vpop.permute.xlu0 %957  ;;  %v1203_v29 = vadd.f32 %v1195_v9, %v1179_v26 }
 0x21a   : > { %v3436_v23 = vadd.f32 %v1418_v54, %v1400_v47  ;;  %v989_v62 = vpop.permute.xlu2 %988  ;;  %v968_v61 = vadd.f32 %v958_v16, %v937_v3  ;;  %v936_v54 = vadd.f32 %v931_v27, %v3356_v44  ;;  %v1571_v16 = vmul.f32 %v3040_v24, %v3168_v17 }
 0x21c   : > { %v1646_v50 = vrot.slane %v3436_v23, 1  ;;  %v967_v28 = vadd.f32 %v3388_v42, %v936_v54  ;;  %v999_v51 = vadd.f32 %v989_v62, %v968_v61  ;;  %v1576_v62 = vadd.f32 %v1571_v16, %v3367_v60  ;;  %v2160_v60 = vld [vmem:[%s2382_s9 + $0x30] sm:$0xff] }
 0x21d   : > { %v1173_v3 = vmul.f32 %v2160_v60, %v3174_v59 }
 0x21e   : > { %v3443_v43 = vsel %vm1005_vm0, %v1646_v50, %v1648_v63 }
 0x221   : > { %v1593_v34 = vpop.permute.xlu1 %1592  ;;  %v1422_v57 = vpop.permute.xlu0 %1421 }
 0x222   : > { %v1432_v2 = vadd.f32 %v1422_v57, %v1402_v8  ;;  %v1627_v38 = vpop.permute.xlu2 %1626  ;;  %v1570_v57 = vmul.f32 %v3043_v10, %v3168_v17 }
 0x224   : > { %v1650_v18 = vrot.slane %v1432_v2, 1  ;;  %v1575_v48 = vadd.f32 %v1570_v57, %v3301_v4 }
 0x226   : > { %v1651_v5 = vsel %vm1005_vm0, %v1648_v63, %v1650_v18  ;;  %v1572_v63 = vmul.f32 %v3063_v30, %v3168_v17  ;;  %v1036_v18 = vrot.slane %v999_v51, 2  ;;  %v1605_v27 = vadd.f32 %v1593_v34, %v1575_v48 }
 0x228   : > { %v1577_v44 = vadd.f32 %v1572_v63, %v3364_v13 }
 0x229   : > { %v1191_v1 = vpop.permute.xlu1 %1190  ;;  %v1597_v35 = vpop.permute.xlu0 %1596 }
 0x22a   : > { %v1219_v47 = vpop.permute.xlu2 %1218  ;;  %v1607_v49 = vadd.f32 %v1597_v35, %v1577_v44  ;;  %v1606_v35 = vadd.f32 %v3414_v7, %v1576_v62 }
 0x22b   : > { %v1227_v12 = vadd.f32 %v1219_v47, %v1203_v29 }
 0x22c   : > { %v1637_v31 = vadd.f32 %v1627_v38, %v1607_v49 }
 0x22d   : > { %v1659_v8 = vadd.f32 %v1651_v5, %v1227_v12 }
 0x22e   : > { %v1672_v61 = vrot.slane %v1637_v31, 2 }
 0x231   : > { %v987_v55 = vpop.permute.xlu1 %986  ;;  %v985_v9 = vpop.permute.xlu0 %984 }
 0x232   : > { %v998_v52 = vadd.f32 %v987_v55, %v967_v28  ;;  %v997_v2 = vadd.f32 %v985_v9, %v966_v33  ;;  %v1217_v10 = vpop.permute.xlu2 %1216 }
 0x234   : > { %v1034_v30 = vrot.slane %v998_v52, 2  ;;  %v1032_v42 = vrot.slane %v997_v2, 2 }
 0x236   : > { %v1037_v39 = vsel %vm1028_vm1, %v1034_v30, %v1036_v18  ;;  %v1033_v45 = vsel %vm1028_vm1, %v1030_v22, %v1032_v42  ;;  %v1035_v24 = vsel %vm1028_vm1, %v1032_v42, %v1034_v30  ;;  %v1066_v22 = vmul.f32 %v3607_v53, %v3600_v36 }
 0x237   : > { %v1045_v17 = vadd.f32 %v1037_v39, %v1022_v32  ;;  %v1043_v13 = vadd.f32 %v1033_v45, %v3422_v37  ;;  %v1044_v5 = vadd.f32 %v1035_v24, %v3424_v58  ;;  %v1177_v58 = vadd.f32 %v1173_v3, %v3380_v20 }
 0x238   : > { %v1090_v54 = vadd.f32 %v3324_v11, %v1066_v22  ;;  %v1118_v20 = vmul.f32 %v3079_v14, %v2890_v6  ;;  %v1647_v11 = vsel %vm1005_vm0, %v1644_v46, %v1646_v50  ;;  %v1786_v22 = vld [vmem:[%s3557_s2] sm:$0xff] }
 0x239   : > { %v1625_v4 = vpop.permute.xlu1 %1624  ;;  %v1623_v26 = vpop.permute.xlu0 %1622  ;;  %v1050_v37 = vadd.f32 %v3332_v15, %v1045_v17  ;;  %v1201_v19 = vadd.f32 %v1191_v1, %v1177_v58  ;;  %v1048_v51 = vadd.f32 %v3332_v15, %v1043_v13  ;;  %v1049_v42 = vadd.f32 %v3332_v15, %v1044_v5 }
 0x23a   : > { %v1636_v29 = vadd.f32 %v1625_v4, %v1606_v35  ;;  %v1635_v56 = vadd.f32 %v1623_v26, %v1605_v27  ;;  %v1114_v53 = vadd.f32 %v3404_v25, %v1090_v54 }
 0x23b   : > { %v1059_v36 = vmul.f32 %v3346_v21, %v1050_v37  ;;  %vm1054_vm5 = vcmp.ge.f32.partialorder %v1050_v37, 0.0  ;;  %v1057_v50 = vmul.f32 %v3346_v21, %v1048_v51  ;;  %vm1052_vm7 = vcmp.ge.f32.partialorder %v1048_v51, 0.0 }
 0x23c   : > { %v1670_v32 = vrot.slane %v1636_v29, 2  ;;  %v1668_v47 = vrot.slane %v1635_v56, 2  ;;  %v1122_v14 = vadd.f32 %v1118_v20, %v1114_v53  ;;  %v1058_v45 = vmul.f32 %v3346_v21, %v1049_v42 }
 0x23d   : > { %v1063_v57 = vsel %vm1054_vm5, %v1050_v37, %v1059_v36  ;;  %v1061_v2 = vsel %vm1052_vm7, %v1048_v51, %v1057_v50  ;;  %vm1053_vm9 = vcmp.ge.f32.partialorder %v1049_v42, 0.0 }
 0x23e   : > { %v1673_v7 = vsel %vm1028_vm1, %v1670_v32, %v1672_v61  ;;  %v1671_v34 = vsel %vm1028_vm1, %v1668_v47, %v1670_v32  ;;  %v1669_v25 = vsel %vm1028_vm1, %v1666_v41, %v1668_v47  ;;  %v1062_v17 = vsel %vm1053_vm9, %v1049_v42, %v1058_v45  ;;  %v2075_v61 = vld [vmem:[%s3557_s2 + $0x10] sm:$0xff]  ;;  %v1787_v32 = vld [vmem:[%s3557_s2 + $0x8] sm:$0xff]  ;;  %v2076_v47 = vld [vmem:[%s3557_s2 + $0x18] sm:$0xff] }
 0x23f   : > { %v1681_v38 = vadd.f32 %v1673_v7, %v1659_v8 }
 0x241   : > { %v1685_v12 = vadd.f32 %v1681_v38, %v3332_v15  ;;  %v1215_v63 = vpop.permute.xlu1 %1214  ;;  %v1137_v28 = vpop.permute.xlu0 %1136 }
 0x242   : > { %v1225_v33 = vadd.f32 %v1215_v63, %v1201_v19  ;;  %v1146_v23 = vadd.f32 %v1137_v28, %v1122_v14 }
 0x243   : > { %vm1689_vm6 = vcmp.ge.f32.partialorder %v1685_v12, 0.0  ;;  %v1693_v1 = vmul.f32 %v1685_v12, %v3346_v21 }
 0x244   : > { %v1657_v8 = vadd.f32 %v1647_v11, %v1225_v33 }
 0x245   : > { %v1697_v55 = vsel %vm1689_vm6, %v1685_v12, %v1693_v1 }
 0x246   : > { %v1679_v6 = vadd.f32 %v1669_v25, %v1657_v8  ;;  %v1701_v9 = vmax.f32 %v1063_v57, %v1697_v55 }
 0x248   : > { %v1683_v46 = vadd.f32 %v1679_v6, %v3332_v15  ;;  %2064 = vmatmul.msk.f32.vlgmr.msra.gmra.mxu2 %vm1706_vm4, %v1701_v9  ;;  %2072 = vmatmul.msk.f32.vlgmr.msra.gmra.mxu3 %vm1706_vm4, %v1701_v9 }
 0x249   : > { %v1161_v40 = vpop.permute.xlu0 %1160  ;;  %v1193_v44 = vpop.permute.xlu1 %1192 }
 0x24a   : > { %v1170_v41 = vadd.f32 %v1161_v40, %v1146_v23  ;;  %vm1687_vm8 = vcmp.ge.f32.partialorder %v1683_v46, 0.0  ;;  %v1691_v16 = vmul.f32 %v1683_v46, %v3346_v21 }
 0x24c   : > { %v1178_v52 = vadd.f32 %v1174_v0, %v1170_v41  ;;  %v1695_v18 = vsel %vm1687_vm8, %v1683_v46, %v1691_v16 }
 0x24d   : > { %v1699_v59 = vmax.f32 %v1061_v2, %v1695_v18 }
 0x24e   : > { %v1202_v49 = vadd.f32 %v1193_v44, %v1178_v52 }
 0x24f   : > { %2062 = vmatmul.msk.f32.gmra.mxu0 %vm1706_vm4, %v1699_v59  ;;  %2070 = vmatmul.msk.f32.gmra.mxu1 %vm1706_vm4, %v1699_v59 }
 0x250   : > { %v1226_v30 = vadd.f32 %v1217_v10, %v1202_v49 }
 0x252   : > { %v1658_v48 = vadd.f32 %v3443_v43, %v1226_v30 }
 0x254   : > { %v1680_v62 = vadd.f32 %v1671_v34, %v1658_v48 }
 0x256   : > { %v1684_v39 = vadd.f32 %v1680_v62, %v3332_v15 }
 0x258   : > { %vm1688_vm10 = vcmp.ge.f32.partialorder %v1684_v39, 0.0  ;;  %v1692_v24 = vmul.f32 %v1684_v39, %v3346_v21 }
 0x25a   : > { %v1696_v13 = vsel %vm1688_vm10, %v1684_v39, %v1692_v24 }
 0x25b   : > { %v1700_v35 = vmax.f32 %v1062_v17, %v1696_v13 }
 0x25d   : > { %2063 = vmatmul.msk.f32.gmra.mxu0 %vm1706_vm4, %v1700_v35  ;;  %2071 = vmatmul.msk.f32.gmra.mxu1 %vm1706_vm4, %v1700_v35 }
 0x26c   : > { %v1736_v27 = vpop.f32.mrf.mxu0  ;;  %v1770_v5 = vpop.f32.mrf.mxu1 }
 0x26d   : > { %v1782_v56 = vmax.f32 %v1736_v27, %v1770_v5 }
 0x2cb   : > { %v1745_v31 = vpop.f32.mrf.mxu2  ;;  %v1779_v43 = vpop.f32.mrf.mxu3 }
 0x2cc   : > { %v1785_v4 = vmax.f32 %v1745_v31, %v1779_v43  ;;  %v1739_v15 = vpop.f32.mrf.mxu0  ;;  %v1773_v26 = vpop.f32.mrf.mxu1 }
 0x2cd   : > { %v1783_v21 = vmax.f32 %v1739_v15, %v1773_v26 }
 0x2ce   : > { %1806 = vmatpush.msrb.mxu2 %v1785_v4  ;;  %1838 = vmatpush.msrb.mxu3 %v1785_v4 }
 0x2da   : > { %v1742_v60 = vpop.f32.mrf.mxu0  ;;  %v1776_v3 = vpop.f32.mrf.mxu1 }
 0x2db   : > { %v1784_v29 = vmax.f32 %v1742_v60, %v1776_v3 }
 0x2dd   : > { %1807 = vmatpush.msrb.mxu2 %v1784_v29  ;;  %1839 = vmatpush.msrb.mxu3 %v1784_v29 }
 0x2df   : > { %1808 = vmatpush.msrb.mxu2 %v1783_v21  ;;  %1840 = vmatpush.msrb.mxu3 %v1783_v21 }
 0x2e1   : > { %1809 = vmatpush.msrb.mxu2 %v1782_v56  ;;  %1841 = vmatpush.msrb.mxu3 %v1782_v56 }
 0x2e2   : > { %2073 = vmatmul.msk.f32.vlgmr.msrb.gmra.mxu2 %vm1706_vm4, %v1786_v22  ;;  %2077 = vmatmul.msk.f32.vlgmr.msrb.gmra.mxu3 %vm1706_vm4, %v2075_v61 }
 0x2ea   : > { %2074 = vmatmul.msk.f32.gmra.mxu2 %vm1706_vm4, %v1787_v32  ;;  %2078 = vmatmul.msk.f32.gmra.mxu3 %vm1706_vm4, %v2076_v47 }
 0x365   : > { %v1811_v37 = vpop.f32.mrf.mxu2  ;;  %v1843_v58 = vpop.f32.mrf.mxu3 }
 0x366   : > { %v1849_v7 = vmax.f32 %v1811_v37, %v1843_v58 }
 0x368   : > { %1852 = vst.msk [vmem:[%s342_s28] sm:$0xff] %vm1851_vm11, %v1849_v7 }
 0x36d   : > { %v1814_v34 = vpop.f32.mrf.mxu2  ;;  %v1846_v38 = vpop.f32.mrf.mxu3 }
 0x36e   : > { %v1850_v54 = vmax.f32 %v1814_v34, %v1846_v38 }
 0x370   : > { %1853 = vst.msk [vmem:[%s342_s28 + $0x8] sm:$0xff] %vm1851_vm11, %v1850_v54 }
 0x371 PF: > { %s16_s22 = sadd.s32 1, %s2218_s22   ;;  %s3626_s18 = smov %s2210_s20 }
 0x372   : > { %p13_p12 = scmp.ge.s32.totalorder %s16_s22, 18   ;;  %s3627_s19 = smov %s2214_s21 }
 0x373   : > { %s3628_s20 = smov %s3631_s24  ;;  %s3629_s21 = smov %s3635_s25 }
 0x374   :  { %15 = sbr.rel (!%p13_p12) target bundleno = 3 (0x3), region = 84 }
 0x379   :  { %1892 = vsyncpa [#allocation3], 1 }
 0x37a   :  { %1894 = vsyncpa [#allocation3 + $0x1], 1 }

// kernel: _lambda_.6
= control target key start
LH: loop header
LB: loop body
LE: loop exit
PB: predicated region body
PF: predicated region fallthrough
CT: control target
= control target key end

     0   :  { %10 = vsyncpa [#allocation3], 0  ;;  %s1309_s18 = smov 0   ;;  %s1311_s19 = smov 0   ;;  %s1646_s0 = inlined_call_operand.vmem [shape: f32[29], index: 0, kind: input, shape index: {}]   ;;  %s1647_s1 = inlined_call_operand.vmem [shape: f32[2,8,4], index: 1, kind: input, shape index: {}]   ;;  %s1648_s2 = inlined_call_operand.vmem [shape: f32[2,4,8], index: 2, kind: input, shape index: {}]   ;;  %s1649_s3 = inlined_call_operand.vmem [shape: f32[2,6,16,10], index: 3, kind: input, shape index: {}, may-alias: {3,4}]   ;;  %s1650_s4 = inlined_call_operand.vmem [shape: f32[2,6,16,10], index: 4, kind: input, shape index: {}, may-alias: {3,4}]   ;;  %s1651_s5 = inlined_call_operand.vmem [shape: f32[2,2,4,4], index: 5, kind: output, shape index: {}]  }
   0x1   :  { %s1313_s20 = smov 0   ;;  %s1315_s21 = smov 0  }
   0x2   :  { %s1317_s22 = smov 0  }
   0x3 LB: > { %s1106_s23 = sadd.s32 4294967295, %s1274_s22   ;;  %s31_s24 = sadd.s32 1, %s1266_s20  ;;  %s1274_s22 = sphi %s1317_s22, %s16_s22   ;;  %s1270_s21 = sphi %s1315_s21, %s1655_s21   ;;  %s1266_s20 = sphi %s1313_s20, %s1654_s20   ;;  %s1262_s19 = sphi %s1311_s19, %s1653_s19   ;;  %s1258_s18 = sphi %s1309_s18, %s1652_s18  }
   0x4   : > { %p33_p0 = scmp.ge.s32.totalorder %s31_s24, 2  ;;  %s35_s25 = sadd.s32 1, %s1270_s21 }
   0x5   : > { %p1108_p1 = scmp.ge.s32.totalorder %s1274_s22, 1  ;;  %p191_p2 = scmp.lt.s32.totalorder %s1274_s22, 5 }
   0x6   : > { %s1657_s24 = smov (%p33_p0, %s31_s24), 0  ;;  %s1659_s25 = smov (!%p33_p0, %s35_s25), %s1270_s21 }
   0x7   : > { %p192_p3 = pnand %p1108_p1, %p191_p2  ;;  %p37_p4 = scmp.ge.s32.totalorder %s1659_s25, 2 }
   0x8   : > { %p1172_p5 = scmp.eq.s32.totalorder %s1106_s23, 0  ;;  %s203_s28 = sshll.u32 %s1646_s0, 4  ;;  %s204_s28 = int_to_ptr.vmem [resolvable:$true] %s203_s28 }
   0x9   : > { %p1168_p6 = pneg %p192_p3  ;;  %s1661_s25 = smov (%p37_p4, %s1659_s25), 0 }
   0xa   : > { %s1276_s29 = smov [#allocation2]   ;;  %252 = sbr.rel (%p192_p3) target bundleno = 575 (0x23f), region = 40 }
   0xb   : > { %p1169_p7 = pnand %p1172_p5, %p1168_p6 }
   0xd   : > { %1171 = dma.vmem_to_smem (!%p1169_p7), %s204_s28, 16, %s1276_s29, [#allocation3]  }
   0xf   : > { %1253 = dma.done.wait (%p1172_p5), [#allocation3], 16  }
  0x10   : > { %1255 = vsyncadd (%p1172_p5), [#allocation3], 4294967280 }
  0x11   : > { %259 = sfence }
  0x12   : > { %s1348_s30 = sshll.u32 %s1258_s18, 1  ;;  %p305_p8 = scmp.lt.s32.totalorder %s1262_s19, 1  ;;  %vm616_vm0 = vcmask 1046528   ;;  %vm624_vm1 = vcmask 1045504   ;;  %vm861_vm4 = vcmask 64512   ;;  %vm958_vm5 = vcmask 27648  }
  0x13   : > { %p307_p9 = scmp.lt.s32.totalorder %s1348_s30, 5  ;;  %s1128_s6 = sld [smem:[#allocation2 + $0x4]] }
  0x14   : > { %s1663_s19 = smov (!%p305_p8, %s1262_s19), 1  ;;  %s1129_s10 = sld [smem:[#allocation2 + $0x5]] }
  0x15   : > { %s308_s7 = scalar_select %p307_p9, %s1348_s30, 5 }
  0x16   : > { %s1163_s8 = smul.u32 12, %s1663_s19  ;;  %s1277_s16 = smov 127  }
  0x17   : > { %s1114_s9 = sshll.u32 %s308_s7, 1  ;;  %s1131_s17 = sld [smem:[#allocation2 + $0x7]] }
  0x18   : > { %s311_s11 = sadd.s32 %s1163_s8, %s1114_s9  ;;  %s1278_s23 = smov 126  }
  0x19   : > { %s1115_s12 = sshll.u32 %s311_s11, 3  ;;  %v435_v0 = vstv %s1128_s6  ;;  %s1125_s26 = sld [smem:[#allocation2 + $0x1]] }
  0x1a   : > { %s313_s15 = scalar_lea.vmem %s1649_s3, %s1115_s12  ;;  %v448_v5 = vstv %s1129_s10  ;;  %s1132_s27 = sld [smem:[#allocation2 + $0x8]] }
  0x1b   : > { %v1362_v1 = vld [vmem:[%s313_s15 + $0x10] sm:$0xff]  ;;  %v1364_v2 = vld [vmem:[%s313_s15] sm:$0xff]  ;;  %v1371_v7 = vld [vmem:[%s313_s15 + $0x18] sm:$0xff]  ;;  %s1162_s28 = sadd.s32 2, %s1348_s30  ;;  %s1126_s29 = sld [smem:[#allocation2 + $0x2]] }
  0x1c   : > { %v679_v3 = vmul.f32 %v1362_v1, %v435_v0  ;;  %v436_v4 = vmul.f32 %v435_v0, %v1364_v2  ;;  %v449_v6 = vmul.f32 %v448_v5, %v1364_v2  ;;  %v1373_v8 = vld [vmem:[%s313_s15 + $0x8] sm:$0xff]  ;;  %v680_v9 = vmul.f32 %v1371_v7, %v435_v0  ;;  %p319_p10 = scmp.lt.s32.totalorder %s1162_s28, 5  ;;  %s1137_s6 = sld [smem:[#allocation2 + $0xd]] }
  0x1d   : > { %v437_v10 = vmul.f32 %v435_v0, %v1373_v8  ;;  %v450_v11 = vmul.f32 %v448_v5, %v1373_v8  ;;  %v526_v12 = vstv %s1131_s17  ;;  %v691_v15 = vmul.f32 %v1362_v1, %v448_v5  ;;  %s1140_s13 = sld [smem:[#allocation2 + $0x10]]  ;;  %p330_p11 = scmp.lt.s32.totalorder %s1258_s18, 1 }
  0x1e   : > { %683 = vrot.lane.b32.xlu1 %v679_v3, %s1277_s16  ;;  %440 = vrot.lane.b32.xlu0 %v436_v4, %s1277_s16  ;;  %v528_v13 = vmul.f32 %v526_v12, %v1373_v8  ;;  %v527_v14 = vmul.f32 %v526_v12, %v1364_v2  ;;  %v761_v16 = vmul.f32 %v1362_v1, %v526_v12  ;;  %s1665_s28 = smov (!%p319_p10, %s1162_s28), 5  ;;  %s1134_s14 = sld [smem:[#allocation2 + $0xa]] }
  0x1f   : > { %453 = vrot.lane.b32.xlu2 %v449_v6, %s1278_s23  ;;  %v692_v17 = vmul.f32 %v1371_v7, %v448_v5  ;;  %v762_v18 = vmul.f32 %v1371_v7, %v526_v12  ;;  %v384_v19 = vstv %s1125_s26  ;;  %s1117_s30 = sshll.u32 %s1665_s28, 1  ;;  %s1141_s15 = sld [smem:[#allocation2 + $0x11]] }
  0x20   : > { %v539_v20 = vstv %s1132_s27  ;;  %v637_v21 = vmul.f32 %v1362_v1, %v384_v19  ;;  %v385_v22 = vmul.f32 %v384_v19, %v1364_v2  ;;  %s323_s7 = sadd.s32 %s1163_s8, %s1117_s30  ;;  %s1138_s8 = sld [smem:[#allocation2 + $0xe]] }
  0x21   : > { %v540_v23 = vmul.f32 %v539_v20, %v1364_v2  ;;  %v773_v24 = vmul.f32 %v1362_v1, %v539_v20  ;;  %v541_v25 = vmul.f32 %v539_v20, %v1373_v8  ;;  %v774_v26 = vmul.f32 %v1371_v7, %v539_v20  ;;  %s1118_s9 = sshll.u32 %s323_s7, 3  ;;  %s1135_s17 = sld [smem:[#allocation2 + $0xb]] }
  0x22   : > { %v391_v27 = vstv %s1126_s29  ;;  %v466_v28 = vstv %s1137_s6  ;;  %s1415_s12 = scalar_lea.vmem %s1650_s4, %s1118_s9  ;;  %s1146_s26 = sld [smem:[#allocation2 + $0x16]] }
  0x23   : > { %v643_v29 = vmul.f32 %v1362_v1, %v391_v27  ;;  %v392_v30 = vmul.f32 %v391_v27, %v1364_v2  ;;  %v467_v31 = vmul.f32 %v1362_v1, %v466_v28  ;;  %v1420_v32 = vld [vmem:[%s1415_s12] sm:$0xff]  ;;  %v1424_v33 = vld [vmem:[%s1415_s12 + $0x8] sm:$0xff]  ;;  %v468_v35 = vmul.f32 %v1371_v7, %v466_v28  ;;  %s1147_s27 = sld [smem:[#allocation2 + $0x17]]  ;;  %v1468_v63 = vld [vmem:[%s1415_s12 + $0x18] sm:$0xff]  ;;  %s1667_s18 = smov (!%p330_p11, %s1258_s18), 1 }
  0x24   : > { %v707_v34 = vmul.f32 %v466_v28, %v1420_v32  ;;  %v708_v36 = vmul.f32 %v466_v28, %v1424_v33  ;;  %v557_v38 = vstv %s1140_s13  ;;  %v401_v45 = vstv %s1134_s14  ;;  %s1127_s28 = sld [smem:[#allocation2 + $0x3]]  ;;  %v1471_v0 = vld [vmem:[%s1415_s12 + $0x10] sm:$0xff] }
  0x25   : > { %v558_v41 = vmul.f32 %v1362_v1, %v557_v38  ;;  %v559_v43 = vmul.f32 %v1371_v7, %v557_v38  ;;  %v790_v46 = vmul.f32 %v557_v38, %v1424_v33  ;;  %v789_v47 = vmul.f32 %v557_v38, %v1420_v32  ;;  %s1149_s29 = sld [smem:[#allocation2 + $0x19]] }
  0x26   : > { %685 = vrot.lane.b32.xlu1 %v680_v9, %s1277_s16  ;;  %442 = vrot.lane.b32.xlu0 %v437_v10, %s1277_s16  ;;  %v479_v37 = vstv %s1138_s8  ;;  %v402_v48 = vmul.f32 %v1362_v1, %v401_v45  ;;  %v570_v49 = vstv %s1141_s15  ;;  %v651_v51 = vmul.f32 %v401_v45, %v1420_v32  ;;  %s1130_s6 = sld [smem:[#allocation2 + $0x6]] }
  0x27   : > { %455 = vrot.lane.b32.xlu2 %v450_v11, %s1278_s23  ;;  %v481_v39 = vmul.f32 %v1371_v7, %v479_v37  ;;  %v480_v40 = vmul.f32 %v1362_v1, %v479_v37  ;;  %v719_v42 = vmul.f32 %v479_v37, %v1420_v32  ;;  %v720_v44 = vmul.f32 %v479_v37, %v1424_v33  ;;  %s1143_s30 = sld [smem:[#allocation2 + $0x13]] }
  0x28   : > { %v571_v50 = vmul.f32 %v1362_v1, %v570_v49  ;;  %v572_v52 = vmul.f32 %v1371_v7, %v570_v49  ;;  %v408_v53 = vstv %s1135_s17  ;;  %v802_v55 = vmul.f32 %v570_v49, %v1424_v33  ;;  %s1136_s7 = sld [smem:[#allocation2 + $0xc]] }
  0x29   : > { %v801_v56 = vmul.f32 %v570_v49, %v1420_v32  ;;  %v409_v57 = vmul.f32 %v1362_v1, %v408_v53  ;;  %v497_v58 = vstv %s1146_s26  ;;  %v657_v61 = vmul.f32 %v408_v53, %v1420_v32  ;;  %s1150_s9 = sld [smem:[#allocation2 + $0x1a]] }
  0x2a   : > { %v498_v60 = vmul.f32 %v497_v58, %v1420_v32  ;;  %v499_v62 = vmul.f32 %v497_v58, %v1424_v33  ;;  %v510_v3 = vstv %s1147_s27  ;;  %v736_v5 = vmul.f32 %v1468_v63, %v497_v58  ;;  %s1144_s10 = sld [smem:[#allocation2 + $0x14]] }
  0x2b   : > { %v735_v6 = vmul.f32 %v1471_v0, %v497_v58  ;;  %v432_v9 = vstv %s1127_s28  ;;  %v511_v10 = vmul.f32 %v510_v3, %v1420_v32  ;;  %v512_v20 = vmul.f32 %v510_v3, %v1424_v33  ;;  %s1139_s11 = sld [smem:[#allocation2 + $0xf]] }
  0x2c   : > { %v677_v11 = vmul.f32 %v1362_v1, %v432_v9  ;;  %v433_v12 = vmul.f32 %v432_v9, %v1364_v2  ;;  %v523_v28 = vstv %s1130_s6  ;;  %s1534_s12 = sld [smem:[#allocation2 + $0x9]] }
  0x2d   : > { %v524_v37 = vmul.f32 %v523_v28, %v1364_v2  ;;  %s1578_s8 = sld [smem:[#allocation2 + $0x12]] }
  0x2e   : > { %533 = vrot.lane.b32.xlu1 %v528_v13, %s1277_s16  ;;  %531 = vrot.lane.b32.xlu0 %v527_v14, %s1277_s16  ;;  %v588_v13 = vstv %s1149_s29  ;;  %s1148_s13 = sld [smem:[#allocation2 + $0x18]] }
  0x2f   : > { %695 = vrot.lane.b32.xlu2 %v691_v15, %s1278_s23  ;;  %v589_v19 = vmul.f32 %v588_v13, %v1420_v32  ;;  %v818_v45 = vmul.f32 %v1468_v63, %v588_v13  ;;  %v601_v53 = vstv %s1150_s9  ;;  %s1151_s27 = sld [smem:[#allocation2 + $0x1b]]  ;;  %s1119_s9 = sshll.u32 %s1663_s19, 1 }
  0x30   : > { %s1152_s28 = sld [smem:[#allocation2 + $0x1c]] }
  0x36   : > { %765 = vrot.lane.b32.xlu1 %v761_v16, %s1277_s16  ;;  %697 = vrot.lane.b32.xlu0 %v692_v17, %s1278_s23 }
  0x37   : > { %767 = vrot.lane.b32.xlu2 %v762_v18, %s1277_s16 }
  0x3e   : > { %639 = vrot.lane.b32.xlu1 %v637_v21, %s1277_s16  ;;  %387 = vrot.lane.b32.xlu0 %v385_v22, %s1277_s16 }
  0x3f   : > { %544 = vrot.lane.b32.xlu2 %v540_v23, %s1278_s23  ;;  %v590_v23 = vmul.f32 %v588_v13, %v1424_v33 }
  0x46   : > { %777 = vrot.lane.b32.xlu1 %v773_v24, %s1278_s23  ;;  %546 = vrot.lane.b32.xlu0 %v541_v25, %s1278_s23  ;;  %v434_v24 = vmul.f32 %v432_v9, %v1373_v8 }
  0x47   : > { %779 = vrot.lane.b32.xlu2 %v774_v26, %s1278_s23 }
  0x4e   : > { %645 = vrot.lane.b32.xlu1 %v643_v29, %s1278_s23  ;;  %394 = vrot.lane.b32.xlu0 %v392_v30, %s1278_s23  ;;  %v748_v30 = vmul.f32 %v1468_v63, %v510_v3 }
  0x4f   : > { %471 = vrot.lane.b32.xlu2 %v467_v31, %s1277_s16  ;;  %v747_v31 = vmul.f32 %v1471_v0, %v510_v3 }
  0x56   : > { %711 = vrot.lane.b32.xlu1 %v707_v34, %s1277_s16  ;;  %473 = vrot.lane.b32.xlu0 %v468_v35, %s1277_s16  ;;  %v760_v34 = vmul.f32 %v1371_v7, %v523_v28 }
  0x57   : > { %713 = vrot.lane.b32.xlu2 %v708_v36, %s1277_s16  ;;  %v817_v36 = vmul.f32 %v1471_v0, %v588_v13  ;;  %v1524_v13 = vstv %s1139_s11 }
  0x5e   : > { %486 = vrot.lane.b32.xlu1 %v481_v39, %s1278_s23  ;;  %484 = vrot.lane.b32.xlu0 %v480_v40, %s1278_s23  ;;  %v418_v39 = vstv %s1143_s30 }
  0x5f   : > { %562 = vrot.lane.b32.xlu2 %v558_v41, %s1277_s16 }
  0x66   : > { %723 = vrot.lane.b32.xlu1 %v719_v42, %s1278_s23  ;;  %564 = vrot.lane.b32.xlu0 %v559_v43, %s1277_s16 }
  0x67   : > { %725 = vrot.lane.b32.xlu2 %v720_v44, %s1278_s23  ;;  %v419_v44 = vmul.f32 %v418_v39, %v1420_v32 }
  0x6e   : > { %795 = vrot.lane.b32.xlu1 %v790_v46, %s1277_s16  ;;  %793 = vrot.lane.b32.xlu0 %v789_v47, %s1277_s16  ;;  %v1503_v46 = vstv %s1136_s7  ;;  %v678_v47 = vmul.f32 %v1371_v7, %v432_v9 }
  0x6f   : > { %404 = vrot.lane.b32.xlu2 %v402_v48, %s1277_s16  ;;  %v704_v3 = vmul.f32 %v1503_v46, %v1424_v33 }
  0x76   : > { %575 = vrot.lane.b32.xlu1 %v571_v50, %s1278_s23  ;;  %653 = vrot.lane.b32.xlu0 %v651_v51, %s1277_s16  ;;  %v665_v50 = vmul.f32 %v1471_v0, %v418_v39  ;;  %v462_v51 = vmul.f32 %v1362_v1, %v1503_v46 }
  0x77   : > { %577 = vrot.lane.b32.xlu2 %v572_v52, %s1278_s23 }
  0x79   : > { %v454_v54 = vpop.permute.xlu2 %453 }
  0x7e   : > { %807 = vrot.lane.b32.xlu1 %v802_v55, %s1278_s23  ;;  %805 = vrot.lane.b32.xlu0 %v801_v56, %s1278_s23 }
  0x7f   : > { %411 = vrot.lane.b32.xlu2 %v409_v57, %s1278_s23 }
  0x81   : > { %v456_v59 = vpop.permute.xlu2 %455 }
  0x86   : > { %502 = vrot.lane.b32.xlu1 %v498_v60, %s1277_s16  ;;  %659 = vrot.lane.b32.xlu0 %v657_v61, %s1278_s23  ;;  %v602_v60 = vmul.f32 %v601_v53, %v1420_v32 }
  0x87   : > { %504 = vrot.lane.b32.xlu2 %v499_v62, %s1277_s16  ;;  %v829_v62 = vmul.f32 %v1471_v0, %v601_v53 }
  0x89   : > { %v696_v4 = vpop.permute.xlu2 %695 }
  0x8e   : > { %741 = vrot.lane.b32.xlu1 %v736_v5, %s1277_s16  ;;  %739 = vrot.lane.b32.xlu0 %v735_v6, %s1277_s16 }
  0x8f   : > { %515 = vrot.lane.b32.xlu2 %v511_v10, %s1278_s23 }
  0x90   : > { %v684_v14 = vpop.permute.xlu1 %683  ;;  %v441_v15 = vpop.permute.xlu0 %440 }
  0x91   : > { %v689_v16 = vadd.f32 %v684_v14, %v677_v11  ;;  %v446_v17 = vadd.f32 %v441_v15, %v433_v12  ;;  %v768_v18 = vpop.permute.xlu2 %767  ;;  %v830_v12 = vmul.f32 %v1468_v63, %v601_v53  ;;  %v525_v14 = vmul.f32 %v523_v28, %v1373_v8 }
  0x92   : > { %v772_v38 = vadd.f32 %v768_v18, %v760_v34  ;;  %v759_v15 = vmul.f32 %v1362_v1, %v523_v28  ;;  %v553_v18 = vmul.f32 %v1362_v1, %v1524_v13 }
  0x93   : > { %v1484_v21 = vadd.f32 %v696_v4, %v689_v16  ;;  %v459_v22 = vadd.f32 %v454_v54, %v446_v17  ;;  %v425_v4 = vstv %s1144_s10  ;;  %s336_s10 = sadd.s32 %s1119_s9, %s1667_s18 }
  0x94   : > { %v426_v11 = vmul.f32 %v425_v4, %v1420_v32  ;;  %v671_v17 = vmul.f32 %v1471_v0, %v425_v4  ;;  %s1120_s11 = sshll.u32 %s336_s10, 2 }
  0x95   : > { %v464_v56 = vadd.f32 %v462_v51, %v459_v22 }
  0x96   : > { %593 = vrot.lane.b32.xlu1 %v589_v19, %s1277_s16  ;;  %517 = vrot.lane.b32.xlu0 %v512_v20, %s1278_s23 }
  0x97   : > { %595 = vrot.lane.b32.xlu2 %v590_v23, %s1277_s16 }
  0x98   : > { %v686_v25 = vpop.permute.xlu1 %685  ;;  %v443_v26 = vpop.permute.xlu0 %442 }
  0x99   : > { %v447_v27 = vadd.f32 %v443_v26, %v434_v24  ;;  %v545_v29 = vpop.permute.xlu2 %544  ;;  %v690_v52 = vadd.f32 %v686_v25, %v678_v47 }
  0x9b   : > { %v1494_v35 = vadd.f32 %v456_v59, %v447_v27  ;;  %v603_v59 = vmul.f32 %v601_v53, %v1424_v33 }
  0x9e   : > { %753 = vrot.lane.b32.xlu1 %v748_v30, %s1278_s23  ;;  %751 = vrot.lane.b32.xlu0 %v747_v31, %s1278_s23 }
  0x9f   : > { %821 = vrot.lane.b32.xlu2 %v817_v36, %s1277_s16 }
  0xa0   : > { %v534_v40 = vpop.permute.xlu1 %533  ;;  %v532_v41 = vpop.permute.xlu0 %531 }
  0xa1   : > { %v537_v42 = vadd.f32 %v532_v41, %v524_v37  ;;  %v780_v43 = vpop.permute.xlu2 %779  ;;  %v538_v19 = vadd.f32 %v534_v40, %v525_v14  ;;  %v398_v41 = vstv %s1534_s12 }
  0xa2   : > { %v1506_v48 = vadd.f32 %v780_v43, %v772_v38  ;;  %v703_v43 = vmul.f32 %v1503_v46, %v1420_v32 }
  0xa3   : > { %v550_v49 = vadd.f32 %v545_v29, %v537_v42 }
  0xa5   : > { %v555_v25 = vadd.f32 %v553_v18, %v550_v49 }
  0xa6   : > { %421 = vrot.lane.b32.xlu1 %v419_v44, %s1277_s16  ;;  %823 = vrot.lane.b32.xlu0 %v818_v45, %s1277_s16  ;;  %v463_v44 = vmul.f32 %v1371_v7, %v1503_v46  ;;  %v705_v45 = vadd.f32 %v703_v43, %v1484_v21 }
  0xa7   : > { %667 = vrot.lane.b32.xlu2 %v665_v50, %s1277_s16  ;;  %s353_s16 = sld [smem:[#allocation2]] }
  0xa8   : > { %v766_v54 = vpop.permute.xlu1 %765  ;;  %v698_v55 = vpop.permute.xlu0 %697  ;;  %v465_v47 = vadd.f32 %v463_v44, %v1494_v35 }
  0xa9   : > { %v702_v57 = vadd.f32 %v698_v55, %v690_v52  ;;  %v472_v58 = vpop.permute.xlu2 %471  ;;  %v771_v20 = vadd.f32 %v766_v54, %v759_v15 }
  0xaa   : > { %v477_v61 = vadd.f32 %v472_v58, %v464_v56 }
  0xab   : > { %v706_v9 = vadd.f32 %v704_v3, %v702_v57 }
  0xad   : > { %v382_v22 = vstv %s353_s16 }
  0xae   : > { %608 = vrot.lane.b32.xlu1 %v603_v59, %s1278_s23  ;;  %606 = vrot.lane.b32.xlu0 %v602_v60, %s1278_s23  ;;  %v636_v28 = vmul.f32 %v1362_v1, %v382_v22  ;;  %v383_v29 = vmul.f32 %v382_v22, %v1364_v2  ;;  %v399_v2 = vmul.f32 %v1362_v1, %v398_v41 }
  0xaf   : > { %833 = vrot.lane.b32.xlu2 %v829_v62, %s1278_s23  ;;  %v554_v1 = vmul.f32 %v1371_v7, %v1524_v13 }
  0xb0   : > { %v640_v5 = vpop.permute.xlu1 %639  ;;  %v388_v6 = vpop.permute.xlu0 %387 }
  0xb1   : > { %v714_v10 = vpop.permute.xlu2 %713  ;;  %v642_v31 = vadd.f32 %v640_v5, %v636_v28  ;;  %v390_v34 = vadd.f32 %v388_v6, %v383_v29  ;;  %v785_v5 = vmul.f32 %v1524_v13, %v1420_v32  ;;  %v649_v29 = vmul.f32 %v398_v41, %v1420_v32 }
  0xb2   : > { %v718_v16 = vadd.f32 %v714_v10, %v706_v9 }
  0xb6   : > { %428 = vrot.lane.b32.xlu1 %v426_v11, %s1278_s23  ;;  %835 = vrot.lane.b32.xlu0 %v830_v12, %s1278_s23 }
  0xb7   : > { %673 = vrot.lane.b32.xlu2 %v671_v17, %s1278_s23  ;;  %s1145_s23 = sld [smem:[#allocation2 + $0x15]] }
  0xb8   : > { %v778_v23 = vpop.permute.xlu1 %777  ;;  %v547_v24 = vpop.permute.xlu0 %546 }
  0xb9   : > { %v783_v8 = vadd.f32 %v778_v23, %v771_v20  ;;  %v551_v26 = vadd.f32 %v547_v24, %v538_v19  ;;  %v563_v27 = vpop.permute.xlu2 %562 }
  0xba   : > { %v1538_v30 = vadd.f32 %v563_v27, %v555_v25 }
  0xbb   : > { %v556_v21 = vadd.f32 %v554_v1, %v551_v26  ;;  %v787_v6 = vadd.f32 %v785_v5, %v783_v8 }
  0xbd   : > { %v492_v22 = vstv %s1145_s23  ;;  %s338_s23 = scalar_lea.vmem %s1651_s5, %s1120_s11 }
  0xbe   : > { %v493_v23 = vmul.f32 %v492_v22, %v1420_v32  ;;  %v494_v25 = vmul.f32 %v492_v22, %v1424_v33  ;;  %v732_v43 = vmul.f32 %v1468_v63, %v492_v22  ;;  %v731_v44 = vmul.f32 %v1471_v0, %v492_v22 }
  0xc0   : > { %v646_v36 = vpop.permute.xlu1 %645  ;;  %v395_v37 = vpop.permute.xlu0 %394 }
  0xc1   : > { %v648_v38 = vadd.f32 %v646_v36, %v642_v31  ;;  %v397_v39 = vadd.f32 %v395_v37, %v390_v34  ;;  %v726_v40 = vpop.permute.xlu2 %725 }
  0xc2   : > { %v1541_v42 = vadd.f32 %v726_v40, %v718_v16 }
  0xc3   : > { %v400_v52 = vadd.f32 %v399_v2, %v397_v39  ;;  %v650_v37 = vadd.f32 %v649_v29, %v648_v38 }
  0xc8   : > { %v712_v49 = vpop.permute.xlu1 %711  ;;  %v474_v50 = vpop.permute.xlu0 %473 }
  0xc9   : > { %v717_v51 = vadd.f32 %v712_v49, %v705_v45  ;;  %v478_v53 = vadd.f32 %v474_v50, %v465_v47  ;;  %v405_v54 = vpop.permute.xlu2 %404  ;;  %v415_v50 = vstv %s1578_s8 }
  0xca   : > { %v1550_v55 = vadd.f32 %v405_v54, %v400_v52  ;;  %v663_v41 = vmul.f32 %v1471_v0, %v415_v50 }
  0xd0   : > { %v487_v56 = vpop.permute.xlu1 %486  ;;  %v485_v57 = vpop.permute.xlu0 %484 }
  0xd1   : > { %v491_v58 = vadd.f32 %v487_v56, %v478_v53  ;;  %v490_v59 = vadd.f32 %v485_v57, %v477_v61  ;;  %v1552_v60 = vpop.permute.xlu2 %577  ;;  %v734_v53 = vadd.f32 %v732_v43, %v1541_v42 }
  0xd3   : > { %v495_v26 = vadd.f32 %v493_v23, %v490_v59  ;;  %v496_v31 = vadd.f32 %v494_v25, %v491_v58 }
  0xd8   : > { %v724_v46 = vpop.permute.xlu1 %723  ;;  %v565_v35 = vpop.permute.xlu0 %564 }
  0xd9   : > { %v729_v62 = vadd.f32 %v724_v46, %v717_v51  ;;  %v1556_v3 = vadd.f32 %v565_v35, %v556_v21  ;;  %v1558_v4 = vpop.permute.xlu2 %411  ;;  %v860_v21 = vld [vmem:[%s1647_s1] sm:$0xff]  ;;  %v1154_v46 = vld [vmem:[%s1647_s1 + $0x8] sm:$0xff] }
  0xda   : > { %880 = vmatpush.msra.mxu0 %v860_v21  ;;  %902 = vmatpush.msra.mxu1 %v1154_v46 }
  0xdb   : > { %v733_v38 = vadd.f32 %v731_v44, %v729_v62 }
  0xe0   : > { %v1562_v9 = vpop.permute.xlu1 %795  ;;  %v794_v61 = vpop.permute.xlu0 %793 }
  0xe1   : > { %v1564_v10 = vadd.f32 %v794_v61, %v787_v6  ;;  %v505_v11 = vpop.permute.xlu2 %504 }
  0xe2   : > { %v509_v34 = vadd.f32 %v505_v11, %v496_v31 }
  0xe8   : > { %v1566_v12 = vpop.permute.xlu1 %575  ;;  %v654_v7 = vpop.permute.xlu0 %653 }
  0xe9   : > { %v516_v14 = vpop.permute.xlu2 %515  ;;  %v656_v45 = vadd.f32 %v654_v7, %v650_v37 }
  0xf0   : > { %v1568_v15 = vpop.permute.xlu1 %807  ;;  %v1570_v16 = vpop.permute.xlu0 %805 }
  0xf1   : > { %v1572_v17 = vpop.permute.xlu2 %595 }
  0xf8   : > { %v503_v18 = vpop.permute.xlu1 %502  ;;  %v660_v19 = vpop.permute.xlu0 %659 }
  0xf9   : > { %v1574_v20 = vpop.permute.xlu2 %821  ;;  %v508_v28 = vadd.f32 %v503_v18, %v495_v26  ;;  %v662_v52 = vadd.f32 %v660_v19, %v656_v45  ;;  %v786_v19 = vmul.f32 %v1524_v13, %v1424_v33 }
  0xfb   : > { %v521_v36 = vadd.f32 %v516_v14, %v508_v28  ;;  %v664_v58 = vadd.f32 %v663_v41, %v662_v52  ;;  %v583_v14 = vstv %s1148_s13  ;;  %v630_v52 = vstv %s1151_s27 }
  0xfc   : > { %v585_v25 = vmul.f32 %v583_v14, %v1424_v33  ;;  %v584_v26 = vmul.f32 %v583_v14, %v1420_v32  ;;  %v813_v31 = vmul.f32 %v1471_v0, %v583_v14  ;;  %v814_v33 = vmul.f32 %v1468_v63, %v583_v14 }
  0xfd   : > { %v617_v49 = vrot.slane %v521_v36, 1 }
 0x100   : > { %v742_v24 = vpop.permute.xlu1 %741  ;;  %v740_v8 = vpop.permute.xlu0 %739 }
 0x101   : > { %v668_v27 = vpop.permute.xlu2 %667  ;;  %v746_v56 = vadd.f32 %v742_v24, %v734_v53  ;;  %v745_v57 = vadd.f32 %v740_v8, %v733_v38  ;;  %v582_v24 = vadd.f32 %v1552_v60, %v1556_v3  ;;  %v581_v8 = vadd.f32 %v1566_v12, %v1538_v30 }
 0x102   : > { %v670_v42 = vadd.f32 %v668_v27, %v664_v58  ;;  %v788_v27 = vadd.f32 %v786_v19, %v1506_v48  ;;  %v811_v60 = vadd.f32 %v1570_v16, %v1564_v10  ;;  %v416_v30 = vmul.f32 %v415_v50, %v1420_v32 }
 0x103   : > { %v587_v28 = vadd.f32 %v585_v25, %v582_v24  ;;  %v586_v29 = vadd.f32 %v584_v26, %v581_v8  ;;  %v414_v48 = vadd.f32 %v1558_v4, %v1550_v55  ;;  %v633_v38 = vstv %s1152_s28 }
 0x104   : > { %v800_v13 = vadd.f32 %v1562_v9, %v788_v27  ;;  %v815_v9 = vadd.f32 %v813_v31, %v811_v60 }
 0x105   : > { %v417_v16 = vadd.f32 %v416_v30, %v414_v48 }
 0x106   : > { %v812_v37 = vadd.f32 %v1568_v15, %v800_v13  ;;  %v827_v10 = vadd.f32 %v1574_v20, %v815_v9 }
 0x108   : > { %v594_v39 = vpop.permute.xlu1 %593  ;;  %v518_v40 = vpop.permute.xlu0 %517  ;;  %v816_v32 = vadd.f32 %v814_v33, %v812_v37 }
 0x109   : > { %v522_v2 = vadd.f32 %v518_v40, %v509_v34  ;;  %v1583_v47 = vpop.permute.xlu2 %833  ;;  %v600_v34 = vadd.f32 %v1572_v17, %v587_v28  ;;  %v599_v3 = vadd.f32 %v594_v39, %v586_v29 }
 0x10a   : > { %v839_v39 = vadd.f32 %v1583_v47, %v827_v10 }
 0x10b   : > { %v618_v51 = vrot.slane %v522_v2, 1 }
 0x10d   : > { %v619_v54 = vsel %vm616_vm0, %v617_v49, %v618_v51  ;;  %v850_v49 = vrot.slane %v839_v39, 2 }
 0x110   : > { %v754_v59 = vpop.permute.xlu1 %753  ;;  %v752_v1 = vpop.permute.xlu0 %751 }
 0x111   : > { %v758_v35 = vadd.f32 %v754_v59, %v746_v56  ;;  %v757_v5 = vadd.f32 %v752_v1, %v745_v57  ;;  %v674_v62 = vpop.permute.xlu2 %673 }
 0x112   : > { %v676_v11 = vadd.f32 %v674_v62, %v670_v42  ;;  %v1157_v42 = vld [vmem:[%s1648_s2 + $0x4] sm:$0xf] }
 0x113   : > { %v844_v6 = vrot.slane %v758_v35, 1  ;;  %v843_v61 = vrot.slane %v757_v5, 1  ;;  %v908_v5 = vld [vmem:[%s1648_s2] sm:$0xf] }
 0x115   : > { %v845_v7 = vsel %vm616_vm0, %v843_v61, %v844_v6 }
 0x116   : > { %v847_v18 = vadd.f32 %v845_v7, %v676_v11 }
 0x118   : > { %v422_v22 = vpop.permute.xlu1 %421  ;;  %v824_v23 = vpop.permute.xlu0 %823 }
 0x119   : > { %v424_v44 = vadd.f32 %v422_v22, %v417_v16  ;;  %v828_v55 = vadd.f32 %v824_v23, %v816_v32 }
 0x120   : > { %v609_v12 = vpop.permute.xlu1 %608  ;;  %v607_v36 = vpop.permute.xlu0 %606 }
 0x121   : > { %v613_v0 = vadd.f32 %v609_v12, %v600_v34  ;;  %v612_v40 = vadd.f32 %v607_v36, %v599_v3 }
 0x123   : > { %v626_v17 = vrot.slane %v613_v0, 2  ;;  %v625_v43 = vrot.slane %v612_v40, 2 }
 0x125   : > { %v627_v63 = vsel %vm624_vm1, %v625_v43, %v626_v17 }
 0x128   : > { %v429_v4 = vpop.permute.xlu1 %428  ;;  %v836_v15 = vpop.permute.xlu0 %835 }
 0x129   : > { %v431_v2 = vadd.f32 %v429_v4, %v424_v44  ;;  %v840_v45 = vadd.f32 %v836_v15, %v828_v55 }
 0x12b   : > { %v621_v50 = vadd.f32 %v619_v54, %v431_v2  ;;  %v851_v51 = vrot.slane %v840_v45, 2 }
 0x12d   : > { %v629_v41 = vadd.f32 %v627_v63, %v621_v50  ;;  %v852_v20 = vsel %vm624_vm1, %v850_v49, %v851_v51 }
 0x12e   : > { %v854_v53 = vadd.f32 %v852_v20, %v847_v18 }
 0x12f   : > { %v631_v56 = vadd.f32 %v630_v52, %v629_v41 }
 0x130   : > { %v855_v57 = vadd.f32 %v854_v53, %v630_v52 }
 0x131   : > { %vm632_vm2 = vcmp.ge.f32.partialorder %v631_v56, 0.0  ;;  %v634_v58 = vmul.f32 %v633_v38, %v631_v56 }
 0x132   : > { %vm856_vm3 = vcmp.ge.f32.partialorder %v855_v57, 0.0  ;;  %v857_v47 = vmul.f32 %v855_v57, %v633_v38 }
 0x133   : > { %v635_v59 = vsel %vm632_vm2, %v631_v56, %v634_v58 }
 0x134   : > { %v858_v1 = vsel %vm856_vm3, %v855_v57, %v857_v47 }
 0x135   : > { %v859_v54 = vmax.f32 %v635_v59, %v858_v1 }
 0x137   : > { %1153 = vmatmul.msk.f32.vlgmr.msra.gmra.mxu0 %vm861_vm4, %v859_v54  ;;  %1155 = vmatmul.msk.f32.vlgmr.msra.gmra.mxu1 %vm861_vm4, %v859_v54 }
 0x1b4   : > { %v882_v21 = vpop.f32.mrf.mxu0  ;;  %v904_v46 = vpop.f32.mrf.mxu1 }
 0x1b5   : > { %v907_v35 = vmax.f32 %v882_v21, %v904_v46 }
 0x1b7   : > { %927 = vmatpush.msra.mxu2 %v907_v35  ;;  %952 = vmatpush.msra.mxu3 %v907_v35 }
 0x1b8   : > { %1156 = vmatmul.msk.f32.vlgmr.msra.gmra.mxu2 %vm861_vm4, %v908_v5  ;;  %1158 = vmatmul.msk.f32.vlgmr.msra.gmra.mxu3 %vm861_vm4, %v1157_v42 }
 0x23b   : > { %v929_v62 = vpop.f32.mrf.mxu2  ;;  %v954_v6 = vpop.f32.mrf.mxu3 }
 0x23c   : > { %v957_v61 = vmax.f32 %v929_v62, %v954_v6 }
 0x23e   : > { %959 = vst.msk [vmem:[%s338_s23] sm:$0xf] %vm958_vm5, %v957_v61 }
 0x23f PF: > { %s16_s22 = sadd.s32 1, %s1274_s22   ;;  %s1652_s18 = smov %s1266_s20 }
 0x240   : > { %p13_p12 = scmp.ge.s32.totalorder %s16_s22, 6   ;;  %s1653_s19 = smov %s1270_s21 }
 0x241   : > { %s1654_s20 = smov %s1657_s24  ;;  %s1655_s21 = smov %s1661_s25 }
 0x242   :  { %15 = sbr.rel (!%p13_p12) target bundleno = 3 (0x3), region = 84 }
 0x247   :  { %993 = vsyncpa [#allocation3], 1 }
 0x248   :  { %995 = vsyncpa [#allocation3 + $0x1], 1 }

// kernel: _lambda_.7
= control target key start
LH: loop header
LB: loop body
LE: loop exit
PB: predicated region body
PF: predicated region fallthrough
CT: control target
= control target key end

     0   :  { %vm882_vm0 = vcmask 31744   ;;  %s2039_s1 = inlined_call_operand.vmem [shape: bf16[128,1024], index: 1, kind: input, shape index: {}]   ;;  %s2040_s0 = inlined_call_operand.vmem [shape: bf16[8,128], index: 0, kind: input, shape index: {}]   ;;  %s2041_s3 = inlined_call_operand.vmem [shape: f32[1024,4], index: 3, kind: input, shape index: {}]   ;;  %s2042_s4 = inlined_call_operand.vmem [shape: f32[1,4], index: 4, kind: input, shape index: {}]   ;;  %s2043_s2 = inlined_call_operand.vmem [shape: f32[1,1024], index: 2, kind: input, shape index: {}]   ;;  %s2044_s5 = inlined_call_operand.vmem [shape: f32[8,4], index: 5, kind: output, shape index: {}]  }
   0x1   :  { %v1114_v0 = vld [vmem:[%s2039_s1 + $0x1c0] sm:$0xf]  ;;  %v1122_v2 = vld [vmem:[%s2039_s1 + $0x1c8] sm:$0xf]  ;;  %v1201_v5 = vld [vmem:[%s2039_s1 + $0x1cc] sm:$0xf] }
   0x2   :  { %v1204_v1 = vld [vmem:[%s2039_s1 + $0x1dc] sm:$0xf0]  ;;  %v1205_v4 = vld [vmem:[%s2039_s1 + $0x1e4] sm:$0xf0]  ;;  %v1124_v6 = vld [vmem:[%s2039_s1 + $0x1e8] sm:$0xf0] }
   0x3   :  { %v1115_v3 = vor.u32 %v1204_v1, %v1114_v0  ;;  %v1123_v7 = vor.u32 %v1205_v4, %v1122_v2  ;;  %v1127_v8 = vor.u32 %v1201_v5, %v1124_v6  ;;  %v1200_v9 = vld [vmem:[%s2039_s1 + $0x1c4] sm:$0xf]  ;;  %v1082_v11 = vld [vmem:[%s2039_s1 + $0x180] sm:$0xf]  ;;  %v1090_v14 = vld [vmem:[%s2039_s1 + $0x188] sm:$0xf] }
   0x4   :  { %v1116_v10 = vld [vmem:[%s2039_s1 + $0x1e0] sm:$0xf0]  ;;  %v1196_v13 = vld [vmem:[%s2039_s1 + $0x19c] sm:$0xf0]  ;;  %v1197_v15 = vld [vmem:[%s2039_s1 + $0x1a4] sm:$0xf0] }
   0x5   :  { %425 = vmatpush.bf16.msra.mxu0 %v1115_v3  ;;  %v1119_v12 = vor.u32 %v1200_v9, %v1116_v10  ;;  %451 = vmatpush.bf16.msra.mxu2 %v1123_v7  ;;  %v1083_v16 = vor.u32 %v1196_v13, %v1082_v11  ;;  %v1091_v17 = vor.u32 %v1197_v15, %v1090_v14  ;;  %v1193_v18 = vld [vmem:[%s2039_s1 + $0x18c] sm:$0xf]  ;;  %v1192_v20 = vld [vmem:[%s2039_s1 + $0x184] sm:$0xf]  ;;  %v1050_v23 = vld [vmem:[%s2039_s1 + $0x140] sm:$0xf] }
   0x6   :  { %464 = vmatpush.bf16.msra.mxu3 %v1127_v8  ;;  %v1092_v19 = vld [vmem:[%s2039_s1 + $0x1a8] sm:$0xf0]  ;;  %v1084_v22 = vld [vmem:[%s2039_s1 + $0x1a0] sm:$0xf0]  ;;  %v1188_v24 = vld [vmem:[%s2039_s1 + $0x15c] sm:$0xf0] }
   0x7   :  { %438 = vmatpush.bf16.msra.mxu1 %v1119_v12  ;;  %v1095_v21 = vor.u32 %v1193_v18, %v1092_v19  ;;  %v1087_v25 = vor.u32 %v1192_v20, %v1084_v22  ;;  %v1058_v26 = vld [vmem:[%s2039_s1 + $0x148] sm:$0xf]  ;;  %v1185_v28 = vld [vmem:[%s2039_s1 + $0x14c] sm:$0xf]  ;;  %v1051_v29 = vor.u32 %v1188_v24, %v1050_v23  ;;  %v1184_v31 = vld [vmem:[%s2039_s1 + $0x144] sm:$0xf] }
   0x8   :  { %v1189_v27 = vld [vmem:[%s2039_s1 + $0x164] sm:$0xf0]  ;;  %v1060_v30 = vld [vmem:[%s2039_s1 + $0x168] sm:$0xf0]  ;;  %v1052_v32 = vld [vmem:[%s2039_s1 + $0x160] sm:$0xf0] }
   0x9   :  { %426 = vmatpush.bf16.msra.mxu0 %v1083_v16  ;;  %452 = vmatpush.bf16.msra.mxu2 %v1091_v17  ;;  %v1059_v33 = vor.u32 %v1189_v27, %v1058_v26  ;;  %v1063_v34 = vor.u32 %v1185_v28, %v1060_v30  ;;  %v1018_v35 = vld [vmem:[%s2039_s1 + $0x100] sm:$0xf]  ;;  %v1026_v37 = vld [vmem:[%s2039_s1 + $0x108] sm:$0xf]  ;;  %v1055_v38 = vor.u32 %v1184_v31, %v1052_v32  ;;  %v1177_v40 = vld [vmem:[%s2039_s1 + $0x10c] sm:$0xf] }
   0xa   :  { %465 = vmatpush.bf16.msra.mxu3 %v1095_v21  ;;  %v1180_v36 = vld [vmem:[%s2039_s1 + $0x11c] sm:$0xf0]  ;;  %v1181_v39 = vld [vmem:[%s2039_s1 + $0x124] sm:$0xf0]  ;;  %v1028_v41 = vld [vmem:[%s2039_s1 + $0x128] sm:$0xf0] }
   0xb   :  { %439 = vmatpush.bf16.msra.mxu1 %v1087_v25  ;;  %v1176_v42 = vld [vmem:[%s2039_s1 + $0x104] sm:$0xf]  ;;  %v1019_v44 = vor.u32 %v1180_v36, %v1018_v35  ;;  %v1027_v45 = vor.u32 %v1181_v39, %v1026_v37  ;;  %v1031_v46 = vor.u32 %v1177_v40, %v1028_v41  ;;  %v986_v47 = vld [vmem:[%s2039_s1 + $0xc0] sm:$0xf]  ;;  %v994_v49 = vld [vmem:[%s2039_s1 + $0xc8] sm:$0xf] }
   0xc   :  { %v1020_v43 = vld [vmem:[%s2039_s1 + $0x120] sm:$0xf0]  ;;  %v1172_v48 = vld [vmem:[%s2039_s1 + $0xdc] sm:$0xf0]  ;;  %v1173_v51 = vld [vmem:[%s2039_s1 + $0xe4] sm:$0xf0] }
   0xd   :  { %427 = vmatpush.bf16.msra.mxu0 %v1051_v29  ;;  %453 = vmatpush.bf16.msra.mxu2 %v1059_v33  ;;  %v1023_v50 = vor.u32 %v1176_v42, %v1020_v43  ;;  %v1169_v52 = vld [vmem:[%s2039_s1 + $0xcc] sm:$0xf]  ;;  %v1168_v54 = vld [vmem:[%s2039_s1 + $0xc4] sm:$0xf]  ;;  %v987_v56 = vor.u32 %v1172_v48, %v986_v47  ;;  %v995_v57 = vor.u32 %v1173_v51, %v994_v49  ;;  %v954_v59 = vld [vmem:[%s2039_s1 + $0x80] sm:$0xf] }
   0xe   :  { %466 = vmatpush.bf16.msra.mxu3 %v1063_v34  ;;  %v996_v53 = vld [vmem:[%s2039_s1 + $0xe8] sm:$0xf0]  ;;  %v988_v55 = vld [vmem:[%s2039_s1 + $0xe0] sm:$0xf0]  ;;  %v1164_v60 = vld [vmem:[%s2039_s1 + $0x9c] sm:$0xf0] }
   0xf   :  { %440 = vmatpush.bf16.msra.mxu1 %v1055_v38  ;;  %v999_v58 = vor.u32 %v1169_v52, %v996_v53  ;;  %v962_v61 = vld [vmem:[%s2039_s1 + $0x88] sm:$0xf]  ;;  %v991_v62 = vor.u32 %v1168_v54, %v988_v55  ;;  %v1161_v0 = vld [vmem:[%s2039_s1 + $0x8c] sm:$0xf]  ;;  %v1160_v2 = vld [vmem:[%s2039_s1 + $0x84] sm:$0xf]  ;;  %v955_v4 = vor.u32 %v1164_v60, %v954_v59 }
  0x10   :  { %v1165_v63 = vld [vmem:[%s2039_s1 + $0xa4] sm:$0xf0]  ;;  %v964_v1 = vld [vmem:[%s2039_s1 + $0xa8] sm:$0xf0]  ;;  %v956_v3 = vld [vmem:[%s2039_s1 + $0xa0] sm:$0xf0] }
  0x11   :  { %428 = vmatpush.bf16.msra.mxu0 %v1019_v44  ;;  %454 = vmatpush.bf16.msra.mxu2 %v1027_v45  ;;  %v963_v5 = vor.u32 %v1165_v63, %v962_v61  ;;  %v967_v6 = vor.u32 %v1161_v0, %v964_v1  ;;  %v922_v7 = vld [vmem:[%s2039_s1 + $0x40] sm:$0xf]  ;;  %v930_v9 = vld [vmem:[%s2039_s1 + $0x48] sm:$0xf]  ;;  %v959_v10 = vor.u32 %v1160_v2, %v956_v3  ;;  %v1153_v12 = vld [vmem:[%s2039_s1 + $0x4c] sm:$0xf] }
  0x12   :  { %467 = vmatpush.bf16.msra.mxu3 %v1031_v46  ;;  %v1156_v8 = vld [vmem:[%s2039_s1 + $0x5c] sm:$0xf0]  ;;  %v1157_v11 = vld [vmem:[%s2039_s1 + $0x64] sm:$0xf0]  ;;  %v932_v13 = vld [vmem:[%s2039_s1 + $0x68] sm:$0xf0] }
  0x13   :  { %441 = vmatpush.bf16.msra.mxu1 %v1023_v50  ;;  %v1152_v14 = vld [vmem:[%s2039_s1 + $0x44] sm:$0xf]  ;;  %v923_v16 = vor.u32 %v1156_v8, %v922_v7  ;;  %v890_v17 = vld [vmem:[%s2039_s1] sm:$0xf]  ;;  %v931_v19 = vor.u32 %v1157_v11, %v930_v9  ;;  %v935_v20 = vor.u32 %v1153_v12, %v932_v13  ;;  %v898_v21 = vld [vmem:[%s2039_s1 + $0x8] sm:$0xf] }
  0x14   :  { %v924_v15 = vld [vmem:[%s2039_s1 + $0x60] sm:$0xf0]  ;;  %v1148_v18 = vld [vmem:[%s2039_s1 + $0x1c] sm:$0xf0]  ;;  %v1149_v22 = vld [vmem:[%s2039_s1 + $0x24] sm:$0xf0] }
  0x15   :  { %429 = vmatpush.bf16.msra.mxu0 %v987_v56  ;;  %455 = vmatpush.bf16.msra.mxu2 %v995_v57  ;;  %v1145_v23 = vld [vmem:[%s2039_s1 + $0xc] sm:$0xf]  ;;  %v927_v24 = vor.u32 %v1152_v14, %v924_v15  ;;  %v1130_v26 = vld [vmem:[%s2039_s1 + $0x1d0] sm:$0xf]  ;;  %v1138_v28 = vld [vmem:[%s2039_s1 + $0x1d8] sm:$0xf]  ;;  %v891_v31 = vor.u32 %v1148_v18, %v890_v17  ;;  %v899_v35 = vor.u32 %v1149_v22, %v898_v21 }
  0x16   :  { %468 = vmatpush.bf16.msra.mxu3 %v999_v58  ;;  %v900_v25 = vld [vmem:[%s2039_s1 + $0x28] sm:$0xf0]  ;;  %v1206_v27 = vld [vmem:[%s2039_s1 + $0x1ec] sm:$0xf0]  ;;  %v1207_v29 = vld [vmem:[%s2039_s1 + $0x1f4] sm:$0xf0] }
  0x17   :  { %442 = vmatpush.bf16.msra.mxu1 %v991_v62  ;;  %v1203_v30 = vld [vmem:[%s2039_s1 + $0x1dc] sm:$0xf]  ;;  %v1144_v33 = vld [vmem:[%s2039_s1 + $0x4] sm:$0xf]  ;;  %v903_v36 = vor.u32 %v1145_v23, %v900_v25  ;;  %v1202_v37 = vld [vmem:[%s2039_s1 + $0x1d4] sm:$0xf]  ;;  %v1131_v39 = vor.u32 %v1206_v27, %v1130_v26  ;;  %v1139_v40 = vor.u32 %v1207_v29, %v1138_v28 }
  0x18   :  { %v1140_v32 = vld [vmem:[%s2039_s1 + $0x1f8] sm:$0xf0]  ;;  %v892_v34 = vld [vmem:[%s2039_s1 + $0x20] sm:$0xf0]  ;;  %v1132_v38 = vld [vmem:[%s2039_s1 + $0x1f0] sm:$0xf0] }
  0x19   :  { %430 = vmatpush.bf16.msra.mxu0 %v955_v4  ;;  %456 = vmatpush.bf16.msra.mxu2 %v963_v5  ;;  %v1098_v41 = vld [vmem:[%s2039_s1 + $0x190] sm:$0xf]  ;;  %v1143_v42 = vor.u32 %v1203_v30, %v1140_v32  ;;  %v895_v43 = vor.u32 %v1144_v33, %v892_v34  ;;  %v1106_v45 = vld [vmem:[%s2039_s1 + $0x198] sm:$0xf]  ;;  %v1135_v47 = vor.u32 %v1202_v37, %v1132_v38  ;;  %v1195_v48 = vld [vmem:[%s2039_s1 + $0x19c] sm:$0xf] }
  0x1a   :  { %469 = vmatpush.bf16.msra.mxu3 %v967_v6  ;;  %v1198_v44 = vld [vmem:[%s2039_s1 + $0x1ac] sm:$0xf0]  ;;  %v1199_v46 = vld [vmem:[%s2039_s1 + $0x1b4] sm:$0xf0]  ;;  %v1108_v49 = vld [vmem:[%s2039_s1 + $0x1b8] sm:$0xf0] }
  0x1b   :  { %443 = vmatpush.bf16.msra.mxu1 %v959_v10  ;;  %v1194_v50 = vld [vmem:[%s2039_s1 + $0x194] sm:$0xf]  ;;  %v1482_v52 = vld [vmem:[%s2040_s0] sm:$0xf]  ;;  %v1099_v53 = vor.u32 %v1198_v44, %v1098_v41  ;;  %v1107_v54 = vor.u32 %v1199_v46, %v1106_v45  ;;  %v1066_v55 = vld [vmem:[%s2039_s1 + $0x150] sm:$0xf]  ;;  %v1111_v56 = vor.u32 %v1195_v48, %v1108_v49 }
  0x1c   :  { %v1100_v51 = vld [vmem:[%s2039_s1 + $0x1b0] sm:$0xf0]  ;;  %v1190_v57 = vld [vmem:[%s2039_s1 + $0x16c] sm:$0xf0]  ;;  %v1074_v58 = vld [vmem:[%s2039_s1 + $0x158] sm:$0xf] }
  0x1d   :  { %431 = vmatpush.bf16.msra.mxu0 %v923_v16  ;;  %457 = vmatpush.bf16.msra.mxu2 %v931_v19  ;;  %v1191_v59 = vld [vmem:[%s2039_s1 + $0x174] sm:$0xf0]  ;;  %v1103_v60 = vor.u32 %v1194_v50, %v1100_v51  ;;  %v1187_v61 = vld [vmem:[%s2039_s1 + $0x15c] sm:$0xf]  ;;  %v1186_v63 = vld [vmem:[%s2039_s1 + $0x154] sm:$0xf]  ;;  %v1067_v1 = vor.u32 %v1190_v57, %v1066_v55 }
  0x1e   :  { %470 = vmatpush.bf16.msra.mxu3 %v935_v20  ;;  %v1076_v62 = vld [vmem:[%s2039_s1 + $0x178] sm:$0xf0]  ;;  %v1068_v0 = vld [vmem:[%s2039_s1 + $0x170] sm:$0xf0]  ;;  %v1075_v2 = vor.u32 %v1191_v59, %v1074_v58  ;;  %v1034_v3 = vld [vmem:[%s2039_s1 + $0x110] sm:$0xf] }
  0x1f   :  { %444 = vmatpush.bf16.msra.mxu1 %v927_v24  ;;  %v1079_v4 = vor.u32 %v1187_v61, %v1076_v62  ;;  %v1182_v5 = vld [vmem:[%s2039_s1 + $0x12c] sm:$0xf0]  ;;  %v1042_v6 = vld [vmem:[%s2039_s1 + $0x118] sm:$0xf]  ;;  %v1071_v8 = vor.u32 %v1186_v63, %v1068_v0  ;;  %v1179_v9 = vld [vmem:[%s2039_s1 + $0x11c] sm:$0xf] }
  0x20   :  { %v1183_v7 = vld [vmem:[%s2039_s1 + $0x134] sm:$0xf0]  ;;  %v1044_v10 = vld [vmem:[%s2039_s1 + $0x138] sm:$0xf0]  ;;  %v1178_v11 = vld [vmem:[%s2039_s1 + $0x114] sm:$0xf]  ;;  %v1035_v13 = vor.u32 %v1182_v5, %v1034_v3 }
  0x21   :  { %432 = vmatpush.bf16.msra.mxu0 %v891_v31  ;;  %458 = vmatpush.bf16.msra.mxu2 %v899_v35  ;;  %v1036_v12 = vld [vmem:[%s2039_s1 + $0x130] sm:$0xf0]  ;;  %v1043_v14 = vor.u32 %v1183_v7, %v1042_v6  ;;  %v1002_v15 = vld [vmem:[%s2039_s1 + $0xd0] sm:$0xf]  ;;  %v1047_v16 = vor.u32 %v1179_v9, %v1044_v10  ;;  %v1010_v18 = vld [vmem:[%s2039_s1 + $0xd8] sm:$0xf] }
  0x22   :  { %471 = vmatpush.bf16.msra.mxu3 %v903_v36  ;;  %v1174_v17 = vld [vmem:[%s2039_s1 + $0xec] sm:$0xf0]  ;;  %v1175_v19 = vld [vmem:[%s2039_s1 + $0xf4] sm:$0xf0]  ;;  %v1039_v20 = vor.u32 %v1178_v11, %v1036_v12  ;;  %v1171_v21 = vld [vmem:[%s2039_s1 + $0xdc] sm:$0xf] }
  0x23   :  { %445 = vmatpush.bf16.msra.mxu1 %v895_v43  ;;  %v1012_v22 = vld [vmem:[%s2039_s1 + $0xf8] sm:$0xf0]  ;;  %v1170_v23 = vld [vmem:[%s2039_s1 + $0xd4] sm:$0xf]  ;;  %v1003_v25 = vor.u32 %v1174_v17, %v1002_v15  ;;  %v1011_v26 = vor.u32 %v1175_v19, %v1010_v18  ;;  %v970_v27 = vld [vmem:[%s2039_s1 + $0x90] sm:$0xf] }
  0x24   :  { %459 = vmatmul.bf16.vlgmr.msra.gmra.mxu2 %v1482_v52  ;;  %433 = vmatmul.bf16.vlgmr.msra.gmra.mxu0 %v1482_v52  ;;  %v1004_v24 = vld [vmem:[%s2039_s1 + $0xf0] sm:$0xf0]  ;;  %v1015_v28 = vor.u32 %v1171_v21, %v1012_v22  ;;  %v1166_v29 = vld [vmem:[%s2039_s1 + $0xac] sm:$0xf0]  ;;  %v978_v30 = vld [vmem:[%s2039_s1 + $0x98] sm:$0xf] }
  0x25   :  { %477 = vmatpush.bf16.msrb.mxu0 %v1131_v39  ;;  %503 = vmatpush.bf16.msrb.mxu2 %v1139_v40  ;;  %v1167_v31 = vld [vmem:[%s2039_s1 + $0xb4] sm:$0xf0]  ;;  %v1007_v32 = vor.u32 %v1170_v23, %v1004_v24  ;;  %v1163_v33 = vld [vmem:[%s2039_s1 + $0x9c] sm:$0xf]  ;;  %v1162_v35 = vld [vmem:[%s2039_s1 + $0x94] sm:$0xf]  ;;  %v971_v37 = vor.u32 %v1166_v29, %v970_v27 }
  0x26   :  { %516 = vmatpush.bf16.msrb.mxu3 %v1143_v42  ;;  %446 = vmatmul.bf16.vlgmr.msra.gmra.mxu1 %v1482_v52  ;;  %v980_v34 = vld [vmem:[%s2039_s1 + $0xb8] sm:$0xf0]  ;;  %v972_v36 = vld [vmem:[%s2039_s1 + $0xb0] sm:$0xf0]  ;;  %v979_v38 = vor.u32 %v1167_v31, %v978_v30  ;;  %v938_v39 = vld [vmem:[%s2039_s1 + $0x50] sm:$0xf] }
  0x27   :  { %490 = vmatpush.bf16.msrb.mxu1 %v1135_v47  ;;  %472 = vmatmul.bf16.vlgmr.msra.gmra.mxu3 %v1482_v52  ;;  %v983_v40 = vor.u32 %v1163_v33, %v980_v34  ;;  %v1158_v41 = vld [vmem:[%s2039_s1 + $0x6c] sm:$0xf0]  ;;  %v946_v42 = vld [vmem:[%s2039_s1 + $0x58] sm:$0xf]  ;;  %v975_v44 = vor.u32 %v1162_v35, %v972_v36  ;;  %v1155_v45 = vld [vmem:[%s2039_s1 + $0x5c] sm:$0xf] }
  0x28   :  { %v1159_v43 = vld [vmem:[%s2039_s1 + $0x74] sm:$0xf0]  ;;  %v948_v46 = vld [vmem:[%s2039_s1 + $0x78] sm:$0xf0]  ;;  %v1154_v47 = vld [vmem:[%s2039_s1 + $0x54] sm:$0xf]  ;;  %v939_v49 = vor.u32 %v1158_v41, %v938_v39 }
  0x29   :  { %478 = vmatpush.bf16.msrb.mxu0 %v1099_v53  ;;  %504 = vmatpush.bf16.msrb.mxu2 %v1107_v54  ;;  %v940_v48 = vld [vmem:[%s2039_s1 + $0x70] sm:$0xf0]  ;;  %v947_v50 = vor.u32 %v1159_v43, %v946_v42  ;;  %v906_v51 = vld [vmem:[%s2039_s1 + $0x10] sm:$0xf]  ;;  %v951_v53 = vor.u32 %v1155_v45, %v948_v46  ;;  %v914_v55 = vld [vmem:[%s2039_s1 + $0x18] sm:$0xf] }
  0x2a   :  { %517 = vmatpush.bf16.msrb.mxu3 %v1111_v56  ;;  %v1150_v54 = vld [vmem:[%s2039_s1 + $0x2c] sm:$0xf0]  ;;  %v1151_v56 = vld [vmem:[%s2039_s1 + $0x34] sm:$0xf0]  ;;  %v943_v57 = vor.u32 %v1154_v47, %v940_v48  ;;  %v1147_v58 = vld [vmem:[%s2039_s1 + $0x1c] sm:$0xf] }
  0x2b   :  { %491 = vmatpush.bf16.msrb.mxu1 %v1103_v60  ;;  %v916_v59 = vld [vmem:[%s2039_s1 + $0x38] sm:$0xf0]  ;;  %v1146_v60 = vld [vmem:[%s2039_s1 + $0x14] sm:$0xf]  ;;  %v907_v62 = vor.u32 %v1150_v54, %v906_v51  ;;  %v915_v63 = vor.u32 %v1151_v56, %v914_v55  ;;  %v603_v7 = vld [vmem:[%s2041_s3 + $0x68] sm:$0xff] }
  0x2c   :  { %v908_v61 = vld [vmem:[%s2039_s1 + $0x30] sm:$0xf0]  ;;  %v919_v0 = vor.u32 %v1147_v58, %v916_v59  ;;  %v637_v3 = vld [vmem:[%s2041_s3 + $0x178] sm:$0xff]  ;;  %v635_v9 = vld [vmem:[%s2041_s3 + $0x168] sm:$0xff] }
  0x2d   :  { %479 = vmatpush.bf16.msrb.mxu0 %v1067_v1  ;;  %505 = vmatpush.bf16.msrb.mxu2 %v1075_v2  ;;  %v911_v1 = vor.u32 %v1146_v60, %v908_v61  ;;  %v605_v2 = vld [vmem:[%s2041_s3 + $0x78] sm:$0xff]  ;;  %v636_v5 = vld [vmem:[%s2041_s3 + $0x170] sm:$0xff]  ;;  %v602_v11 = vld [vmem:[%s2041_s3 + $0x60] sm:$0xff] }
  0x2e   :  { %518 = vmatpush.bf16.msrb.mxu3 %v1079_v4  ;;  %v604_v4 = vld [vmem:[%s2041_s3 + $0x70] sm:$0xff]  ;;  %v621_v6 = vld [vmem:[%s2041_s3 + $0xf8] sm:$0xff]  ;;  %v651_v15 = vld [vmem:[%s2041_s3 + $0x1e8] sm:$0xff] }
  0x2f   :  { %492 = vmatpush.bf16.msrb.mxu1 %v1071_v8  ;;  %v653_v8 = vld [vmem:[%s2041_s3 + $0x1f8] sm:$0xff]  ;;  %v620_v10 = vld [vmem:[%s2041_s3 + $0xf0] sm:$0xff]  ;;  %v618_v17 = vld [vmem:[%s2041_s3 + $0xe0] sm:$0xff] }
  0x30   :  { %v652_v12 = vld [vmem:[%s2041_s3 + $0x1f0] sm:$0xff]  ;;  %v650_v19 = vld [vmem:[%s2041_s3 + $0x1e0] sm:$0xff]  ;;  %v617_v21 = vld [vmem:[%s2041_s3 + $0xd8] sm:$0xff] }
  0x31   :  { %480 = vmatpush.bf16.msrb.mxu0 %v1035_v13  ;;  %506 = vmatpush.bf16.msrb.mxu2 %v1043_v14  ;;  %v634_v13 = vld [vmem:[%s2041_s3 + $0x160] sm:$0xff]  ;;  %v601_v14 = vld [vmem:[%s2041_s3 + $0x58] sm:$0xff]  ;;  %v600_v18 = vld [vmem:[%s2041_s3 + $0x50] sm:$0xff] }
  0x32   :  { %519 = vmatpush.bf16.msrb.mxu3 %v1047_v16  ;;  %v633_v16 = vld [vmem:[%s2041_s3 + $0x158] sm:$0xff]  ;;  %v599_v22 = vld [vmem:[%s2041_s3 + $0x48] sm:$0xff]  ;;  %v648_v27 = vld [vmem:[%s2041_s3 + $0x1d0] sm:$0xff] }
  0x33   :  { %493 = vmatpush.bf16.msrb.mxu1 %v1039_v20  ;;  %v632_v20 = vld [vmem:[%s2041_s3 + $0x150] sm:$0xff]  ;;  %v649_v23 = vld [vmem:[%s2041_s3 + $0x1d8] sm:$0xff]  ;;  %v631_v24 = vld [vmem:[%s2041_s3 + $0x148] sm:$0xff] }
  0x34   :  { %v615_v29 = vld [vmem:[%s2041_s3 + $0xc8] sm:$0xff]  ;;  %v597_v30 = vld [vmem:[%s2041_s3 + $0x38] sm:$0xff]  ;;  %v614_v33 = vld [vmem:[%s2041_s3 + $0xc0] sm:$0xff] }
  0x35   :  { %481 = vmatpush.bf16.msrb.mxu0 %v1003_v25  ;;  %507 = vmatpush.bf16.msrb.mxu2 %v1011_v26  ;;  %v616_v25 = vld [vmem:[%s2041_s3 + $0xd0] sm:$0xff]  ;;  %v598_v26 = vld [vmem:[%s2041_s3 + $0x40] sm:$0xff]  ;;  %v647_v31 = vld [vmem:[%s2041_s3 + $0x1c8] sm:$0xff] }
  0x36   :  { %520 = vmatpush.bf16.msrb.mxu3 %v1015_v28  ;;  %v630_v28 = vld [vmem:[%s2041_s3 + $0x140] sm:$0xff]  ;;  %v596_v34 = vld [vmem:[%s2041_s3 + $0x30] sm:$0xff]  ;;  %v645_v39 = vld [vmem:[%s2041_s3 + $0x1b8] sm:$0xff] }
  0x37   :  { %494 = vmatpush.bf16.msrb.mxu1 %v1007_v32  ;;  %v629_v32 = vld [vmem:[%s2041_s3 + $0x138] sm:$0xff]  ;;  %v646_v35 = vld [vmem:[%s2041_s3 + $0x1c0] sm:$0xff]  ;;  %v628_v36 = vld [vmem:[%s2041_s3 + $0x130] sm:$0xff] }
  0x38   :  { %v612_v41 = vld [vmem:[%s2041_s3 + $0xb0] sm:$0xff]  ;;  %v594_v42 = vld [vmem:[%s2041_s3 + $0x20] sm:$0xff]  ;;  %v611_v45 = vld [vmem:[%s2041_s3 + $0xa8] sm:$0xff] }
  0x39   :  { %482 = vmatpush.bf16.msrb.mxu0 %v971_v37  ;;  %508 = vmatpush.bf16.msrb.mxu2 %v979_v38  ;;  %v613_v37 = vld [vmem:[%s2041_s3 + $0xb8] sm:$0xff]  ;;  %v595_v38 = vld [vmem:[%s2041_s3 + $0x28] sm:$0xff]  ;;  %v644_v43 = vld [vmem:[%s2041_s3 + $0x1b0] sm:$0xff] }
  0x3a   :  { %521 = vmatpush.bf16.msrb.mxu3 %v983_v40  ;;  %v627_v40 = vld [vmem:[%s2041_s3 + $0x128] sm:$0xff]  ;;  %v593_v46 = vld [vmem:[%s2041_s3 + $0x18] sm:$0xff]  ;;  %v642_v51 = vld [vmem:[%s2041_s3 + $0x1a0] sm:$0xff] }
  0x3b   :  { %495 = vmatpush.bf16.msrb.mxu1 %v975_v44  ;;  %v626_v44 = vld [vmem:[%s2041_s3 + $0x120] sm:$0xff]  ;;  %v643_v47 = vld [vmem:[%s2041_s3 + $0x1a8] sm:$0xff]  ;;  %v625_v48 = vld [vmem:[%s2041_s3 + $0x118] sm:$0xff] }
  0x3c   :  { %v609_v54 = vld [vmem:[%s2041_s3 + $0x98] sm:$0xff]  ;;  %v591_v55 = vld [vmem:[%s2041_s3 + $0x8] sm:$0xff]  ;;  %v608_v58 = vld [vmem:[%s2041_s3 + $0x90] sm:$0xff] }
  0x3d   :  { %483 = vmatpush.bf16.msrb.mxu0 %v939_v49  ;;  %509 = vmatpush.bf16.msrb.mxu2 %v947_v50  ;;  %v610_v49 = vld [vmem:[%s2041_s3 + $0xa0] sm:$0xff]  ;;  %v592_v50 = vld [vmem:[%s2041_s3 + $0x10] sm:$0xff]  ;;  %v641_v56 = vld [vmem:[%s2041_s3 + $0x198] sm:$0xff] }
  0x3e   :  { %522 = vmatpush.bf16.msrb.mxu3 %v951_v53  ;;  %v624_v53 = vld [vmem:[%s2041_s3 + $0x110] sm:$0xff]  ;;  %v590_v59 = vld [vmem:[%s2041_s3] sm:$0xff]  ;;  %v669_v60 = vld [vmem:[%s2041_s3 + $0x278] sm:$0xff] }
  0x3f   :  { %496 = vmatpush.bf16.msrb.mxu1 %v943_v57  ;;  %v623_v57 = vld [vmem:[%s2041_s3 + $0x108] sm:$0xff]  ;;  %v640_v61 = vld [vmem:[%s2041_s3 + $0x190] sm:$0xff] }
  0x41   :  { %484 = vmatpush.bf16.msrb.mxu0 %v907_v62  ;;  %510 = vmatpush.bf16.msrb.mxu2 %v915_v63  ;;  %v607_v62 = vld [vmem:[%s2041_s3 + $0x88] sm:$0xff]  ;;  %v622_v63 = vld [vmem:[%s2041_s3 + $0x100] sm:$0xff] }
  0x42   :  { %523 = vmatpush.bf16.msrb.mxu3 %v919_v0  ;;  %v668_v0 = vld [vmem:[%s2041_s3 + $0x270] sm:$0xff] }
  0x43   :  { %497 = vmatpush.bf16.msrb.mxu1 %v911_v1  ;;  %v639_v1 = vld [vmem:[%s2041_s3 + $0x188] sm:$0xff] }
  0x44   :  { %485 = vmatmul.bf16.vlgmr.msrb.gmra.mxu0 %v1482_v52  ;;  %511 = vmatmul.bf16.vlgmr.msrb.gmra.mxu2 %v1482_v52 }
  0x45   :  { %722 = vmatpush.msra.mxu0 %v605_v2  ;;  %762 = vmatpush.msra.mxu2 %v637_v3  ;;  %v606_v2 = vld [vmem:[%s2041_s3 + $0x80] sm:$0xff]  ;;  %v701_v3 = vld [vmem:[%s2041_s3 + $0x378] sm:$0xff] }
  0x46   :  { %524 = vmatmul.bf16.vlgmr.msrb.gmra.mxu3 %v1482_v52  ;;  %498 = vmatmul.bf16.vlgmr.msrb.gmra.mxu1 %v1482_v52  ;;  %v619_v52 = vld [vmem:[%s2041_s3 + $0xe8] sm:$0xff] }
  0x47   :  { %723 = vmatpush.msra.mxu0 %v604_v4  ;;  %763 = vmatpush.msra.mxu2 %v636_v5  ;;  %v685_v4 = vld [vmem:[%s2041_s3 + $0x2f8] sm:$0xff]  ;;  %v667_v5 = vld [vmem:[%s2041_s3 + $0x268] sm:$0xff] }
  0x48   :  { %742 = vmatpush.msra.mxu1 %v621_v6  ;;  %782 = vmatpush.msra.mxu3 %v653_v8  ;;  %v638_v6 = vld [vmem:[%s2041_s3 + $0x180] sm:$0xff] }
  0x49   :  { %724 = vmatpush.msra.mxu0 %v603_v7  ;;  %764 = vmatpush.msra.mxu2 %v635_v9  ;;  %v684_v7 = vld [vmem:[%s2041_s3 + $0x2f0] sm:$0xff]  ;;  %v666_v8 = vld [vmem:[%s2041_s3 + $0x260] sm:$0xff]  ;;  %v683_v9 = vld [vmem:[%s2041_s3 + $0x2e8] sm:$0xff] }
  0x4a   :  { %743 = vmatpush.msra.mxu1 %v620_v10  ;;  %783 = vmatpush.msra.mxu3 %v652_v12  ;;  %v665_v10 = vld [vmem:[%s2041_s3 + $0x258] sm:$0xff]  ;;  %v700_v12 = vld [vmem:[%s2041_s3 + $0x370] sm:$0xff] }
  0x4b   :  { %725 = vmatpush.msra.mxu0 %v602_v11  ;;  %765 = vmatpush.msra.mxu2 %v634_v13  ;;  %v682_v11 = vld [vmem:[%s2041_s3 + $0x2e0] sm:$0xff]  ;;  %v717_v13 = vld [vmem:[%s2041_s3 + $0x3f8] sm:$0xff] }
  0x4c   :  { %744 = vmatpush.msra.mxu1 %v619_v52  ;;  %784 = vmatpush.msra.mxu3 %v651_v15  ;;  %v664_v52 = vld [vmem:[%s2041_s3 + $0x250] sm:$0xff]  ;;  %v699_v15 = vld [vmem:[%s2041_s3 + $0x368] sm:$0xff] }
  0x4d   :  { %726 = vmatpush.msra.mxu0 %v601_v14  ;;  %766 = vmatpush.msra.mxu2 %v633_v16  ;;  %v681_v14 = vld [vmem:[%s2041_s3 + $0x2d8] sm:$0xff]  ;;  %v716_v16 = vld [vmem:[%s2041_s3 + $0x3f0] sm:$0xff] }
  0x4e   :  { %745 = vmatpush.msra.mxu1 %v618_v17  ;;  %785 = vmatpush.msra.mxu3 %v650_v19  ;;  %v663_v17 = vld [vmem:[%s2041_s3 + $0x248] sm:$0xff]  ;;  %v698_v19 = vld [vmem:[%s2041_s3 + $0x360] sm:$0xff] }
  0x4f   :  { %727 = vmatpush.msra.mxu0 %v600_v18  ;;  %767 = vmatpush.msra.mxu2 %v632_v20  ;;  %v680_v18 = vld [vmem:[%s2041_s3 + $0x2d0] sm:$0xff]  ;;  %v715_v20 = vld [vmem:[%s2041_s3 + $0x3e8] sm:$0xff] }
  0x50   :  { %746 = vmatpush.msra.mxu1 %v617_v21  ;;  %786 = vmatpush.msra.mxu3 %v649_v23  ;;  %v662_v21 = vld [vmem:[%s2041_s3 + $0x240] sm:$0xff]  ;;  %v697_v23 = vld [vmem:[%s2041_s3 + $0x358] sm:$0xff] }
  0x51   :  { %728 = vmatpush.msra.mxu0 %v599_v22  ;;  %768 = vmatpush.msra.mxu2 %v631_v24  ;;  %v679_v22 = vld [vmem:[%s2041_s3 + $0x2c8] sm:$0xff]  ;;  %v714_v24 = vld [vmem:[%s2041_s3 + $0x3e0] sm:$0xff] }
  0x52   :  { %747 = vmatpush.msra.mxu1 %v616_v25  ;;  %787 = vmatpush.msra.mxu3 %v648_v27  ;;  %v661_v25 = vld [vmem:[%s2041_s3 + $0x238] sm:$0xff]  ;;  %v696_v27 = vld [vmem:[%s2041_s3 + $0x350] sm:$0xff] }
  0x53   :  { %729 = vmatpush.msra.mxu0 %v598_v26  ;;  %769 = vmatpush.msra.mxu2 %v630_v28  ;;  %v678_v26 = vld [vmem:[%s2041_s3 + $0x2c0] sm:$0xff]  ;;  %v713_v28 = vld [vmem:[%s2041_s3 + $0x3d8] sm:$0xff] }
  0x54   :  { %748 = vmatpush.msra.mxu1 %v615_v29  ;;  %788 = vmatpush.msra.mxu3 %v647_v31  ;;  %v660_v29 = vld [vmem:[%s2041_s3 + $0x230] sm:$0xff]  ;;  %v695_v31 = vld [vmem:[%s2041_s3 + $0x348] sm:$0xff] }
  0x55   :  { %730 = vmatpush.msra.mxu0 %v597_v30  ;;  %770 = vmatpush.msra.mxu2 %v629_v32  ;;  %v677_v30 = vld [vmem:[%s2041_s3 + $0x2b8] sm:$0xff]  ;;  %v712_v32 = vld [vmem:[%s2041_s3 + $0x3d0] sm:$0xff] }
  0x56   :  { %749 = vmatpush.msra.mxu1 %v614_v33  ;;  %789 = vmatpush.msra.mxu3 %v646_v35  ;;  %v659_v33 = vld [vmem:[%s2041_s3 + $0x228] sm:$0xff]  ;;  %v694_v35 = vld [vmem:[%s2041_s3 + $0x340] sm:$0xff] }
  0x57   :  { %731 = vmatpush.msra.mxu0 %v596_v34  ;;  %771 = vmatpush.msra.mxu2 %v628_v36  ;;  %v676_v34 = vld [vmem:[%s2041_s3 + $0x2b0] sm:$0xff]  ;;  %v711_v36 = vld [vmem:[%s2041_s3 + $0x3c8] sm:$0xff] }
  0x58   :  { %750 = vmatpush.msra.mxu1 %v613_v37  ;;  %790 = vmatpush.msra.mxu3 %v645_v39  ;;  %v658_v37 = vld [vmem:[%s2041_s3 + $0x220] sm:$0xff]  ;;  %v693_v39 = vld [vmem:[%s2041_s3 + $0x338] sm:$0xff] }
  0x59   :  { %732 = vmatpush.msra.mxu0 %v595_v38  ;;  %772 = vmatpush.msra.mxu2 %v627_v40  ;;  %v675_v38 = vld [vmem:[%s2041_s3 + $0x2a8] sm:$0xff]  ;;  %v710_v40 = vld [vmem:[%s2041_s3 + $0x3c0] sm:$0xff] }
  0x5a   :  { %751 = vmatpush.msra.mxu1 %v612_v41  ;;  %791 = vmatpush.msra.mxu3 %v644_v43  ;;  %v657_v41 = vld [vmem:[%s2041_s3 + $0x218] sm:$0xff]  ;;  %v692_v43 = vld [vmem:[%s2041_s3 + $0x330] sm:$0xff] }
  0x5b   :  { %733 = vmatpush.msra.mxu0 %v594_v42  ;;  %773 = vmatpush.msra.mxu2 %v626_v44  ;;  %v674_v42 = vld [vmem:[%s2041_s3 + $0x2a0] sm:$0xff]  ;;  %v709_v44 = vld [vmem:[%s2041_s3 + $0x3b8] sm:$0xff] }
  0x5c   :  { %752 = vmatpush.msra.mxu1 %v611_v45  ;;  %792 = vmatpush.msra.mxu3 %v643_v47  ;;  %v1963_v45 = vld [vmem:[%s2043_s2] sm:$0xff]  ;;  %v673_v47 = vld [vmem:[%s2041_s3 + $0x298] sm:$0xff] }
  0x5d   :  { %734 = vmatpush.msra.mxu0 %v593_v46  ;;  %774 = vmatpush.msra.mxu2 %v625_v48  ;;  %v656_v46 = vld [vmem:[%s2041_s3 + $0x210] sm:$0xff]  ;;  %v691_v48 = vld [vmem:[%s2041_s3 + $0x328] sm:$0xff] }
  0x5e   :  { %753 = vmatpush.msra.mxu1 %v610_v49  ;;  %793 = vmatpush.msra.mxu3 %v642_v51  ;;  %v558_v49 = vperm.slane %v1963_v45, 0  ;;  %v655_v51 = vld [vmem:[%s2041_s3 + $0x208] sm:$0xff] }
  0x5f   :  { %735 = vmatpush.msra.mxu0 %v592_v50  ;;  %775 = vmatpush.msra.mxu2 %v624_v53  ;;  %v708_v50 = vld [vmem:[%s2041_s3 + $0x3b0] sm:$0xff] }
  0x60   :  { %754 = vmatpush.msra.mxu1 %v609_v54  ;;  %794 = vmatpush.msra.mxu3 %v641_v56  ;;  %v672_v53 = vld [vmem:[%s2041_s3 + $0x290] sm:$0xff]  ;;  %v690_v54 = vld [vmem:[%s2041_s3 + $0x320] sm:$0xff]  ;;  %v707_v56 = vld [vmem:[%s2041_s3 + $0x3a8] sm:$0xff] }
  0x61   :  { %736 = vmatpush.msra.mxu0 %v591_v55  ;;  %776 = vmatpush.msra.mxu2 %v623_v57  ;;  %v559_v55 = vperm.slane %v1963_v45, 1 }
  0x62   :  { %755 = vmatpush.msra.mxu1 %v608_v58  ;;  %795 = vmatpush.msra.mxu3 %v640_v61  ;;  %v654_v58 = vld [vmem:[%s2041_s3 + $0x200] sm:$0xff] }
  0x63   :  { %737 = vmatpush.msra.mxu0 %v590_v59  ;;  %777 = vmatpush.msra.mxu2 %v622_v63  ;;  %v671_v59 = vld [vmem:[%s2041_s3 + $0x288] sm:$0xff]  ;;  %v560_v63 = vperm.slane %v1963_v45, 2 }
  0x64   :  { %756 = vmatpush.msra.mxu1 %v607_v62  ;;  %796 = vmatpush.msra.mxu3 %v639_v1  ;;  %v706_v62 = vld [vmem:[%s2041_s3 + $0x3a0] sm:$0xff] }
  0x65   :  { %802 = vmatpush.msrb.mxu0 %v669_v60  ;;  %842 = vmatpush.msrb.mxu2 %v701_v3  ;;  %v689_v60 = vld [vmem:[%s2041_s3 + $0x318] sm:$0xff]  ;;  %v670_v1 = vld [vmem:[%s2041_s3 + $0x280] sm:$0xff] }
  0x66   :  { %757 = vmatpush.msra.mxu1 %v606_v2  ;;  %797 = vmatpush.msra.mxu3 %v638_v6  ;;  %v688_v2 = vld [vmem:[%s2041_s3 + $0x310] sm:$0xff]  ;;  %v705_v3 = vld [vmem:[%s2041_s3 + $0x398] sm:$0xff] }
  0x67   :  { %803 = vmatpush.msrb.mxu0 %v668_v0  ;;  %843 = vmatpush.msrb.mxu2 %v700_v12 }
  0x68   :  { %822 = vmatpush.msrb.mxu1 %v685_v4  ;;  %862 = vmatpush.msrb.mxu3 %v717_v13  ;;  %v686_v13 = vld [vmem:[%s2041_s3 + $0x300] sm:$0xff] }
  0x69   :  { %804 = vmatpush.msrb.mxu0 %v667_v5  ;;  %844 = vmatpush.msrb.mxu2 %v699_v15  ;;  %v561_v5 = vperm.slane %v1963_v45, 3  ;;  %v702_v15 = vld [vmem:[%s2041_s3 + $0x380] sm:$0xff] }
  0x6a   :  { %823 = vmatpush.msrb.mxu1 %v684_v7  ;;  %863 = vmatpush.msrb.mxu3 %v716_v16  ;;  %v687_v7 = vld [vmem:[%s2041_s3 + $0x308] sm:$0xff] }
  0x6b   :  { %805 = vmatpush.msrb.mxu0 %v666_v8  ;;  %845 = vmatpush.msrb.mxu2 %v698_v19  ;;  %v704_v8 = vld [vmem:[%s2041_s3 + $0x390] sm:$0xff] }
  0x6c   :  { %824 = vmatpush.msrb.mxu1 %v683_v9  ;;  %864 = vmatpush.msrb.mxu3 %v715_v20 }
  0x6d   :  { %806 = vmatpush.msrb.mxu0 %v665_v10  ;;  %846 = vmatpush.msrb.mxu2 %v697_v23  ;;  %v563_v23 = vperm.slane %v1963_v45, 5 }
  0x6e   :  { %825 = vmatpush.msrb.mxu1 %v682_v11  ;;  %865 = vmatpush.msrb.mxu3 %v714_v24 }
  0x6f   :  { %807 = vmatpush.msrb.mxu0 %v664_v52  ;;  %847 = vmatpush.msrb.mxu2 %v696_v27  ;;  %v703_v52 = vld [vmem:[%s2041_s3 + $0x388] sm:$0xff] }
  0x70   :  { %826 = vmatpush.msrb.mxu1 %v681_v14  ;;  %866 = vmatpush.msrb.mxu3 %v713_v28 }
  0x71   :  { %808 = vmatpush.msrb.mxu0 %v663_v17  ;;  %848 = vmatpush.msrb.mxu2 %v695_v31 }
  0x72   :  { %827 = vmatpush.msrb.mxu1 %v680_v18  ;;  %867 = vmatpush.msrb.mxu3 %v712_v32 }
  0x73   :  { %809 = vmatpush.msrb.mxu0 %v662_v21  ;;  %849 = vmatpush.msrb.mxu2 %v694_v35 }
  0x74   :  { %828 = vmatpush.msrb.mxu1 %v679_v22  ;;  %868 = vmatpush.msrb.mxu3 %v711_v36  ;;  %v562_v22 = vperm.slane %v1963_v45, 4 }
  0x75   :  { %810 = vmatpush.msrb.mxu0 %v661_v25  ;;  %850 = vmatpush.msrb.mxu2 %v693_v39 }
  0x76   :  { %829 = vmatpush.msrb.mxu1 %v678_v26  ;;  %869 = vmatpush.msrb.mxu3 %v710_v40 }
  0x77   :  { %811 = vmatpush.msrb.mxu0 %v660_v29  ;;  %851 = vmatpush.msrb.mxu2 %v692_v43  ;;  %v564_v29 = vperm.slane %v1963_v45, 6 }
  0x78   :  { %830 = vmatpush.msrb.mxu1 %v677_v30  ;;  %870 = vmatpush.msrb.mxu3 %v709_v44  ;;  %v565_v30 = vperm.slane %v1963_v45, 7 }
  0x79   :  { %812 = vmatpush.msrb.mxu0 %v659_v33  ;;  %852 = vmatpush.msrb.mxu2 %v691_v48 }
  0x7a   :  { %831 = vmatpush.msrb.mxu1 %v676_v34  ;;  %871 = vmatpush.msrb.mxu3 %v708_v50 }
  0x7b   :  { %813 = vmatpush.msrb.mxu0 %v658_v37  ;;  %853 = vmatpush.msrb.mxu2 %v690_v54 }
  0x7c   :  { %832 = vmatpush.msrb.mxu1 %v675_v38  ;;  %872 = vmatpush.msrb.mxu3 %v707_v56 }
  0x7d   :  { %814 = vmatpush.msrb.mxu0 %v657_v41  ;;  %854 = vmatpush.msrb.mxu2 %v689_v60 }
  0x7e   :  { %833 = vmatpush.msrb.mxu1 %v674_v42  ;;  %873 = vmatpush.msrb.mxu3 %v706_v62  ;;  %v1208_v42 = vld [vmem:[%s2042_s4] ss:$0 sm:$0xff] }
  0x7f   :  { %815 = vmatpush.msrb.mxu0 %v656_v46  ;;  %855 = vmatpush.msrb.mxu2 %v688_v2 }
  0x80   :  { %834 = vmatpush.msrb.mxu1 %v673_v47  ;;  %874 = vmatpush.msrb.mxu3 %v705_v3 }
  0x81   :  { %816 = vmatpush.msrb.mxu0 %v655_v51  ;;  %856 = vmatpush.msrb.mxu2 %v687_v7 }
  0x82   :  { %835 = vmatpush.msrb.mxu1 %v672_v53  ;;  %875 = vmatpush.msrb.mxu3 %v704_v8 }
  0x83   :  { %817 = vmatpush.msrb.mxu0 %v654_v58  ;;  %857 = vmatpush.msrb.mxu2 %v686_v13 }
  0x84   :  { %836 = vmatpush.msrb.mxu1 %v671_v59  ;;  %876 = vmatpush.msrb.mxu3 %v703_v52 }
  0x86   :  { %837 = vmatpush.msrb.mxu1 %v670_v1  ;;  %877 = vmatpush.msrb.mxu3 %v702_v15 }
  0xa1   :  { %v434_v57 = vpop.f32.mrf.mxu0 }
  0xa2   :  { %v574_v61 = vadd.f32 %v558_v49, %v434_v57 }
  0xa3   :  { %v447_v0 = vpop.f32.mrf.mxu1 }
  0xa4   :  { %v582_v4 = vmax.f32 %v574_v61, 0.0  ;;  %v575_v6 = vadd.f32 %v559_v55, %v447_v0 }
  0xa6   :  { %v583_v10 = vmax.f32 %v575_v6, 0.0  ;;  %738 = vmatmul.f32.vlgmr.msra.gmra.mxu0 %v582_v4 }
  0xa7   :  { %v460_v9 = vpop.f32.mrf.mxu2 }
  0xa8   :  { %v576_v11 = vadd.f32 %v560_v63, %v460_v9  ;;  %758 = vmatmul.f32.vlgmr.msra.gmra.mxu1 %v583_v10 }
  0xa9   :  { %v436_v17 = vpop.f32.mrf.mxu0 }
  0xaa   :  { %v473_v12 = vpop.f32.mrf.mxu3  ;;  %v584_v16 = vmax.f32 %v576_v11, 0.0 }
  0xab   :  { %v577_v14 = vadd.f32 %v561_v5, %v473_v12  ;;  %v449_v19 = vpop.f32.mrf.mxu1 }
  0xac   :  { %778 = vmatmul.f32.vlgmr.msra.gmra.mxu2 %v584_v16 }
  0xad   :  { %v585_v18 = vmax.f32 %v577_v14, 0.0 }
  0xaf   :  { %798 = vmatmul.f32.vlgmr.msra.gmra.mxu3 %v585_v18  ;;  %v462_v20 = vpop.f32.mrf.mxu2 }
  0xb2   :  { %v475_v21 = vpop.f32.mrf.mxu3 }
  0xc1   :  { %v486_v24 = vpop.f32.mrf.mxu0 }
  0xc2   :  { %v578_v25 = vadd.f32 %v562_v22, %v486_v24 }
  0xc3   :  { %v499_v26 = vpop.f32.mrf.mxu1 }
  0xc4   :  { %v586_v27 = vmax.f32 %v578_v25, 0.0  ;;  %v579_v28 = vadd.f32 %v563_v23, %v499_v26 }
  0xc6   :  { %v587_v31 = vmax.f32 %v579_v28, 0.0  ;;  %818 = vmatmul.f32.vlgmr.msrb.gmra.mxu0 %v586_v27 }
  0xc7   :  { %v512_v32 = vpop.f32.mrf.mxu2 }
  0xc8   :  { %v580_v33 = vadd.f32 %v564_v29, %v512_v32  ;;  %838 = vmatmul.f32.vlgmr.msrb.gmra.mxu1 %v587_v31 }
  0xc9   :  { %v525_v34 = vpop.f32.mrf.mxu3  ;;  %v488_v36 = vpop.f32.mrf.mxu0 }
  0xca   :  { %v581_v35 = vadd.f32 %v565_v30, %v525_v34  ;;  %v588_v37 = vmax.f32 %v580_v33, 0.0 }
  0xcb   :  { %v501_v39 = vpop.f32.mrf.mxu1 }
  0xcc   :  { %v589_v38 = vmax.f32 %v581_v35, 0.0  ;;  %858 = vmatmul.f32.vlgmr.msrb.gmra.mxu2 %v588_v37 }
  0xce   :  { %878 = vmatmul.f32.vlgmr.msrb.gmra.mxu3 %v589_v38 }
  0xcf   :  { %v514_v40 = vpop.f32.mrf.mxu2 }
  0xd1   :  { %v527_v41 = vpop.f32.mrf.mxu3 }
 0x123   :  { %v739_v43 = vpop.f32.mrf.mxu0 }
 0x124   :  { %v740_v44 = vadd.f32 %v1208_v42, %v739_v43 }
 0x125   :  { %v759_v45 = vpop.f32.mrf.mxu1 }
 0x126   :  { %v760_v46 = vadd.f32 %v759_v45, %v740_v44 }
 0x12f   :  { %v779_v47 = vpop.f32.mrf.mxu2 }
 0x130   :  { %v780_v48 = vadd.f32 %v779_v47, %v760_v46 }
 0x132   :  { %v799_v49 = vpop.f32.mrf.mxu3 }
 0x133   :  { %v800_v50 = vadd.f32 %v799_v49, %v780_v48 }
 0x143   :  { %v819_v51 = vpop.f32.mrf.mxu0 }
 0x144   :  { %v820_v53 = vadd.f32 %v819_v51, %v800_v50 }
 0x145   :  { %v839_v54 = vpop.f32.mrf.mxu1 }
 0x146   :  { %v840_v55 = vadd.f32 %v839_v54, %v820_v53 }
 0x14f   :  { %v859_v56 = vpop.f32.mrf.mxu2 }
 0x150   :  { %v860_v57 = vadd.f32 %v859_v56, %v840_v55 }
 0x151   :  { %v879_v58 = vpop.f32.mrf.mxu3 }
 0x152   :  { %v880_v59 = vadd.f32 %v879_v58, %v860_v57 }
 0x154   :  { %883 = vst.msk [vmem:[%s2044_s5] sm:$0xff] %vm882_vm0, %v880_v59 }

</bundles_post_ra>
